<compile_context>
chip_gen: v6e
topology: v6e:2x2x1
jax: 0.10.0
libtpu: 0.0.40
codegen_flags: <defaults>
</compile_context>

<pallas_src>
import numpy as np
import jax
import jax.numpy as jnp
from jax.experimental import pallas as pl
from jax.experimental.pallas import tpu as pltpu


def _sigmoid_f32(x):
    # 1 / (1 + exp(-x)) with the divide on the EUP (approx reciprocal).
    return pl.reciprocal(1.0 + jnp.exp(-x), approx=True)


# ---------------------------------------------------------------------------
# Constant structure matrices (depend only on static spatial sizes).
# ---------------------------------------------------------------------------
def _structure_mats(H, W, Hs, Ws):
    HW, HsWs = H * W, Hs * Ws
    # D[a*2+b, (2i+a)*W + (2j+b), i*Ws + j] = 1  -> ConvTranspose tap scatter
    D = np.zeros((4, HW, HsWs), np.float32)
    for a in range(2):
        for b in range(2):
            k = a * 2 + b
            for i in range(Hs):
                for j in range(Ws):
                    D[k, (2 * i + a) * W + (2 * j + b), i * Ws + j] = 1.0
    # T[dy*3+dx, h*W+w, (h+dy-1)*W + (w+dx-1)] = 1 (zero padding) -> 3x3 conv shifts
    T = np.zeros((9, HW, HW), np.float32)
    for dy in range(3):
        for dx in range(3):
            k = dy * 3 + dx
            for h in range(H):
                hp = h + dy - 1
                if not (0 <= hp < H):
                    continue
                for w in range(W):
                    wp = w + dx - 1
                    if 0 <= wp < W:
                        T[k, h * W + w, hp * W + wp] = 1.0
    # 1-D shift operators for the 7x7 spatial-attention conv (padding 3)
    Ry = np.zeros((7, H, H), np.float32)
    Rx = np.zeros((7, W, W), np.float32)
    for d in range(7):
        for h in range(H):
            hp = h + d - 3
            if 0 <= hp < H:
                Ry[d, h, hp] = 1.0
        for w in range(W):
            wp = w + d - 3
            if 0 <= wp < W:
                Rx[d, w, wp] = 1.0
    return D, T, Ry, Rx


# ---------------------------------------------------------------------------
# Fused DecoderBlock kernel (one grid step = one batch image, (C, HW) layout).
# ---------------------------------------------------------------------------
def _decoder_block_kernel(xs_ref, xu_ref, wup_ref, bup_ref, dt_ref,
                          caw1_ref, caw2_ref, c7t_ref, tt_ref,
                          wf1_ref, s1_ref, b1_ref,
                          wf2_ref, s2_ref, b2_ref, wal_ref, o_ref):
    f32 = jnp.float32
    bf16 = jnp.bfloat16
    Cu = xu_ref.shape[1]
    Cout = s1_ref.shape[0]

    xs = xs_ref[0]                      # (Cs, HW)  f32
    xs_bf = xs.astype(bf16)
    xu_bf = xu_ref[0].astype(bf16)      # (Cu, HsWs)

    # ---- ConvTranspose2d(Cu, Cu, kernel=2, stride=2): merged 4-tap weights ----
    taps = jnp.dot(wup_ref[...], xu_bf, preferred_element_type=f32)     # (4*Cu, HsWs)
    up = None
    for k in range(4):
        tap_k = taps[k * Cu:(k + 1) * Cu].astype(bf16)                  # (Cu, HsWs)
        contrib = jnp.dot(tap_k, dt_ref[k], preferred_element_type=f32)  # (Cu, HW)
        up = contrib if up is None else up + contrib
    up = up + bup_ref[...]                                              # + bias (Cu,1)

    # ---- ChannelAttention: global avg/max pool + shared FC pair + sigmoid ----
    avg = jnp.mean(xs, axis=1, keepdims=True)        # (Cs, 1)
    mx = jnp.max(xs, axis=1, keepdims=True)          # (Cs, 1)
    v = jnp.concatenate([avg, mx], axis=1)           # (Cs, 2) — batch both pools
    h = jnp.maximum(jnp.dot(caw1_ref[...], v, preferred_element_type=f32), 0.0)
    o2 = jnp.dot(caw2_ref[...], h, preferred_element_type=f32)          # (Cs, 2)
    ch_scale = _sigmoid_f32(o2[:, 0:1] + o2[:, 1:2])                    # (Cs, 1)
    x_ca = xs * ch_scale                                                # (Cs, HW)

    # ---- SpatialAttention: channel mean/max + one fused (1,2HW)@(2HW,HW) conv ----
    m_avg = jnp.mean(x_ca, axis=0, keepdims=True)    # (1, HW)
    m_max = jnp.max(x_ca, axis=0, keepdims=True)     # (1, HW)
    m_cat = jnp.concatenate([m_avg, m_max], axis=1).astype(bf16)        # (1, 2*HW)
    sp = jnp.dot(m_cat, c7t_ref[...], preferred_element_type=f32)       # (1, HW)
    x_att = x_ca * _sigmoid_f32(sp)                                     # (Cs, HW)

    # ---- conv_fuse conv1 (3x3, pad 1) on concat([up, x_att]) + BN1 + ReLU ----
    xcat = jnp.concatenate([up.astype(bf16), x_att.astype(bf16)], axis=0)  # (Cu+Cs, HW)
    y1stk = jnp.dot(wf1_ref[...], xcat, preferred_element_type=f32)        # (9*Cout, HW)
    acc1 = None
    for k in range(9):
        yk = y1stk[k * Cout:(k + 1) * Cout].astype(bf16)                   # (Cout, HW)
        c = jnp.dot(yk, tt_ref[k], preferred_element_type=f32)             # (Cout, HW)
        acc1 = c if acc1 is None else acc1 + c
    y1 = jnp.maximum(acc1 * s1_ref[...] + b1_ref[...], 0.0)                # (Cout, HW)

    # ---- conv2 (3x3, pad 1) + BN2 + ReLU (+ Dropout eval = identity) ----
    y2stk = jnp.dot(wf2_ref[...], y1.astype(bf16), preferred_element_type=f32)
    acc2 = None
    for k in range(9):
        yk = y2stk[k * Cout:(k + 1) * Cout].astype(bf16)
        c = jnp.dot(yk, tt_ref[k], preferred_element_type=f32)
        acc2 = c if acc2 is None else acc2 + c
    y2 = jnp.maximum(acc2 * s2_ref[...] + b2_ref[...], 0.0)                # (Cout, HW)

    # ---- align_channels 1x1 residual + final ReLU; lane-dense (Cout, HW) store ----
    res = jnp.dot(wal_ref[...], xs_bf, preferred_element_type=f32)         # (Cout, HW)
    o_ref[0] = jnp.maximum(y2 + res, 0.0)


# ---------------------------------------------------------------------------
# Python wrapper: NCHW in / NCHW out, all weight folding done here (tiny XLA ops).
# ---------------------------------------------------------------------------
def decoder_block_forward(x_skip_nchw, x_up_nchw, params):
    N, Cs, H, W = x_skip_nchw.shape
    _, Cu, Hs, Ws = x_up_nchw.shape
    Cout = params["w_align"].shape[0]
    Chid = params["ca_w1"].shape[0]
    HW, HsWs = H * W, Hs * Ws
    eps = 1e-5
    f32 = jnp.float32
    bf16 = jnp.bfloat16

    # Free metadata reshapes; the kernel works directly in (C, HW) layout.
    xs = x_skip_nchw.reshape(N, Cs, HW).astype(f32)
    xu = x_up_nchw.reshape(N, Cu, HsWs).astype(f32)

    Dnp, Tnp, Rynp, Rxnp = _structure_mats(H, W, Hs, Ws)
    DT = jnp.asarray(np.transpose(Dnp, (0, 2, 1))).astype(bf16)    # (4, HsWs, HW)
    TT = jnp.asarray(np.transpose(Tnp, (0, 2, 1))).astype(bf16)    # (9, HW, HW)

    # ConvTranspose taps, stacked: row (a*2+b)*Cu + co maps ci -> co for tap (a,b)
    wup = jnp.transpose(params["w_up"], (2, 3, 1, 0)).reshape(4 * Cu, Cu).astype(bf16)
    bup = params["b_up"].reshape(Cu, 1).astype(f32)

    # ChannelAttention 1x1 conv weights (kept f32: tiny, attention scales stay exact)
    caw1 = params["ca_w1"][:, :, 0, 0].astype(f32)     # (Chid, Cs)
    caw2 = params["ca_w2"][:, :, 0, 0].astype(f32)     # (Cs, Chid)

    # SpatialAttention: fold 7x7 conv weights * channel_weight into one (2*HW, HW)
    # right-operand so  sp = [m_avg | m_max] @ C7T .   (Conv2d(2,1,7) has no bias.)
    w7 = (params["sa_w"][0] * params["sa_cw"][:, None, None]).astype(f32)   # (2,7,7)
    A = jnp.einsum('cde,ewv->cdwv', w7, jnp.asarray(Rxnp))                  # (2,7,W,W)
    C7 = jnp.einsum('dhg,cdwv->chwgv', jnp.asarray(Rynp), A).reshape(2, HW, HW)
    C7T = jnp.transpose(C7, (0, 2, 1)).reshape(2 * HW, HW).astype(bf16)

    # conv_fuse conv1: stack the 9 taps -> (9*Cout, Cu+Cs); input channel order is
    # [up (Cu) ; skip (Cs)] matching torch.cat([x_up, x_skip_att], dim=1).
    wf1 = jnp.transpose(params["wf1"], (2, 3, 0, 1)).reshape(9 * Cout, Cu + Cs).astype(bf16)
    s1 = (params["bn1_gamma"] / jnp.sqrt(params["bn1_var"] + eps)).reshape(Cout, 1).astype(f32)
    b1 = (params["bn1_beta"].reshape(Cout, 1) - params["bn1_mean"].reshape(Cout, 1) * s1).astype(f32)

    wf2 = jnp.transpose(params["wf2"], (2, 3, 0, 1)).reshape(9 * Cout, Cout).astype(bf16)
    s2 = (params["bn2_gamma"] / jnp.sqrt(params["bn2_var"] + eps)).reshape(Cout, 1).astype(f32)
    b2 = (params["bn2_beta"].reshape(Cout, 1) - params["bn2_mean"].reshape(Cout, 1) * s2).astype(f32)

    wal = params["w_align"][:, :, 0, 0].astype(bf16)    # (Cout, Cs)

    const2 = lambda n: (0, 0)
    const3 = lambda n: (0, 0, 0)

    out = pl.pallas_call(
        _decoder_block_kernel,
        out_shape=jax.ShapeDtypeStruct((N, Cout, HW), f32),
        grid=(N,),
        in_specs=[
            pl.BlockSpec((1, Cs, HW), lambda n: (n, 0, 0)),      # x_skip (Cs, HW)
            pl.BlockSpec((1, Cu, HsWs), lambda n: (n, 0, 0)),    # x_up   (Cu, HsWs)
            pl.BlockSpec((4 * Cu, Cu), const2),                  # wup stacked taps
            pl.BlockSpec((Cu, 1), const2),                       # bup
            pl.BlockSpec((4, HsWs, HW), const3),                 # D^T scatter mats
            pl.BlockSpec((Chid, Cs), const2),                    # ca fc1
            pl.BlockSpec((Cs, Chid), const2),                    # ca fc2
            pl.BlockSpec((2 * HW, HW), const2),                  # C7^T spatial-attn
            pl.BlockSpec((9, HW, HW), const3),                   # T^T 3x3 shift mats
            pl.BlockSpec((9 * Cout, Cu + Cs), const2),           # conv1 stacked taps
            pl.BlockSpec((Cout, 1), const2),                     # s1
            pl.BlockSpec((Cout, 1), const2),                     # b1
            pl.BlockSpec((9 * Cout, Cout), const2),              # conv2 stacked taps
            pl.BlockSpec((Cout, 1), const2),                     # s2
            pl.BlockSpec((Cout, 1), const2),                     # b2
            pl.BlockSpec((Cout, Cs), const2),                    # align 1x1
        ],
        out_specs=pl.BlockSpec((1, Cout, HW), lambda n: (n, 0, 0)),
        compiler_params=pltpu.CompilerParams(
            dimension_semantics=("parallel",),
            vmem_limit_bytes=64 * 1024 * 1024,
        ),
    )(xs, xu, wup, bup, DT, caw1, caw2, C7T, TT, wf1, s1, b1, wf2, s2, b2, wal)

    return out.reshape(N, Cout, H, W)   # NCHW, no extra transpose needed


if __name__ == "__main__":
    # Shapes consistent with the module:
    #   in_channels_skip=32, in_channels_up=16, out_channels=16, use_attention=True
    N, Cs, Cu, Co, H, W = 2, 32, 16, 16, 16, 16
    Hs, Ws = H // 2, W // 2
    Chid = Cs // 16  # reduction_ratio=16

    key = jax.random.PRNGKey(0)
    ks = jax.random.split(key, 16)
    f32 = jnp.float32
    params = {
        # ConvTranspose2d(Cu, Cu, 2, 2): weight (Cin, Cout, 2, 2), bias (Cu,)
        "w_up": 0.1 * jax.random.normal(ks[0], (Cu, Cu, 2, 2), f32),
        "b_up": 0.1 * jax.random.normal(ks[1], (Cu,), f32),
        # ChannelAttention fc: Conv2d(Cs, Chid, 1) and Conv2d(Chid, Cs, 1), no bias
        "ca_w1": 0.1 * jax.random.normal(ks[2], (Chid, Cs, 1, 1), f32),
        "ca_w2": 0.1 * jax.random.normal(ks[3], (Cs, Chid, 1, 1), f32),
        # SpatialAttention: Conv2d(2, 1, 7, padding=3, bias=False), channel_weight=ones(2)
        "sa_w": 0.1 * jax.random.normal(ks[4], (1, 2, 7, 7), f32),
        "sa_cw": jnp.ones((2,), f32),
        # conv_fuse
        "wf1": 0.1 * jax.random.normal(ks[5], (Co, Cu + Cs, 3, 3), f32),
        "bn1_gamma": 1.0 + 0.1 * jax.random.normal(ks[6], (Co,), f32),
        "bn1_beta": 0.1 * jax.random.normal(ks[7], (Co,), f32),
        "bn1_mean": jnp.zeros((Co,), f32),
        "bn1_var": jnp.ones((Co,), f32),
        "wf2": 0.1 * jax.random.normal(ks[8], (Co, Co, 3, 3), f32),
        "bn2_gamma": 1.0 + 0.1 * jax.random.normal(ks[9], (Co,), f32),
        "bn2_beta": 0.1 * jax.random.normal(ks[10], (Co,), f32),
        "bn2_mean": jnp.zeros((Co,), f32),
        "bn2_var": jnp.ones((Co,), f32),
        # align_channels: Conv2d(Cs, Co, 1, bias=False)
        "w_align": 0.1 * jax.random.normal(ks[11], (Co, Cs, 1, 1), f32),
    }

    x_skip = jax.random.normal(ks[12], (N, Cs, H, W), f32)
    x_up = jax.random.normal(ks[13], (N, Cu, Hs, Ws), f32)

    out = jax.jit(decoder_block_forward)(x_skip, x_up, params)
    out = jax.block_until_ready(out)
    assert out.shape == (N, Co, H, W) and out.dtype == jnp.float32
    assert bool(jnp.all(jnp.isfinite(out)))
    print("KERNEL_OK")
</pallas_src>

<mosaic_0001>
module attributes {stable_mosaic.version = 11 : i64} {
  func.func @_decoder_block_kernel(%arg0: i32, %arg1: memref<1x32x256xf32, #tpu.memory_space<vmem>>, %arg2: memref<1x16x64xf32, #tpu.memory_space<vmem>>, %arg3: memref<64x16xbf16, #tpu.memory_space<vmem>>, %arg4: memref<16x1xf32, #tpu.memory_space<vmem>>, %arg5: memref<4x64x256xbf16, #tpu.memory_space<vmem>>, %arg6: memref<2x32xf32, #tpu.memory_space<vmem>>, %arg7: memref<32x2xf32, #tpu.memory_space<vmem>>, %arg8: memref<512x256xbf16, #tpu.memory_space<vmem>>, %arg9: memref<9x256x256xbf16, #tpu.memory_space<vmem>>, %arg10: memref<144x48xbf16, #tpu.memory_space<vmem>>, %arg11: memref<16x1xf32, #tpu.memory_space<vmem>>, %arg12: memref<16x1xf32, #tpu.memory_space<vmem>>, %arg13: memref<144x16xbf16, #tpu.memory_space<vmem>>, %arg14: memref<16x1xf32, #tpu.memory_space<vmem>>, %arg15: memref<16x1xf32, #tpu.memory_space<vmem>>, %arg16: memref<16x32xbf16, #tpu.memory_space<vmem>>, %arg17: memref<1x16x256xf32, #tpu.memory_space<vmem>>) attributes {dimension_semantics = [#tpu.dimension_semantics<parallel>], iteration_bounds = array<i64: 2>, scalar_prefetch = 0 : i64, scratch_operands = 0 : i64, tpu.core_type = #tpu.core_type<tc>, window_params = [{transform_indices = @transform_0, window_bounds = array<i64: 1, 32, 256>}, {transform_indices = @transform_1, window_bounds = array<i64: 1, 16, 64>}, {pipeline_mode = #tpu.pipeline_mode<synchronous>, transform_indices = @transform_2, window_bounds = array<i64: 64, 16>}, {pipeline_mode = #tpu.pipeline_mode<synchronous>, transform_indices = @transform_3, window_bounds = array<i64: 16, 1>}, {pipeline_mode = #tpu.pipeline_mode<synchronous>, transform_indices = @transform_4, window_bounds = array<i64: 4, 64, 256>}, {pipeline_mode = #tpu.pipeline_mode<synchronous>, transform_indices = @transform_5, window_bounds = array<i64: 2, 32>}, {pipeline_mode = #tpu.pipeline_mode<synchronous>, transform_indices = @transform_6, window_bounds = array<i64: 32, 2>}, {pipeline_mode = #tpu.pipeline_mode<synchronous>, transform_indices = @transform_7, window_bounds = array<i64: 512, 256>}, {pipeline_mode = #tpu.pipeline_mode<synchronous>, transform_indices = @transform_8, window_bounds = array<i64: 9, 256, 256>}, {pipeline_mode = #tpu.pipeline_mode<synchronous>, transform_indices = @transform_9, window_bounds = array<i64: 144, 48>}, {pipeline_mode = #tpu.pipeline_mode<synchronous>, transform_indices = @transform_10, window_bounds = array<i64: 16, 1>}, {pipeline_mode = #tpu.pipeline_mode<synchronous>, transform_indices = @transform_11, window_bounds = array<i64: 16, 1>}, {pipeline_mode = #tpu.pipeline_mode<synchronous>, transform_indices = @transform_12, window_bounds = array<i64: 144, 16>}, {pipeline_mode = #tpu.pipeline_mode<synchronous>, transform_indices = @transform_13, window_bounds = array<i64: 16, 1>}, {pipeline_mode = #tpu.pipeline_mode<synchronous>, transform_indices = @transform_14, window_bounds = array<i64: 16, 1>}, {pipeline_mode = #tpu.pipeline_mode<synchronous>, transform_indices = @transform_15, window_bounds = array<i64: 16, 32>}, {transform_indices = @transform_16, window_bounds = array<i64: 1, 16, 256>}]} {
    %c0 = arith.constant 0 : index
    %c0_0 = arith.constant 0 : index
    %c0_1 = arith.constant 0 : index
    %0 = vector.load %arg1[%c0, %c0_0, %c0_1] : memref<1x32x256xf32, #tpu.memory_space<vmem>>, vector<1x32x256xf32>
    %1 = vector.shape_cast %0 : vector<1x32x256xf32> to vector<32x256xf32>
    %2 = arith.truncf %1 : vector<32x256xf32> to vector<32x256xbf16>
    %c0_2 = arith.constant 0 : index
    %c0_3 = arith.constant 0 : index
    %c0_4 = arith.constant 0 : index
    %3 = vector.load %arg2[%c0_2, %c0_3, %c0_4] : memref<1x16x64xf32, #tpu.memory_space<vmem>>, vector<1x16x64xf32>
    %4 = vector.shape_cast %3 : vector<1x16x64xf32> to vector<16x64xf32>
    %5 = arith.truncf %4 : vector<16x64xf32> to vector<16x64xbf16>
    %c0_5 = arith.constant 0 : index
    %c0_6 = arith.constant 0 : index
    %6 = vector.load %arg3[%c0_5, %c0_6] : memref<64x16xbf16, #tpu.memory_space<vmem>>, vector<64x16xbf16>
    %cst = arith.constant dense<0.000000e+00> : vector<64x64xf32>
    %7 = tpu.matmul %6, %5, %cst {dimension_numbers = #tpu.dot_dimension_numbers<[1], [0], [0], [1], [0, 0, 1, 1], [], []>} : vector<64x16xbf16>, vector<16x64xbf16>, vector<64x64xf32> -> vector<64x64xf32>
    %8 = vector.extract_strided_slice %7 {offsets = [0, 0], sizes = [16, 64], strides = [1, 1]} : vector<64x64xf32> to vector<16x64xf32>
    %9 = arith.truncf %8 : vector<16x64xf32> to vector<16x64xbf16>
    %c0_7 = arith.constant 0 : index
    %c0_8 = arith.constant 0 : index
    %c0_9 = arith.constant 0 : index
    %10 = vector.load %arg5[%c0_7, %c0_8, %c0_9] : memref<4x64x256xbf16, #tpu.memory_space<vmem>>, vector<1x64x256xbf16>
    %11 = vector.shape_cast %10 : vector<1x64x256xbf16> to vector<64x256xbf16>
    %cst_10 = arith.constant dense<0.000000e+00> : vector<16x256xf32>
    %12 = tpu.matmul %9, %11, %cst_10 {dimension_numbers = #tpu.dot_dimension_numbers<[1], [0], [0], [1], [0, 0, 1, 1], [], []>} : vector<16x64xbf16>, vector<64x256xbf16>, vector<16x256xf32> -> vector<16x256xf32>
    %13 = vector.extract_strided_slice %7 {offsets = [16, 0], sizes = [16, 64], strides = [1, 1]} : vector<64x64xf32> to vector<16x64xf32>
    %14 = arith.truncf %13 : vector<16x64xf32> to vector<16x64xbf16>
    %c1 = arith.constant 1 : index
    %c0_11 = arith.constant 0 : index
    %c0_12 = arith.constant 0 : index
    %15 = vector.load %arg5[%c1, %c0_11, %c0_12] : memref<4x64x256xbf16, #tpu.memory_space<vmem>>, vector<1x64x256xbf16>
    %16 = vector.shape_cast %15 : vector<1x64x256xbf16> to vector<64x256xbf16>
    %cst_13 = arith.constant dense<0.000000e+00> : vector<16x256xf32>
    %17 = tpu.matmul %14, %16, %cst_13 {dimension_numbers = #tpu.dot_dimension_numbers<[1], [0], [0], [1], [0, 0, 1, 1], [], []>} : vector<16x64xbf16>, vector<64x256xbf16>, vector<16x256xf32> -> vector<16x256xf32>
    %18 = arith.addf %12, %17 : vector<16x256xf32>
    %19 = vector.extract_strided_slice %7 {offsets = [32, 0], sizes = [16, 64], strides = [1, 1]} : vector<64x64xf32> to vector<16x64xf32>
    %20 = arith.truncf %19 : vector<16x64xf32> to vector<16x64xbf16>
    %c2 = arith.constant 2 : index
    %c0_14 = arith.constant 0 : index
    %c0_15 = arith.constant 0 : index
    %21 = vector.load %arg5[%c2, %c0_14, %c0_15] : memref<4x64x256xbf16, #tpu.memory_space<vmem>>, vector<1x64x256xbf16>
    %22 = vector.shape_cast %21 : vector<1x64x256xbf16> to vector<64x256xbf16>
    %cst_16 = arith.constant dense<0.000000e+00> : vector<16x256xf32>
    %23 = tpu.matmul %20, %22, %cst_16 {dimension_numbers = #tpu.dot_dimension_numbers<[1], [0], [0], [1], [0, 0, 1, 1], [], []>} : vector<16x64xbf16>, vector<64x256xbf16>, vector<16x256xf32> -> vector<16x256xf32>
    %24 = arith.addf %18, %23 : vector<16x256xf32>
    %25 = vector.extract_strided_slice %7 {offsets = [48, 0], sizes = [16, 64], strides = [1, 1]} : vector<64x64xf32> to vector<16x64xf32>
    %26 = arith.truncf %25 : vector<16x64xf32> to vector<16x64xbf16>
    %c3 = arith.constant 3 : index
    %c0_17 = arith.constant 0 : index
    %c0_18 = arith.constant 0 : index
    %27 = vector.load %arg5[%c3, %c0_17, %c0_18] : memref<4x64x256xbf16, #tpu.memory_space<vmem>>, vector<1x64x256xbf16>
    %28 = vector.shape_cast %27 : vector<1x64x256xbf16> to vector<64x256xbf16>
    %cst_19 = arith.constant dense<0.000000e+00> : vector<16x256xf32>
    %29 = tpu.matmul %26, %28, %cst_19 {dimension_numbers = #tpu.dot_dimension_numbers<[1], [0], [0], [1], [0, 0, 1, 1], [], []>} : vector<16x64xbf16>, vector<64x256xbf16>, vector<16x256xf32> -> vector<16x256xf32>
    %30 = arith.addf %24, %29 : vector<16x256xf32>
    %c0_20 = arith.constant 0 : index
    %c0_21 = arith.constant 0 : index
    %31 = vector.load %arg4[%c0_20, %c0_21] : memref<16x1xf32, #tpu.memory_space<vmem>>, vector<16x1xf32>
    %32 = vector.broadcast %31 : vector<16x1xf32> to vector<16x256xf32>
    %33 = arith.addf %30, %32 : vector<16x256xf32>
    %cst_22 = arith.constant dense<0.000000e+00> : vector<32xf32>
    %34 = vector.multi_reduction <add>, %1, %cst_22 [1] : vector<32x256xf32> to vector<32xf32>
    %35 = vector.shape_cast %34 : vector<32xf32> to vector<32x1xf32>
    %cst_23 = arith.constant 2.560000e+02 : f32
    %36 = vector.broadcast %cst_23 : f32 to vector<32x1xf32>
    %37 = arith.divf %35, %36 : vector<32x1xf32>
    %cst_24 = arith.constant dense<0xFF800000> : vector<32xf32>
    %38 = vector.multi_reduction <maximumf>, %1, %cst_24 [1] : vector<32x256xf32> to vector<32xf32>
    %39 = vector.shape_cast %38 : vector<32xf32> to vector<32x1xf32>
    %40 = tpu.concatenate %37, %39 in 1 : vector<32x1xf32>, vector<32x1xf32> -> vector<32x2xf32>
    %c0_25 = arith.constant 0 : index
    %c0_26 = arith.constant 0 : index
    %41 = vector.load %arg6[%c0_25, %c0_26] : memref<2x32xf32, #tpu.memory_space<vmem>>, vector<2x32xf32>
    %cst_27 = arith.constant dense<0.000000e+00> : vector<2x2xf32>
    %42 = tpu.matmul %41, %40, %cst_27 {dimension_numbers = #tpu.dot_dimension_numbers<[1], [0], [0], [1], [0, 0, 1, 1], [], []>} : vector<2x32xf32>, vector<32x2xf32>, vector<2x2xf32> -> vector<2x2xf32>
    %cst_28 = arith.constant 0.000000e+00 : f32
    %43 = vector.broadcast %cst_28 : f32 to vector<2x2xf32>
    %44 = arith.maximumf %42, %43 : vector<2x2xf32>
    %c0_29 = arith.constant 0 : index
    %c0_30 = arith.constant 0 : index
    %45 = vector.load %arg7[%c0_29, %c0_30] : memref<32x2xf32, #tpu.memory_space<vmem>>, vector<32x2xf32>
    %cst_31 = arith.constant dense<0.000000e+00> : vector<32x2xf32>
    %46 = tpu.matmul %45, %44, %cst_31 {dimension_numbers = #tpu.dot_dimension_numbers<[1], [0], [0], [1], [0, 0, 1, 1], [], []>} : vector<32x2xf32>, vector<2x2xf32>, vector<32x2xf32> -> vector<32x2xf32>
    %47 = vector.extract_strided_slice %46 {offsets = [0, 0], sizes = [32, 1], strides = [1, 1]} : vector<32x2xf32> to vector<32x1xf32>
    %48 = vector.extract_strided_slice %46 {offsets = [0, 1], sizes = [32, 1], strides = [1, 1]} : vector<32x2xf32> to vector<32x1xf32>
    %49 = arith.addf %47, %48 : vector<32x1xf32>
    %cst_32 = arith.constant 0.000000e+00 : f32
    %50 = vector.broadcast %cst_32 : f32 to vector<32x1xf32>
    %51 = arith.subf %50, %49 : vector<32x1xf32>
    %52 = math.exp %51 : vector<32x1xf32>
    %cst_33 = arith.constant 1.000000e+00 : f32
    %53 = vector.broadcast %cst_33 : f32 to vector<32x1xf32>
    %54 = arith.addf %53, %52 : vector<32x1xf32>
    %55 = tpu.reciprocal %54 {approx = true} : vector<32x1xf32> -> vector<32x1xf32>
    %56 = vector.broadcast %55 : vector<32x1xf32> to vector<32x256xf32>
    %57 = arith.mulf %1, %56 : vector<32x256xf32>
    %cst_34 = arith.constant dense<0.000000e+00> : vector<256xf32>
    %58 = vector.multi_reduction <add>, %57, %cst_34 [0] : vector<32x256xf32> to vector<256xf32>
    %59 = vector.shape_cast %58 : vector<256xf32> to vector<1x256xf32>
    %cst_35 = arith.constant 3.200000e+01 : f32
    %60 = vector.broadcast %cst_35 : f32 to vector<1x256xf32>
    %61 = arith.divf %59, %60 : vector<1x256xf32>
    %cst_36 = arith.constant dense<0xFF800000> : vector<256xf32>
    %62 = vector.multi_reduction <maximumf>, %57, %cst_36 [0] : vector<32x256xf32> to vector<256xf32>
    %63 = vector.shape_cast %62 : vector<256xf32> to vector<1x256xf32>
    %64 = tpu.concatenate %61, %63 in 1 : vector<1x256xf32>, vector<1x256xf32> -> vector<1x512xf32>
    %65 = arith.truncf %64 : vector<1x512xf32> to vector<1x512xbf16>
    %c0_37 = arith.constant 0 : index
    %c0_38 = arith.constant 0 : index
    %66 = vector.load %arg8[%c0_37, %c0_38] : memref<512x256xbf16, #tpu.memory_space<vmem>>, vector<512x256xbf16>
    %cst_39 = arith.constant dense<0.000000e+00> : vector<1x256xf32>
    %67 = tpu.matmul %65, %66, %cst_39 {dimension_numbers = #tpu.dot_dimension_numbers<[1], [0], [0], [1], [0, 0, 1, 1], [], []>} : vector<1x512xbf16>, vector<512x256xbf16>, vector<1x256xf32> -> vector<1x256xf32>
    %cst_40 = arith.constant 0.000000e+00 : f32
    %68 = vector.broadcast %cst_40 : f32 to vector<1x256xf32>
    %69 = arith.subf %68, %67 : vector<1x256xf32>
    %70 = math.exp %69 : vector<1x256xf32>
    %cst_41 = arith.constant 1.000000e+00 : f32
    %71 = vector.broadcast %cst_41 : f32 to vector<1x256xf32>
    %72 = arith.addf %71, %70 : vector<1x256xf32>
    %73 = tpu.reciprocal %72 {approx = true} : vector<1x256xf32> -> vector<1x256xf32>
    %74 = vector.broadcast %73 : vector<1x256xf32> to vector<32x256xf32>
    %75 = arith.mulf %57, %74 : vector<32x256xf32>
    %76 = arith.truncf %33 : vector<16x256xf32> to vector<16x256xbf16>
    %77 = arith.truncf %75 : vector<32x256xf32> to vector<32x256xbf16>
    %78 = tpu.concatenate %76, %77 in 0 : vector<16x256xbf16>, vector<32x256xbf16> -> vector<48x256xbf16>
    %c0_42 = arith.constant 0 : index
    %c0_43 = arith.constant 0 : index
    %79 = vector.load %arg10[%c0_42, %c0_43] : memref<144x48xbf16, #tpu.memory_space<vmem>>, vector<144x48xbf16>
    %cst_44 = arith.constant dense<0.000000e+00> : vector<144x256xf32>
    %80 = tpu.matmul %79, %78, %cst_44 {dimension_numbers = #tpu.dot_dimension_numbers<[1], [0], [0], [1], [0, 0, 1, 1], [], []>} : vector<144x48xbf16>, vector<48x256xbf16>, vector<144x256xf32> -> vector<144x256xf32>
    %81 = vector.extract_strided_slice %80 {offsets = [0, 0], sizes = [16, 256], strides = [1, 1]} : vector<144x256xf32> to vector<16x256xf32>
    %82 = arith.truncf %81 : vector<16x256xf32> to vector<16x256xbf16>
    %c0_45 = arith.constant 0 : index
    %c0_46 = arith.constant 0 : index
    %c0_47 = arith.constant 0 : index
    %83 = vector.load %arg9[%c0_45, %c0_46, %c0_47] : memref<9x256x256xbf16, #tpu.memory_space<vmem>>, vector<1x256x256xbf16>
    %84 = vector.shape_cast %83 : vector<1x256x256xbf16> to vector<256x256xbf16>
    %cst_48 = arith.constant dense<0.000000e+00> : vector<16x256xf32>
    %85 = tpu.matmul %82, %84, %cst_48 {dimension_numbers = #tpu.dot_dimension_numbers<[1], [0], [0], [1], [0, 0, 1, 1], [], []>} : vector<16x256xbf16>, vector<256x256xbf16>, vector<16x256xf32> -> vector<16x256xf32>
    %86 = vector.extract_strided_slice %80 {offsets = [16, 0], sizes = [16, 256], strides = [1, 1]} : vector<144x256xf32> to vector<16x256xf32>
    %87 = arith.truncf %86 : vector<16x256xf32> to vector<16x256xbf16>
    %c1_49 = arith.constant 1 : index
    %c0_50 = arith.constant 0 : index
    %c0_51 = arith.constant 0 : index
    %88 = vector.load %arg9[%c1_49, %c0_50, %c0_51] : memref<9x256x256xbf16, #tpu.memory_space<vmem>>, vector<1x256x256xbf16>
    %89 = vector.shape_cast %88 : vector<1x256x256xbf16> to vector<256x256xbf16>
    %cst_52 = arith.constant dense<0.000000e+00> : vector<16x256xf32>
    %90 = tpu.matmul %87, %89, %cst_52 {dimension_numbers = #tpu.dot_dimension_numbers<[1], [0], [0], [1], [0, 0, 1, 1], [], []>} : vector<16x256xbf16>, vector<256x256xbf16>, vector<16x256xf32> -> vector<16x256xf32>
    %91 = arith.addf %85, %90 : vector<16x256xf32>
    %92 = vector.extract_strided_slice %80 {offsets = [32, 0], sizes = [16, 256], strides = [1, 1]} : vector<144x256xf32> to vector<16x256xf32>
    %93 = arith.truncf %92 : vector<16x256xf32> to vector<16x256xbf16>
    %c2_53 = arith.constant 2 : index
    %c0_54 = arith.constant 0 : index
    %c0_55 = arith.constant 0 : index
    %94 = vector.load %arg9[%c2_53, %c0_54, %c0_55] : memref<9x256x256xbf16, #tpu.memory_space<vmem>>, vector<1x256x256xbf16>
    %95 = vector.shape_cast %94 : vector<1x256x256xbf16> to vector<256x256xbf16>
    %cst_56 = arith.constant dense<0.000000e+00> : vector<16x256xf32>
    %96 = tpu.matmul %93, %95, %cst_56 {dimension_numbers = #tpu.dot_dimension_numbers<[1], [0], [0], [1], [0, 0, 1, 1], [], []>} : vector<16x256xbf16>, vector<256x256xbf16>, vector<16x256xf32> -> vector<16x256xf32>
    %97 = arith.addf %91, %96 : vector<16x256xf32>
    %98 = vector.extract_strided_slice %80 {offsets = [48, 0], sizes = [16, 256], strides = [1, 1]} : vector<144x256xf32> to vector<16x256xf32>
    %99 = arith.truncf %98 : vector<16x256xf32> to vector<16x256xbf16>
    %c3_57 = arith.constant 3 : index
    %c0_58 = arith.constant 0 : index
    %c0_59 = arith.constant 0 : index
    %100 = vector.load %arg9[%c3_57, %c0_58, %c0_59] : memref<9x256x256xbf16, #tpu.memory_space<vmem>>, vector<1x256x256xbf16>
    %101 = vector.shape_cast %100 : vector<1x256x256xbf16> to vector<256x256xbf16>
    %cst_60 = arith.constant dense<0.000000e+00> : vector<16x256xf32>
    %102 = tpu.matmul %99, %101, %cst_60 {dimension_numbers = #tpu.dot_dimension_numbers<[1], [0], [0], [1], [0, 0, 1, 1], [], []>} : vector<16x256xbf16>, vector<256x256xbf16>, vector<16x256xf32> -> vector<16x256xf32>
    %103 = arith.addf %97, %102 : vector<16x256xf32>
    %104 = vector.extract_strided_slice %80 {offsets = [64, 0], sizes = [16, 256], strides = [1, 1]} : vector<144x256xf32> to vector<16x256xf32>
    %105 = arith.truncf %104 : vector<16x256xf32> to vector<16x256xbf16>
    %c4 = arith.constant 4 : index
    %c0_61 = arith.constant 0 : index
    %c0_62 = arith.constant 0 : index
    %106 = vector.load %arg9[%c4, %c0_61, %c0_62] : memref<9x256x256xbf16, #tpu.memory_space<vmem>>, vector<1x256x256xbf16>
    %107 = vector.shape_cast %106 : vector<1x256x256xbf16> to vector<256x256xbf16>
    %cst_63 = arith.constant dense<0.000000e+00> : vector<16x256xf32>
    %108 = tpu.matmul %105, %107, %cst_63 {dimension_numbers = #tpu.dot_dimension_numbers<[1], [0], [0], [1], [0, 0, 1, 1], [], []>} : vector<16x256xbf16>, vector<256x256xbf16>, vector<16x256xf32> -> vector<16x256xf32>
    %109 = arith.addf %103, %108 : vector<16x256xf32>
    %110 = vector.extract_strided_slice %80 {offsets = [80, 0], sizes = [16, 256], strides = [1, 1]} : vector<144x256xf32> to vector<16x256xf32>
    %111 = arith.truncf %110 : vector<16x256xf32> to vector<16x256xbf16>
    %c5 = arith.constant 5 : index
    %c0_64 = arith.constant 0 : index
    %c0_65 = arith.constant 0 : index
    %112 = vector.load %arg9[%c5, %c0_64, %c0_65] : memref<9x256x256xbf16, #tpu.memory_space<vmem>>, vector<1x256x256xbf16>
    %113 = vector.shape_cast %112 : vector<1x256x256xbf16> to vector<256x256xbf16>
    %cst_66 = arith.constant dense<0.000000e+00> : vector<16x256xf32>
    %114 = tpu.matmul %111, %113, %cst_66 {dimension_numbers = #tpu.dot_dimension_numbers<[1], [0], [0], [1], [0, 0, 1, 1], [], []>} : vector<16x256xbf16>, vector<256x256xbf16>, vector<16x256xf32> -> vector<16x256xf32>
    %115 = arith.addf %109, %114 : vector<16x256xf32>
    %116 = vector.extract_strided_slice %80 {offsets = [96, 0], sizes = [16, 256], strides = [1, 1]} : vector<144x256xf32> to vector<16x256xf32>
    %117 = arith.truncf %116 : vector<16x256xf32> to vector<16x256xbf16>
    %c6 = arith.constant 6 : index
    %c0_67 = arith.constant 0 : index
    %c0_68 = arith.constant 0 : index
    %118 = vector.load %arg9[%c6, %c0_67, %c0_68] : memref<9x256x256xbf16, #tpu.memory_space<vmem>>, vector<1x256x256xbf16>
    %119 = vector.shape_cast %118 : vector<1x256x256xbf16> to vector<256x256xbf16>
    %cst_69 = arith.constant dense<0.000000e+00> : vector<16x256xf32>
    %120 = tpu.matmul %117, %119, %cst_69 {dimension_numbers = #tpu.dot_dimension_numbers<[1], [0], [0], [1], [0, 0, 1, 1], [], []>} : vector<16x256xbf16>, vector<256x256xbf16>, vector<16x256xf32> -> vector<16x256xf32>
    %121 = arith.addf %115, %120 : vector<16x256xf32>
    %122 = vector.extract_strided_slice %80 {offsets = [112, 0], sizes = [16, 256], strides = [1, 1]} : vector<144x256xf32> to vector<16x256xf32>
    %123 = arith.truncf %122 : vector<16x256xf32> to vector<16x256xbf16>
    %c7 = arith.constant 7 : index
    %c0_70 = arith.constant 0 : index
    %c0_71 = arith.constant 0 : index
    %124 = vector.load %arg9[%c7, %c0_70, %c0_71] : memref<9x256x256xbf16, #tpu.memory_space<vmem>>, vector<1x256x256xbf16>
    %125 = vector.shape_cast %124 : vector<1x256x256xbf16> to vector<256x256xbf16>
    %cst_72 = arith.constant dense<0.000000e+00> : vector<16x256xf32>
    %126 = tpu.matmul %123, %125, %cst_72 {dimension_numbers = #tpu.dot_dimension_numbers<[1], [0], [0], [1], [0, 0, 1, 1], [], []>} : vector<16x256xbf16>, vector<256x256xbf16>, vector<16x256xf32> -> vector<16x256xf32>
    %127 = arith.addf %121, %126 : vector<16x256xf32>
    %128 = vector.extract_strided_slice %80 {offsets = [128, 0], sizes = [16, 256], strides = [1, 1]} : vector<144x256xf32> to vector<16x256xf32>
    %129 = arith.truncf %128 : vector<16x256xf32> to vector<16x256xbf16>
    %c8 = arith.constant 8 : index
    %c0_73 = arith.constant 0 : index
    %c0_74 = arith.constant 0 : index
    %130 = vector.load %arg9[%c8, %c0_73, %c0_74] : memref<9x256x256xbf16, #tpu.memory_space<vmem>>, vector<1x256x256xbf16>
    %131 = vector.shape_cast %130 : vector<1x256x256xbf16> to vector<256x256xbf16>
    %cst_75 = arith.constant dense<0.000000e+00> : vector<16x256xf32>
    %132 = tpu.matmul %129, %131, %cst_75 {dimension_numbers = #tpu.dot_dimension_numbers<[1], [0], [0], [1], [0, 0, 1, 1], [], []>} : vector<16x256xbf16>, vector<256x256xbf16>, vector<16x256xf32> -> vector<16x256xf32>
    %133 = arith.addf %127, %132 : vector<16x256xf32>
    %c0_76 = arith.constant 0 : index
    %c0_77 = arith.constant 0 : index
    %134 = vector.load %arg11[%c0_76, %c0_77] : memref<16x1xf32, #tpu.memory_space<vmem>>, vector<16x1xf32>
    %135 = vector.broadcast %134 : vector<16x1xf32> to vector<16x256xf32>
    %136 = arith.mulf %133, %135 : vector<16x256xf32>
    %c0_78 = arith.constant 0 : index
    %c0_79 = arith.constant 0 : index
    %137 = vector.load %arg12[%c0_78, %c0_79] : memref<16x1xf32, #tpu.memory_space<vmem>>, vector<16x1xf32>
    %138 = vector.broadcast %137 : vector<16x1xf32> to vector<16x256xf32>
    %139 = arith.addf %136, %138 : vector<16x256xf32>
    %cst_80 = arith.constant 0.000000e+00 : f32
    %140 = vector.broadcast %cst_80 : f32 to vector<16x256xf32>
    %141 = arith.maximumf %139, %140 : vector<16x256xf32>
    %c0_81 = arith.constant 0 : index
    %c0_82 = arith.constant 0 : index
    %142 = vector.load %arg13[%c0_81, %c0_82] : memref<144x16xbf16, #tpu.memory_space<vmem>>, vector<144x16xbf16>
    %143 = arith.truncf %141 : vector<16x256xf32> to vector<16x256xbf16>
    %cst_83 = arith.constant dense<0.000000e+00> : vector<144x256xf32>
    %144 = tpu.matmul %142, %143, %cst_83 {dimension_numbers = #tpu.dot_dimension_numbers<[1], [0], [0], [1], [0, 0, 1, 1], [], []>} : vector<144x16xbf16>, vector<16x256xbf16>, vector<144x256xf32> -> vector<144x256xf32>
    %145 = vector.extract_strided_slice %144 {offsets = [0, 0], sizes = [16, 256], strides = [1, 1]} : vector<144x256xf32> to vector<16x256xf32>
    %146 = arith.truncf %145 : vector<16x256xf32> to vector<16x256xbf16>
    %c0_84 = arith.constant 0 : index
    %c0_85 = arith.constant 0 : index
    %c0_86 = arith.constant 0 : index
    %147 = vector.load %arg9[%c0_84, %c0_85, %c0_86] : memref<9x256x256xbf16, #tpu.memory_space<vmem>>, vector<1x256x256xbf16>
    %148 = vector.shape_cast %147 : vector<1x256x256xbf16> to vector<256x256xbf16>
    %cst_87 = arith.constant dense<0.000000e+00> : vector<16x256xf32>
    %149 = tpu.matmul %146, %148, %cst_87 {dimension_numbers = #tpu.dot_dimension_numbers<[1], [0], [0], [1], [0, 0, 1, 1], [], []>} : vector<16x256xbf16>, vector<256x256xbf16>, vector<16x256xf32> -> vector<16x256xf32>
    %150 = vector.extract_strided_slice %144 {offsets = [16, 0], sizes = [16, 256], strides = [1, 1]} : vector<144x256xf32> to vector<16x256xf32>
    %151 = arith.truncf %150 : vector<16x256xf32> to vector<16x256xbf16>
    %c1_88 = arith.constant 1 : index
    %c0_89 = arith.constant 0 : index
    %c0_90 = arith.constant 0 : index
    %152 = vector.load %arg9[%c1_88, %c0_89, %c0_90] : memref<9x256x256xbf16, #tpu.memory_space<vmem>>, vector<1x256x256xbf16>
    %153 = vector.shape_cast %152 : vector<1x256x256xbf16> to vector<256x256xbf16>
    %cst_91 = arith.constant dense<0.000000e+00> : vector<16x256xf32>
    %154 = tpu.matmul %151, %153, %cst_91 {dimension_numbers = #tpu.dot_dimension_numbers<[1], [0], [0], [1], [0, 0, 1, 1], [], []>} : vector<16x256xbf16>, vector<256x256xbf16>, vector<16x256xf32> -> vector<16x256xf32>
    %155 = arith.addf %149, %154 : vector<16x256xf32>
    %156 = vector.extract_strided_slice %144 {offsets = [32, 0], sizes = [16, 256], strides = [1, 1]} : vector<144x256xf32> to vector<16x256xf32>
    %157 = arith.truncf %156 : vector<16x256xf32> to vector<16x256xbf16>
    %c2_92 = arith.constant 2 : index
    %c0_93 = arith.constant 0 : index
    %c0_94 = arith.constant 0 : index
    %158 = vector.load %arg9[%c2_92, %c0_93, %c0_94] : memref<9x256x256xbf16, #tpu.memory_space<vmem>>, vector<1x256x256xbf16>
    %159 = vector.shape_cast %158 : vector<1x256x256xbf16> to vector<256x256xbf16>
    %cst_95 = arith.constant dense<0.000000e+00> : vector<16x256xf32>
    %160 = tpu.matmul %157, %159, %cst_95 {dimension_numbers = #tpu.dot_dimension_numbers<[1], [0], [0], [1], [0, 0, 1, 1], [], []>} : vector<16x256xbf16>, vector<256x256xbf16>, vector<16x256xf32> -> vector<16x256xf32>
    %161 = arith.addf %155, %160 : vector<16x256xf32>
    %162 = vector.extract_strided_slice %144 {offsets = [48, 0], sizes = [16, 256], strides = [1, 1]} : vector<144x256xf32> to vector<16x256xf32>
    %163 = arith.truncf %162 : vector<16x256xf32> to vector<16x256xbf16>
    %c3_96 = arith.constant 3 : index
    %c0_97 = arith.constant 0 : index
    %c0_98 = arith.constant 0 : index
    %164 = vector.load %arg9[%c3_96, %c0_97, %c0_98] : memref<9x256x256xbf16, #tpu.memory_space<vmem>>, vector<1x256x256xbf16>
    %165 = vector.shape_cast %164 : vector<1x256x256xbf16> to vector<256x256xbf16>
    %cst_99 = arith.constant dense<0.000000e+00> : vector<16x256xf32>
    %166 = tpu.matmul %163, %165, %cst_99 {dimension_numbers = #tpu.dot_dimension_numbers<[1], [0], [0], [1], [0, 0, 1, 1], [], []>} : vector<16x256xbf16>, vector<256x256xbf16>, vector<16x256xf32> -> vector<16x256xf32>
    %167 = arith.addf %161, %166 : vector<16x256xf32>
    %168 = vector.extract_strided_slice %144 {offsets = [64, 0], sizes = [16, 256], strides = [1, 1]} : vector<144x256xf32> to vector<16x256xf32>
    %169 = arith.truncf %168 : vector<16x256xf32> to vector<16x256xbf16>
    %c4_100 = arith.constant 4 : index
    %c0_101 = arith.constant 0 : index
    %c0_102 = arith.constant 0 : index
    %170 = vector.load %arg9[%c4_100, %c0_101, %c0_102] : memref<9x256x256xbf16, #tpu.memory_space<vmem>>, vector<1x256x256xbf16>
    %171 = vector.shape_cast %170 : vector<1x256x256xbf16> to vector<256x256xbf16>
    %cst_103 = arith.constant dense<0.000000e+00> : vector<16x256xf32>
    %172 = tpu.matmul %169, %171, %cst_103 {dimension_numbers = #tpu.dot_dimension_numbers<[1], [0], [0], [1], [0, 0, 1, 1], [], []>} : vector<16x256xbf16>, vector<256x256xbf16>, vector<16x256xf32> -> vector<16x256xf32>
    %173 = arith.addf %167, %172 : vector<16x256xf32>
    %174 = vector.extract_strided_slice %144 {offsets = [80, 0], sizes = [16, 256], strides = [1, 1]} : vector<144x256xf32> to vector<16x256xf32>
    %175 = arith.truncf %174 : vector<16x256xf32> to vector<16x256xbf16>
    %c5_104 = arith.constant 5 : index
    %c0_105 = arith.constant 0 : index
    %c0_106 = arith.constant 0 : index
    %176 = vector.load %arg9[%c5_104, %c0_105, %c0_106] : memref<9x256x256xbf16, #tpu.memory_space<vmem>>, vector<1x256x256xbf16>
    %177 = vector.shape_cast %176 : vector<1x256x256xbf16> to vector<256x256xbf16>
    %cst_107 = arith.constant dense<0.000000e+00> : vector<16x256xf32>
    %178 = tpu.matmul %175, %177, %cst_107 {dimension_numbers = #tpu.dot_dimension_numbers<[1], [0], [0], [1], [0, 0, 1, 1], [], []>} : vector<16x256xbf16>, vector<256x256xbf16>, vector<16x256xf32> -> vector<16x256xf32>
    %179 = arith.addf %173, %178 : vector<16x256xf32>
    %180 = vector.extract_strided_slice %144 {offsets = [96, 0], sizes = [16, 256], strides = [1, 1]} : vector<144x256xf32> to vector<16x256xf32>
    %181 = arith.truncf %180 : vector<16x256xf32> to vector<16x256xbf16>
    %c6_108 = arith.constant 6 : index
    %c0_109 = arith.constant 0 : index
    %c0_110 = arith.constant 0 : index
    %182 = vector.load %arg9[%c6_108, %c0_109, %c0_110] : memref<9x256x256xbf16, #tpu.memory_space<vmem>>, vector<1x256x256xbf16>
    %183 = vector.shape_cast %182 : vector<1x256x256xbf16> to vector<256x256xbf16>
    %cst_111 = arith.constant dense<0.000000e+00> : vector<16x256xf32>
    %184 = tpu.matmul %181, %183, %cst_111 {dimension_numbers = #tpu.dot_dimension_numbers<[1], [0], [0], [1], [0, 0, 1, 1], [], []>} : vector<16x256xbf16>, vector<256x256xbf16>, vector<16x256xf32> -> vector<16x256xf32>
    %185 = arith.addf %179, %184 : vector<16x256xf32>
    %186 = vector.extract_strided_slice %144 {offsets = [112, 0], sizes = [16, 256], strides = [1, 1]} : vector<144x256xf32> to vector<16x256xf32>
    %187 = arith.truncf %186 : vector<16x256xf32> to vector<16x256xbf16>
    %c7_112 = arith.constant 7 : index
    %c0_113 = arith.constant 0 : index
    %c0_114 = arith.constant 0 : index
    %188 = vector.load %arg9[%c7_112, %c0_113, %c0_114] : memref<9x256x256xbf16, #tpu.memory_space<vmem>>, vector<1x256x256xbf16>
    %189 = vector.shape_cast %188 : vector<1x256x256xbf16> to vector<256x256xbf16>
    %cst_115 = arith.constant dense<0.000000e+00> : vector<16x256xf32>
    %190 = tpu.matmul %187, %189, %cst_115 {dimension_numbers = #tpu.dot_dimension_numbers<[1], [0], [0], [1], [0, 0, 1, 1], [], []>} : vector<16x256xbf16>, vector<256x256xbf16>, vector<16x256xf32> -> vector<16x256xf32>
    %191 = arith.addf %185, %190 : vector<16x256xf32>
    %192 = vector.extract_strided_slice %144 {offsets = [128, 0], sizes = [16, 256], strides = [1, 1]} : vector<144x256xf32> to vector<16x256xf32>
    %193 = arith.truncf %192 : vector<16x256xf32> to vector<16x256xbf16>
    %c8_116 = arith.constant 8 : index
    %c0_117 = arith.constant 0 : index
    %c0_118 = arith.constant 0 : index
    %194 = vector.load %arg9[%c8_116, %c0_117, %c0_118] : memref<9x256x256xbf16, #tpu.memory_space<vmem>>, vector<1x256x256xbf16>
    %195 = vector.shape_cast %194 : vector<1x256x256xbf16> to vector<256x256xbf16>
    %cst_119 = arith.constant dense<0.000000e+00> : vector<16x256xf32>
    %196 = tpu.matmul %193, %195, %cst_119 {dimension_numbers = #tpu.dot_dimension_numbers<[1], [0], [0], [1], [0, 0, 1, 1], [], []>} : vector<16x256xbf16>, vector<256x256xbf16>, vector<16x256xf32> -> vector<16x256xf32>
    %197 = arith.addf %191, %196 : vector<16x256xf32>
    %c0_120 = arith.constant 0 : index
    %c0_121 = arith.constant 0 : index
    %198 = vector.load %arg14[%c0_120, %c0_121] : memref<16x1xf32, #tpu.memory_space<vmem>>, vector<16x1xf32>
    %199 = vector.broadcast %198 : vector<16x1xf32> to vector<16x256xf32>
    %200 = arith.mulf %197, %199 : vector<16x256xf32>
    %c0_122 = arith.constant 0 : index
    %c0_123 = arith.constant 0 : index
    %201 = vector.load %arg15[%c0_122, %c0_123] : memref<16x1xf32, #tpu.memory_space<vmem>>, vector<16x1xf32>
    %202 = vector.broadcast %201 : vector<16x1xf32> to vector<16x256xf32>
    %203 = arith.addf %200, %202 : vector<16x256xf32>
    %cst_124 = arith.constant 0.000000e+00 : f32
    %204 = vector.broadcast %cst_124 : f32 to vector<16x256xf32>
    %205 = arith.maximumf %203, %204 : vector<16x256xf32>
    %c0_125 = arith.constant 0 : index
    %c0_126 = arith.constant 0 : index
    %206 = vector.load %arg16[%c0_125, %c0_126] : memref<16x32xbf16, #tpu.memory_space<vmem>>, vector<16x32xbf16>
    %cst_127 = arith.constant dense<0.000000e+00> : vector<16x256xf32>
    %207 = tpu.matmul %206, %2, %cst_127 {dimension_numbers = #tpu.dot_dimension_numbers<[1], [0], [0], [1], [0, 0, 1, 1], [], []>} : vector<16x32xbf16>, vector<32x256xbf16>, vector<16x256xf32> -> vector<16x256xf32>
    %208 = arith.addf %205, %207 : vector<16x256xf32>
    %cst_128 = arith.constant 0.000000e+00 : f32
    %209 = vector.broadcast %cst_128 : f32 to vector<16x256xf32>
    %210 = arith.maximumf %208, %209 : vector<16x256xf32>
    %c0_129 = arith.constant 0 : index
    %c0_130 = arith.constant 0 : index
    %c0_131 = arith.constant 0 : index
    %211 = vector.load %arg17[%c0_129, %c0_130, %c0_131] : memref<1x16x256xf32, #tpu.memory_space<vmem>>, vector<1x16x256xf32>
    %212 = vector.shape_cast %211 : vector<1x16x256xf32> to vector<16x256xf32>
    %213 = vector.shape_cast %210 : vector<16x256xf32> to vector<1x16x256xf32>
    tpu.vector_store %arg17[%c0_129, %c0_130, %c0_131], %213 {strides = array<i32>} : memref<1x16x256xf32, #tpu.memory_space<vmem>>, vector<1x16x256xf32>,
    return
  }
  func.func @transform_0(%arg0: i32) -> (i32, i32, i32) {
    %c0_i32 = arith.constant 0 : i32
    %c0_i32_0 = arith.constant 0 : i32
    %c0_i32_1 = arith.constant 0 : i32
    return %arg0, %c0_i32, %c0_i32_0 : i32, i32, i32
  }
  func.func @transform_1(%arg0: i32) -> (i32, i32, i32) {
    %c0_i32 = arith.constant 0 : i32
    %c0_i32_0 = arith.constant 0 : i32
    %c0_i32_1 = arith.constant 0 : i32
    return %arg0, %c0_i32, %c0_i32_0 : i32, i32, i32
  }
  func.func @transform_2(%arg0: i32) -> (i32, i32) {
    %c0_i32 = arith.constant 0 : i32
    %c0_i32_0 = arith.constant 0 : i32
    %c0_i32_1 = arith.constant 0 : i32
    return %c0_i32, %c0_i32_0 : i32, i32
  }
  func.func @transform_3(%arg0: i32) -> (i32, i32) {
    %c0_i32 = arith.constant 0 : i32
    %c0_i32_0 = arith.constant 0 : i32
    %c0_i32_1 = arith.constant 0 : i32
    return %c0_i32, %c0_i32_0 : i32, i32
  }
  func.func @transform_4(%arg0: i32) -> (i32, i32, i32) {
    %c0_i32 = arith.constant 0 : i32
    %c0_i32_0 = arith.constant 0 : i32
    %c0_i32_1 = arith.constant 0 : i32
    %c0_i32_2 = arith.constant 0 : i32
    return %c0_i32, %c0_i32_0, %c0_i32_1 : i32, i32, i32
  }
  func.func @transform_5(%arg0: i32) -> (i32, i32) {
    %c0_i32 = arith.constant 0 : i32
    %c0_i32_0 = arith.constant 0 : i32
    %c0_i32_1 = arith.constant 0 : i32
    return %c0_i32, %c0_i32_0 : i32, i32
  }
  func.func @transform_6(%arg0: i32) -> (i32, i32) {
    %c0_i32 = arith.constant 0 : i32
    %c0_i32_0 = arith.constant 0 : i32
    %c0_i32_1 = arith.constant 0 : i32
    return %c0_i32, %c0_i32_0 : i32, i32
  }
  func.func @transform_7(%arg0: i32) -> (i32, i32) {
    %c0_i32 = arith.constant 0 : i32
    %c0_i32_0 = arith.constant 0 : i32
    %c0_i32_1 = arith.constant 0 : i32
    return %c0_i32, %c0_i32_0 : i32, i32
  }
  func.func @transform_8(%arg0: i32) -> (i32, i32, i32) {
    %c0_i32 = arith.constant 0 : i32
    %c0_i32_0 = arith.constant 0 : i32
    %c0_i32_1 = arith.constant 0 : i32
    %c0_i32_2 = arith.constant 0 : i32
    return %c0_i32, %c0_i32_0, %c0_i32_1 : i32, i32, i32
  }
  func.func @transform_9(%arg0: i32) -> (i32, i32) {
    %c0_i32 = arith.constant 0 : i32
    %c0_i32_0 = arith.constant 0 : i32
    %c0_i32_1 = arith.constant 0 : i32
    return %c0_i32, %c0_i32_0 : i32, i32
  }
  func.func @transform_10(%arg0: i32) -> (i32, i32) {
    %c0_i32 = arith.constant 0 : i32
    %c0_i32_0 = arith.constant 0 : i32
    %c0_i32_1 = arith.constant 0 : i32
    return %c0_i32, %c0_i32_0 : i32, i32
  }
  func.func @transform_11(%arg0: i32) -> (i32, i32) {
    %c0_i32 = arith.constant 0 : i32
    %c0_i32_0 = arith.constant 0 : i32
    %c0_i32_1 = arith.constant 0 : i32
    return %c0_i32, %c0_i32_0 : i32, i32
  }
  func.func @transform_12(%arg0: i32) -> (i32, i32) {
    %c0_i32 = arith.constant 0 : i32
    %c0_i32_0 = arith.constant 0 : i32
    %c0_i32_1 = arith.constant 0 : i32
    return %c0_i32, %c0_i32_0 : i32, i32
  }
  func.func @transform_13(%arg0: i32) -> (i32, i32) {
    %c0_i32 = arith.constant 0 : i32
    %c0_i32_0 = arith.constant 0 : i32
    %c0_i32_1 = arith.constant 0 : i32
    return %c0_i32, %c0_i32_0 : i32, i32
  }
  func.func @transform_14(%arg0: i32) -> (i32, i32) {
    %c0_i32 = arith.constant 0 : i32
    %c0_i32_0 = arith.constant 0 : i32
    %c0_i32_1 = arith.constant 0 : i32
    return %c0_i32, %c0_i32_0 : i32, i32
  }
  func.func @transform_15(%arg0: i32) -> (i32, i32) {
    %c0_i32 = arith.constant 0 : i32
    %c0_i32_0 = arith.constant 0 : i32
    %c0_i32_1 = arith.constant 0 : i32
    return %c0_i32, %c0_i32_0 : i32, i32
  }
  func.func @transform_16(%arg0: i32) -> (i32, i32, i32) {
    %c0_i32 = arith.constant 0 : i32
    %c0_i32_0 = arith.constant 0 : i32
    %c0_i32_1 = arith.constant 0 : i32
    return %arg0, %c0_i32, %c0_i32_0 : i32, i32, i32
  }
}

</mosaic_0001>

<bundles_post_ra>
// kernel: decoder_block_forward.1
= control target key start
LH: loop header
LB: loop body
LE: loop exit
PB: predicated region body
PF: predicated region fallthrough
CT: control target
= control target key end

     0   :  { %s6925_s21 = smov 0   ;;  %s9440_s0 = inlined_call_operand.vmem [shape: f32[2,32,256], index: 0, kind: input, shape index: {}]   ;;  %s9441_s1 = inlined_call_operand.vmem [shape: f32[2,16,64], index: 1, kind: input, shape index: {}]   ;;  %s9442_s2 = inlined_call_operand.vmem [shape: bf16[64,16], index: 2, kind: input, shape index: {}]   ;;  %s9443_s3 = inlined_call_operand.vmem [shape: f32[16,1], index: 3, kind: input, shape index: {}]   ;;  %s9444_s4 = inlined_call_operand.vmem [shape: bf16[4,64,256], index: 4, kind: input, shape index: {}]   ;;  %s9445_s5 = inlined_call_operand.vmem [shape: f32[2,32], index: 5, kind: input, shape index: {}]   ;;  %s9446_s6 = inlined_call_operand.vmem [shape: f32[32,2], index: 6, kind: input, shape index: {}]   ;;  %s9447_s7 = inlined_call_operand.vmem [shape: bf16[512,256], index: 7, kind: input, shape index: {}]   ;;  %s9448_s8 = inlined_call_operand.vmem [shape: bf16[9,256,256], index: 8, kind: input, shape index: {}]   ;;  %s9449_s9 = inlined_call_operand.vmem [shape: bf16[144,48], index: 9, kind: input, shape index: {}]   ;;  %s9450_s10 = inlined_call_operand.vmem [shape: f32[16,1], index: 10, kind: input, shape index: {}]   ;;  %s9451_s11 = inlined_call_operand.vmem [shape: f32[16,1], index: 11, kind: input, shape index: {}]   ;;  %s9452_s12 = inlined_call_operand.vmem [shape: bf16[144,16], index: 12, kind: input, shape index: {}]   ;;  %s9453_s13 = inlined_call_operand.vmem [shape: f32[16,1], index: 13, kind: input, shape index: {}]   ;;  %s9454_s14 = inlined_call_operand.vmem [shape: f32[16,1], index: 14, kind: input, shape index: {}]   ;;  %s9455_s15 = inlined_call_operand.vmem [shape: bf16[16,32], index: 15, kind: input, shape index: {}]   ;;  %s9456_s16 = inlined_call_operand.vmem [shape: f32[2,16,256], index: 16, kind: output, shape index: {}]  }
   0x1   :  { %9461 = sst [smem:[#allocation4_spill]] %s9440_s0 }
   0x2 LB: > { %s5132_s22 = sadd.s32 4294967295, %s6834_s21   ;;  %p5136_p0 = scmp.ge.s32.totalorder %s6834_s21, 1  ;;  %s6834_s21 = sphi %s6925_s21, %s26_s21  }
   0x3   : > { %p472_p1 = scmp.lt.s32.totalorder %s6834_s21, 3 }
   0x5   : > { %p473_p2 = pnand %p5136_p0, %p472_p1 }
   0x7   : > { %476 = sbr.rel (%p473_p2) target bundleno = 2543 (0x9ef), region = 84 }
   0xc   : > { %p527_p3 = scmp.lt.s32.totalorder %s5132_s22, 1  ;;  %v5926_v0 = vld [vmem:[%s9442_s2] sm:$0xff]   ;;  %vm586_vm0 = vcmask 130048   ;;  %v5930_v1 = vld [vmem:[%s9444_s4 + $0x74] ss:$8 sps:$4 sm:$0xff]   ;;  %s9462_s0 = sld [smem:[#allocation4_spill]] }
   0xd   : > { %5885 = vmatprep.mubr.msk.bf16.mxu1 %vm586_vm0, %v5926_v0  ;;  %v5932_v2 = vld [vmem:[%s9444_s4 + $0x70] ss:$8 sps:$4 sm:$0xff]   ;;  %735 = vmatprep.subr.bf16.mxu0 %v5930_v1  ;;  %v5927_v10 = vld [vmem:[%s9442_s2 + $0x8] sm:$0xff]   ;;  %v5936_v21 = vld [vmem:[%s9444_s4 + $0x54] ss:$8 sps:$4 sm:$0xff]   ;;  %v9457_v36 = vmov 0  }
   0xe   : > { %s9469_s22 = smov (!%p527_p3, %s5132_s22), 1  ;;  %736 = vmatpush1.bf16.msra.mxu0 %v5932_v2  ;;  %v5928_v15 = vld [vmem:[%s9442_s2 + $0x10] sm:$0xff]   ;;  %v5933_v16 = vld [vmem:[%s9444_s4 + $0x64] ss:$8 sps:$4 sm:$0xff]   ;;  %v5935_v17 = vld [vmem:[%s9444_s4 + $0x60] ss:$8 sps:$4 sm:$0xff]   ;;  %759 = vmatprep.mubr.bf16.mxu0 %v9457_v36 }
   0xf   : > { %s5865_s25 = sshll.u32 %s9469_s22, 6  ;;  %s5866_s26 = sshll.u32 %s9469_s22, 4  ;;  %737 = vmatprep.subr.bf16.mxu0 %v5933_v16  ;;  %v5938_v23 = vld [vmem:[%s9444_s4 + $0x50] ss:$8 sps:$4 sm:$0xff]   ;;  %v5941_v29 = vld [vmem:[%s9444_s4 + $0xb4] ss:$8 sps:$4 sm:$0xff]   ;;  %5924 = vset.pattern.permute.xlu1 %v9457_v36 }
  0x10   : > { %s536_s20 = scalar_lea.vmem %s9441_s1, %s5866_s26  ;;  %v5929_v25 = vld [vmem:[%s9442_s2 + $0x18] sm:$0xff]   ;;  %v5942_v31 = vld [vmem:[%s9444_s4 + $0x44] ss:$8 sps:$4 sm:$0xff]   ;;  %v5944_v32 = vld [vmem:[%s9444_s4 + $0x40] ss:$8 sps:$4 sm:$0xff]   ;;  %5925 = vset.pattern.permute.xlu0 %v9457_v36  ;;  %v6837_v41 = vmov 0.0  }
  0x11   : > { %v555_v3 = vld [vmem:[%s536_s20] sm:$0xff]  ;;  %v556_v4 = vld [vmem:[%s536_s20 + $0x8] sm:$0xff]  ;;  %v5939_v30 = vld [vmem:[%s9444_s4 + $0xb0] ss:$8 sps:$4 sm:$0xff]   ;;  %vm723_vm1 = vcmask 523264   ;;  %vm1101_vm2 = vcmask 7168  }
  0x12   : > { %s6947_s17 = scalar_lea.vmem %s9462_s0, %s5865_s25  ;;  %v557_v6 = vpack.c.bf16 %v556_v4, %v555_v3  ;;  %738 = vmatpush1.bf16.msra.mxu0 %v5935_v17  ;;  %v5947_v33 = vld [vmem:[%s9444_s4 + $0xa4] ss:$8 sps:$4 sm:$0xff]   ;;  %v5945_v34 = vld [vmem:[%s9444_s4 + $0xa0] ss:$8 sps:$4 sm:$0xff]   ;;  %v5950_v35 = vld [vmem:[%s9444_s4 + $0x34] ss:$8 sps:$4 sm:$0xff]  }
  0x13   : > { %v549_v5 = vld [vmem:[%s6947_s17 + $0x30] sm:$0xff]  ;;  %v550_v7 = vld [vmem:[%s6947_s17 + $0x38] sm:$0xff]  ;;  %v547_v8 = vld [vmem:[%s6947_s17 + $0x20] sm:$0xff]  ;;  %739 = vmatprep.subr.bf16.mxu0 %v5936_v21  ;;  %vm6838_vm3 = vmmov 0   ;;  %vm1107_vm4 = vcmask 261120   ;;  %vm1186_vm5 = vcmask 15360  }
  0x14   : > { %v548_v9 = vld [vmem:[%s6947_s17 + $0x28] sm:$0xff]  ;;  %v1081_v11 = vadd.f32 %v550_v7, %v549_v5  ;;  %v1098_v12 = vmax.f32 %v549_v5, %v550_v7  ;;  %v545_v13 = vld [vmem:[%s6947_s17 + $0x10] sm:$0xff]  ;;  %v546_v14 = vld [vmem:[%s6947_s17 + $0x18] sm:$0xff]  ;;  %5883 = vmatprep.subr.bf16.mxu1 %v557_v6  ;;  %vm1199_vm6 = vcmask 1041408   ;;  %s6839_s29 = smov 127   ;;  %vm1960_vm7 = vcmask 392192  }
  0x15   : > { %5884 = vmatpush3.bf16.msra.mxu1 %v557_v6  ;;  %v1078_v18 = vadd.f32 %v548_v9, %v547_v8  ;;  %v543_v19 = vld [vmem:[%s6947_s17] sm:$0xff]  ;;  %v544_v20 = vld [vmem:[%s6947_s17 + $0x8] sm:$0xff]  ;;  %v1075_v22 = vadd.f32 %v546_v14, %v545_v13  ;;  %v1095_v24 = vmax.f32 %v547_v8, %v548_v9  ;;  %v1092_v27 = vmax.f32 %v545_v13, %v546_v14  ;;  %v5953_v37 = vld [vmem:[%s9444_s4 + $0x94] ss:$8 sps:$4 sm:$0xff]   ;;  %s5867_s18 = sshll.u32 %s9469_s22, 5 }
  0x16   : > { %1082 = vadd.xlane.f32.xlu0 %v1081_v11  ;;  %1099 = vmax.xlane.f32.xlu1 %v1098_v12  ;;  %v1072_v26 = vadd.f32 %v544_v20, %v543_v19  ;;  %v1089_v28 = vmax.f32 %v543_v19, %v544_v20  ;;  %v5951_v38 = vld [vmem:[%s9444_s4 + $0x90] ss:$8 sps:$4 sm:$0xff]   ;;  %v5959_v39 = vld [vmem:[%s9444_s4 + $0x84] ss:$8 sps:$4 sm:$0xff]   ;;  %v5957_v40 = vld [vmem:[%s9444_s4 + $0x80] ss:$8 sps:$4 sm:$0xff]   ;;  %s541_s23 = scalar_lea.vmem %s9456_s16, %s5867_s18 }
  0x17   : > { %740 = vmatpush1.bf16.msra.mxu0 %v5938_v23  ;;  %917 = vmatprep.subr.bf16.mxu1 %v5941_v29  ;;  %v5948_v47 = vld [vmem:[%s9444_s4 + $0x30] ss:$8 sps:$4 sm:$0xff]   ;;  %v5956_v50 = vld [vmem:[%s9444_s4 + $0x24] ss:$8 sps:$4 sm:$0xff]   ;;  %v5954_v54 = vld [vmem:[%s9444_s4 + $0x20] ss:$8 sps:$4 sm:$0xff]  }
  0x18   : > { %5886 = vmatmul.mubr.msk.bf16.vlgmr.msra.gmra.mxu1 %vm586_vm0, %v5927_v10  ;;  %741 = vmatprep.subr.bf16.mxu0 %v5942_v31  ;;  %v5962_v55 = vld [vmem:[%s9444_s4 + $0x14] ss:$8 sps:$4 sm:$0xff]   ;;  %v5960_v59 = vld [vmem:[%s9444_s4 + $0x10] ss:$8 sps:$4 sm:$0xff]   ;;  %v5965_v62 = vld [vmem:[%s9444_s4 + $0x4] ss:$8 sps:$4 sm:$0xff]  }
  0x19   : > { %5889 = vmatprep.mubr.msk.bf16.mxu1 %vm586_vm0, %v5928_v15  ;;  %918 = vmatpush1.bf16.msra.mxu1 %v5939_v30  ;;  %v5963_v2 = vld [vmem:[%s9444_s4] ss:$8 sps:$4 sm:$0xff]   ;;  %v5968_v6 = vld [vmem:[%s9444_s4 + $0xf4] ss:$8 sps:$4 sm:$0xff]   ;;  %v5966_v10 = vld [vmem:[%s9444_s4 + $0xf0] ss:$8 sps:$4 sm:$0xff]  }
  0x1a   : > { %1079 = vadd.xlane.f32.xlu0 %v1078_v18  ;;  %1076 = vadd.xlane.f32.xlu1 %v1075_v22  ;;  %v5971_v14 = vld [vmem:[%s9444_s4 + $0xe4] ss:$8 sps:$4 sm:$0xff]   ;;  %v1106_v15 = vld [vmem:[%s9445_s5] sm:$0x3]  ;;  %v5974_v17 = vld [vmem:[%s9444_s4 + $0xd4] ss:$8 sps:$4 sm:$0xff]  }
  0x1b   : > { %742 = vmatpush1.bf16.msra.mxu0 %v5944_v32  ;;  %919 = vmatprep.subr.bf16.mxu1 %v5947_v33  ;;  %v5969_v16 = vld [vmem:[%s9444_s4 + $0xe0] ss:$8 sps:$4 sm:$0xff]   ;;  %v5972_v18 = vld [vmem:[%s9444_s4 + $0xd0] ss:$8 sps:$4 sm:$0xff]   ;;  %v5977_v19 = vld [vmem:[%s9444_s4 + $0xc4] ss:$8 sps:$4 sm:$0xff]  }
  0x1c   : > { %821 = vmatprep.subr.bf16.mxu0 %v5950_v35  ;;  %v5975_v20 = vld [vmem:[%s9444_s4 + $0xc0] ss:$8 sps:$4 sm:$0xff]  }
  0x1d   : > { %920 = vmatpush1.bf16.msra.mxu1 %v5945_v34  ;;  %v1182_v22 = vld [vmem:[%s9446_s6] sm:$0xff] }
  0x1e   : > { %1096 = vmax.xlane.f32.xlu0 %v1095_v24  ;;  %1073 = vadd.xlane.f32.xlu1 %v1072_v26 }
  0x1f   : > { %921 = vmatprep.subr.bf16.mxu1 %v5953_v37 }
  0x20   : > { %5890 = vmatmul.mubr.msk.bf16.gmra.mxu1 %vm586_vm0, %v5929_v25 }
  0x21   : > { %941 = vmatprep.mubr.bf16.mxu1 %v9457_v36  ;;  %922 = vmatpush1.bf16.msra.mxu1 %v5951_v38 }
  0x22   : > { %1093 = vmax.xlane.f32.xlu0 %v1092_v27  ;;  %1090 = vmax.xlane.f32.xlu1 %v1089_v28 }
  0x23   : > { %923 = vmatprep.subr.bf16.mxu1 %v5959_v39 }
  0x25   : > { %924 = vmatpush1.bf16.msra.mxu1 %v5957_v40 }
  0x26   : > { %5893 = vmatprep.subr.mxu1 %v6837_v41 }
  0x9f   : > { %v1083_v42 = vpop.xlane.xlu0 %1082  ;;  %v1100_v44 = vpop.xlane.xlu1 %1099 }
  0xa0   : > { %v1088_v61 = vmul.f32 0.00390625, %v1083_v42 }
  0xa2   : > { %v1105_v3 = vsel %vm1101_vm2, %v1088_v61, %v1100_v44  ;;  %v5978_v61 = vld [vmem:[%s9447_s7 + $0x70] ss:$8 sps:$4 sm:$0xff]  }
  0xa3   : > { %v1080_v49 = vpop.xlane.xlu0 %1079  ;;  %v1077_v52 = vpop.xlane.xlu1 %1076 }
  0xa4   : > { %v1087_v0 = vmul.f32 0.00390625, %v1080_v49  ;;  %v1086_v4 = vmul.f32 0.00390625, %v1077_v52 }
  0xa7   : > { %v1097_v57 = vpop.xlane.xlu0 %1096  ;;  %v1074_v60 = vpop.xlane.xlu1 %1073 }
  0xa8   : > { %v1085_v5 = vmul.f32 0.00390625, %v1074_v60  ;;  %v1104_v9 = vsel %vm1101_vm2, %v1087_v0, %v1097_v57  ;;  %v5983_v0 = vld [vmem:[%s9447_s7 + $0x174] ss:$8 sps:$4 sm:$0xff]  }
  0xab   : > { %v1094_v7 = vpop.xlane.xlu0 %1093  ;;  %v1091_v8 = vpop.xlane.xlu1 %1090 }
  0xac   : > { %v1103_v12 = vsel %vm1101_vm2, %v1086_v4, %v1094_v7  ;;  %v1102_v13 = vsel %vm1101_vm2, %v1085_v5, %v1091_v8  ;;  %v5987_v4 = vld [vmem:[%s9447_s7 + $0x160] ss:$8 sps:$4 sm:$0xff]   ;;  %v5992_v5 = vld [vmem:[%s9447_s7 + $0x54] ss:$8 sps:$4 sm:$0xff]   ;;  %v5990_v7 = vld [vmem:[%s9447_s7 + $0x50] ss:$8 sps:$4 sm:$0xff]  }
  0xad   : > { %v5993_v8 = vld [vmem:[%s9447_s7 + $0x150] ss:$8 sps:$4 sm:$0xff]  }
  0xd8   : > { %v5887_v43 = vpop.f32.mrf.mxu1 }
  0xda   : > { %v633_v45 = vpop.f32.mrf.mxu1 }
  0xdc   : > { %v5888_v46 = vpop.f32.mrf.mxu1 }
  0xdd   : > { %v673_v48 = vpack.c.bf16 %v5888_v46, %v5887_v43  ;;  %v1184_v43 = vld [vmem:[%s9446_s6 + $0x10] sm:$0xff] }
  0xde   : > { %v636_v51 = vpop.f32.mrf.mxu1 }
  0xdf   : > { %5167 = vmatmul.mubr.msk.bf16.vlgmr.msra.gmra.mxu0 %vm723_vm1, %v673_v48  ;;  %v664_v11 = vpack.c.bf16 %v636_v51, %v633_v45 }
  0xe0   : > { %822 = vmatpush1.bf16.msra.mxu0 %v5948_v47  ;;  %v7031_v53 = vpop.f32.mrf.mxu1  ;;  %845 = vmatprep.mubr.bf16.mxu0 %v9457_v36  ;;  %v1185_v47 = vld [vmem:[%s9446_s6 + $0x18] sm:$0xff] }
  0xe1   : > { %823 = vmatprep.subr.bf16.mxu0 %v5956_v50 }
  0xe2   : > { %v649_v56 = vpop.f32.mrf.mxu1 }
  0xe4   : > { %824 = vmatpush1.bf16.msra.mxu0 %v5954_v54  ;;  %v5892_v58 = vpop.f32.mrf.mxu1 }
  0xe5   : > { %825 = vmatprep.subr.bf16.mxu0 %v5962_v55  ;;  %v956_v21 = vpack.c.bf16 %v5892_v58, %v7031_v53 }
  0xe6   : > { %v652_v63 = vpop.f32.mrf.mxu1 }
  0xe7   : > { %v856_v1 = vpack.c.bf16 %v652_v63, %v649_v56  ;;  %v5981_v63 = vld [vmem:[%s9447_s7 + $0x170] ss:$8 sps:$4 sm:$0xff]  }
  0xe8   : > { %826 = vmatpush1.bf16.msra.mxu0 %v5960_v59 }
  0xe9   : > { %5193 = vmatmul.mubr.msk.bf16.vlgmr.msra.gmra.mxu1 %vm723_vm1, %v856_v1  ;;  %827 = vmatprep.subr.bf16.mxu0 %v5965_v62  ;;  %v5980_v62 = vld [vmem:[%s9447_s7 + $0x74] ss:$8 sps:$4 sm:$0xff]   ;;  %v5986_v1 = vld [vmem:[%s9447_s7 + $0x64] ss:$8 sps:$4 sm:$0xff]  }
  0xea   : > { %5894 = vmatpush3.msra.mxu1 %v1105_v3  ;;  %5901 = vmatprep.mubr.msk.f32.mxu1 %vm6838_vm3, %v6837_v41  ;;  %v5984_v3 = vld [vmem:[%s9447_s7 + $0x60] ss:$8 sps:$4 sm:$0xff]  }
  0xeb   : > { %5895 = vmatprep.subr.mxu1 %v6837_v41 }
  0xec   : > { %828 = vmatpush1.bf16.msra.mxu0 %v5963_v2  ;;  %5896 = vmatpush3.msra.mxu1 %v1104_v9  ;;  %v5989_v2 = vld [vmem:[%s9447_s7 + $0x164] ss:$8 sps:$4 sm:$0xff]  }
  0xed   : > { %5897 = vmatprep.subr.mxu1 %v6837_v41  ;;  %1017 = vmatprep.subr.bf16.mxu0 %v5968_v6  ;;  %v5995_v6 = vld [vmem:[%s9447_s7 + $0x154] ss:$8 sps:$4 sm:$0xff]   ;;  %v5998_v9 = vld [vmem:[%s9447_s7 + $0x44] ss:$8 sps:$4 sm:$0xff]  }
  0xee   : > { %5898 = vmatpush3.msra.mxu1 %v1103_v12  ;;  %v5999_v12 = vld [vmem:[%s9447_s7 + $0x140] ss:$8 sps:$4 sm:$0xff]  }
  0xef   : > { %5176 = vmatmul.mubr.msk.bf16.vlgmr.msra.gmra.mxu0 %vm723_vm1, %v664_v11  ;;  %5899 = vmatprep.subr.mxu1 %v6837_v41  ;;  %v1183_v41 = vld [vmem:[%s9446_s6 + $0x8] sm:$0xff] }
  0xf0   : > { %1018 = vmatpush1.bf16.msra.mxu0 %v5966_v10  ;;  %5900 = vmatpush3.msra.mxu1 %v1102_v13  ;;  %v6001_v10 = vld [vmem:[%s9447_s7 + $0x144] ss:$8 sps:$4 sm:$0xff]   ;;  %v5996_v11 = vld [vmem:[%s9447_s7 + $0x40] ss:$8 sps:$4 sm:$0xff]   ;;  %v6004_v13 = vld [vmem:[%s9447_s7 + $0x34] ss:$8 sps:$4 sm:$0xff]  }
  0xf1   : > { %5902 = vmatmul.mubr.msk.f32.vlgmr.msra.gmra.mxu1 %vm1107_vm4, %v1106_v15  ;;  %1019 = vmatprep.subr.bf16.mxu0 %v5971_v14  ;;  %v6007_v14 = vld [vmem:[%s9447_s7 + $0x134] ss:$8 sps:$4 sm:$0xff]   ;;  %v6002_v15 = vld [vmem:[%s9447_s7 + $0x30] ss:$8 sps:$4 sm:$0xff]  }
  0xf2   : > { %1041 = vmatprep.mubr.bf16.mxu0 %v9457_v36  ;;  %1783 = vmatprep.subr.bf16.mxu1 %v5980_v62 }
  0xf3   : > { %1784 = vmatpush1.bf16.msra.mxu1 %v5978_v61 }
  0xf4   : > { %1020 = vmatpush1.bf16.msra.mxu0 %v5969_v16  ;;  %1785 = vmatprep.subr.bf16.mxu1 %v5986_v1  ;;  %v6005_v16 = vld [vmem:[%s9447_s7 + $0x130] ss:$8 sps:$4 sm:$0xff]  }
  0xf5   : > { %1021 = vmatprep.subr.bf16.mxu0 %v5974_v17  ;;  %v6010_v17 = vld [vmem:[%s9447_s7 + $0x24] ss:$8 sps:$4 sm:$0xff]  }
  0xf7   : > { %1786 = vmatpush1.bf16.msra.mxu1 %v5984_v3  ;;  %v6035_v3 = vld [vmem:[%s9447_s7 + $0x1e0] ss:$8 sps:$4 sm:$0xff]  }
  0xf8   : > { %1022 = vmatpush1.bf16.msra.mxu0 %v5972_v18  ;;  %1787 = vmatprep.subr.bf16.mxu1 %v5992_v5  ;;  %v6013_v18 = vld [vmem:[%s9447_s7 + $0x124] ss:$8 sps:$4 sm:$0xff]   ;;  %v6040_v5 = vld [vmem:[%s9447_s7 + $0xd4] ss:$8 sps:$4 sm:$0xff]  }
  0xf9   : > { %1023 = vmatprep.subr.bf16.mxu0 %v5977_v19  ;;  %v6008_v19 = vld [vmem:[%s9447_s7 + $0x20] ss:$8 sps:$4 sm:$0xff]  }
  0xfb   : > { %1788 = vmatpush1.bf16.msra.mxu1 %v5990_v7  ;;  %v6038_v7 = vld [vmem:[%s9447_s7 + $0xd0] ss:$8 sps:$4 sm:$0xff]  }
  0xfc   : > { %1024 = vmatpush1.bf16.msra.mxu0 %v5975_v20  ;;  %1789 = vmatprep.subr.bf16.mxu1 %v5998_v9  ;;  %v6011_v20 = vld [vmem:[%s9447_s7 + $0x120] ss:$8 sps:$4 sm:$0xff]  }
  0xff   : > { %5210 = vmatmul.mubr.msk.bf16.vlgmr.msra.gmra.mxu0 %vm723_vm1, %v956_v21  ;;  %1790 = vmatpush1.bf16.msra.mxu1 %v5996_v11  ;;  %v6016_v21 = vld [vmem:[%s9447_s7 + $0x14] ss:$8 sps:$4 sm:$0xff]   ;;  %v6049_v11 = vld [vmem:[%s9447_s7 + $0x1c4] ss:$8 sps:$4 sm:$0xff]  }
 0x100   : > { %5906 = vmatprep.mubr.msk.f32.mxu0 %vm1186_vm5, %v1182_v22  ;;  %1791 = vmatprep.subr.bf16.mxu1 %v6004_v13  ;;  %v6019_v22 = vld [vmem:[%s9447_s7 + $0x114] ss:$8 sps:$4 sm:$0xff]   ;;  %v6044_v13 = vld [vmem:[%s9447_s7 + $0xc0] ss:$8 sps:$4 sm:$0xff]  }
 0x103   : > { %1792 = vmatpush1.bf16.msra.mxu1 %v6002_v15 }
 0x104   : > { %1793 = vmatprep.subr.bf16.mxu1 %v6010_v17  ;;  %v6052_v17 = vld [vmem:[%s9447_s7 + $0xb4] ss:$8 sps:$4 sm:$0xff]  }
 0x107   : > { %1794 = vmatpush1.bf16.msra.mxu1 %v6008_v19  ;;  %v1057_v19 = vld [vmem:[%s9443_s3 + $0x8] sm:$0xff] }
 0x108   : > { %1795 = vmatprep.subr.bf16.mxu1 %v6016_v21  ;;  %v6053_v21 = vld [vmem:[%s9447_s7 + $0x1b0] ss:$8 sps:$4 sm:$0xff]  }
 0x19f   : > { %v761_v23 = vpop.f32.mrf.mxu0 }
 0x1a1   : > { %v763_v24 = vpop.f32.mrf.mxu0 }
 0x1a3   : > { %v765_v25 = vpop.f32.mrf.mxu0 }
 0x1a5   : > { %v767_v28 = vpop.f32.mrf.mxu0 }
 0x1a9   : > { %v943_v26 = vpop.f32.mrf.mxu1 }
 0x1ab   : > { %v945_v27 = vpop.f32.mrf.mxu1 }
 0x1ad   : > { %v947_v29 = vpop.f32.mrf.mxu1 }
 0x1af   : > { %v847_v30 = vpop.f32.mrf.mxu0  ;;  %v949_v31 = vpop.f32.mrf.mxu1 }
 0x1b0   : > { %v848_v32 = vadd.f32 %v847_v30, %v761_v23  ;;  %v6014_v23 = vld [vmem:[%s9447_s7 + $0x10] ss:$8 sps:$4 sm:$0xff]   ;;  %v6031_v30 = vld [vmem:[%s9447_s7 + $0x1f4] ss:$8 sps:$4 sm:$0xff]  }
 0x1b1   : > { %v849_v33 = vpop.f32.mrf.mxu0  ;;  %v1177_v34 = vpop.f32.mrf.mxu1  ;;  %1796 = vmatpush1.bf16.msra.mxu1 %v6014_v23  ;;  %v6058_v23 = vld [vmem:[%s9447_s7 + $0xa4] ss:$8 sps:$4 sm:$0xff]  }
 0x1b2   : > { %v850_v35 = vadd.f32 %v849_v33, %v763_v24  ;;  %v1181_v37 = vmax.f32 %v1177_v34, 0.0  ;;  %v952_v38 = vadd.f32 %v943_v26, %v848_v32  ;;  %v6017_v24 = vld [vmem:[%s9447_s7 + $0x110] ss:$8 sps:$4 sm:$0xff]   ;;  %v6025_v26 = vld [vmem:[%s9447_s7 + $0x104] ss:$8 sps:$4 sm:$0xff]  }
 0x1b3   : > { %v851_v39 = vpop.f32.mrf.mxu0  ;;  %v5903_v40 = vpop.f32.mrf.mxu1  ;;  %v6029_v32 = vld [vmem:[%s9447_s7 + $0x1f0] ss:$8 sps:$4 sm:$0xff]  }
 0x1b4   : > { %v852_v42 = vadd.f32 %v851_v39, %v765_v25  ;;  %5904 = vmatprep.subr.msk.mxu0 %vm1199_vm6, %v1181_v37  ;;  %v953_v51 = vadd.f32 %v945_v27, %v850_v35  ;;  %v6022_v25 = vld [vmem:[%s9447_s7 + $0x4] ss:$8 sps:$4 sm:$0xff]   ;;  %v6020_v27 = vld [vmem:[%s9447_s7] ss:$8 sps:$4 sm:$0xff]  }
 0x1b5   : > { %v853_v44 = vpop.f32.mrf.mxu0  ;;  %5905 = vmatpush3.msk.msra.mxu0 %vm1199_vm6, %v1181_v37  ;;  %1797 = vmatprep.subr.bf16.mxu1 %v6022_v25  ;;  %v4281_v25 = vld [vmem:[%s9450_s10 + $0x8] sm:$0xff] }
 0x1b6   : > { %v854_v45 = vadd.f32 %v853_v44, %v767_v28  ;;  %5907 = vmatmul.mubr.msk.f32.vlgmr.msra.gmra.mxu0 %vm1186_vm5, %v1183_v41  ;;  %v954_v46 = vadd.f32 %v947_v29, %v852_v42  ;;  %1824 = vmatprep.subr.bf16.mxu0 %v5983_v0  ;;  %v6023_v28 = vld [vmem:[%s9447_s7 + $0x100] ss:$8 sps:$4 sm:$0xff]   ;;  %v6028_v29 = vld [vmem:[%s9447_s7 + $0xf4] ss:$8 sps:$4 sm:$0xff]   ;;  %v6037_v0 = vld [vmem:[%s9447_s7 + $0x1e4] ss:$8 sps:$4 sm:$0xff]  }
 0x1b7   : > { %5909 = vmatprep.mubr.msk.f32.mxu0 %vm1186_vm5, %v1184_v43  ;;  %1825 = vmatpush1.bf16.msra.mxu0 %v5981_v63 }
 0x1b8   : > { %v7101_v48 = vadd.f32 %v949_v31, %v854_v45  ;;  %1826 = vmatprep.subr.bf16.mxu0 %v5989_v2  ;;  %1798 = vmatpush1.bf16.msra.mxu1 %v6020_v27  ;;  %v6026_v31 = vld [vmem:[%s9447_s7 + $0xf0] ss:$8 sps:$4 sm:$0xff]   ;;  %v6032_v2 = vld [vmem:[%s9447_s7 + $0xe0] ss:$8 sps:$4 sm:$0xff]  }
 0x1b9   : > { %1799 = vmatprep.subr.bf16.mxu1 %v6028_v29  ;;  %v6059_v27 = vld [vmem:[%s9447_s7 + $0x1a0] ss:$8 sps:$4 sm:$0xff]   ;;  %v6064_v29 = vld [vmem:[%s9447_s7 + $0x94] ss:$8 sps:$4 sm:$0xff]  }
 0x1ba   : > { %5910 = vmatmul.mubr.msk.f32.gmra.mxu0 %vm1186_vm5, %v1185_v47 }
 0x1bb   : > { %1827 = vmatpush1.bf16.msra.mxu0 %v5987_v4 }
 0x1bc   : > { %1828 = vmatprep.subr.bf16.mxu0 %v5995_v6  ;;  %1800 = vmatpush2.bf16.msra.mxu1 %v6026_v31  ;;  %v6043_v6 = vld [vmem:[%s9447_s7 + $0x1d4] ss:$8 sps:$4 sm:$0xff]   ;;  %v4297_v31 = vld [vmem:[%s9451_s11 + $0x8] sm:$0xff] }
 0x1bf   : > { %v1043_v49 = vpop.f32.mrf.mxu0  ;;  %1829 = vmatpush1.bf16.msra.mxu0 %v5993_v8  ;;  %v6041_v8 = vld [vmem:[%s9447_s7 + $0x1d0] ss:$8 sps:$4 sm:$0xff]  }
 0x1c0   : > { %v7104_v50 = vadd.f32 %v1043_v49, %v952_v38  ;;  %1830 = vmatprep.subr.bf16.mxu0 %v6001_v10  ;;  %v6046_v10 = vld [vmem:[%s9447_s7 + $0xc4] ss:$8 sps:$4 sm:$0xff]  }
 0x1c1   : > { %v1045_v52 = vpop.f32.mrf.mxu0 }
 0x1c2   : > { %v7106_v53 = vadd.f32 %v1045_v52, %v953_v51 }
 0x1c3   : > { %v1047_v54 = vpop.f32.mrf.mxu0  ;;  %1831 = vmatpush1.bf16.msra.mxu0 %v5999_v12  ;;  %v1056_v12 = vld [vmem:[%s9443_s3] sm:$0xff] }
 0x1c4   : > { %v7108_v55 = vadd.f32 %v1047_v54, %v954_v46  ;;  %1832 = vmatprep.subr.bf16.mxu0 %v6007_v14  ;;  %v6047_v14 = vld [vmem:[%s9447_s7 + $0x1c0] ss:$8 sps:$4 sm:$0xff]  }
 0x1c5   : > { %v7110_v56 = vpop.f32.mrf.mxu0 }
 0x1c7   : > { %1833 = vmatpush1.bf16.msra.mxu0 %v6005_v16  ;;  %v4280_v16 = vld [vmem:[%s9450_s10] sm:$0xff] }
 0x1c8   : > { %1834 = vmatprep.subr.bf16.mxu0 %v6013_v18  ;;  %v6055_v18 = vld [vmem:[%s9447_s7 + $0x1b4] ss:$8 sps:$4 sm:$0xff]  }
 0x1cb   : > { %1835 = vmatpush1.bf16.msra.mxu0 %v6011_v20  ;;  %v6050_v20 = vld [vmem:[%s9447_s7 + $0xb0] ss:$8 sps:$4 sm:$0xff]  }
 0x1cc   : > { %1836 = vmatprep.subr.bf16.mxu0 %v6019_v22  ;;  %v4296_v22 = vld [vmem:[%s9451_s11] sm:$0xff] }
 0x1cf   : > { %1837 = vmatpush1.bf16.msra.mxu0 %v6017_v24  ;;  %v6061_v24 = vld [vmem:[%s9447_s7 + $0x1a4] ss:$8 sps:$4 sm:$0xff]  }
 0x1d0   : > { %1838 = vmatprep.subr.bf16.mxu0 %v6025_v26  ;;  %v6056_v26 = vld [vmem:[%s9447_s7 + $0xa0] ss:$8 sps:$4 sm:$0xff]  }
 0x1d3   : > { %1839 = vmatpush1.bf16.msra.mxu0 %v6023_v28  ;;  %v4964_v28 = vld [vmem:[%s9453_s13] sm:$0xff] }
 0x1d4   : > { %1840 = vmatprep.subr.bf16.mxu0 %v6031_v30  ;;  %v6067_v30 = vld [vmem:[%s9447_s7 + $0x194] ss:$8 sps:$4 sm:$0xff]  }
 0x1d7   : > { %1841 = vmatpush2.bf16.msra.mxu0 %v6029_v32  ;;  %v6062_v32 = vld [vmem:[%s9447_s7 + $0x90] ss:$8 sps:$4 sm:$0xff]  }
 0x1d8   : > { %1842 = vmatprep.subr.bf16.mxu0 %v6037_v0 }
 0x1db   : > { %1843 = vmatpush2.bf16.msra.mxu0 %v6035_v3  ;;  %v6555_v3 = vld [vmem:[%s6947_s17 + $0x30] sm:$0xff] }
 0x1dc   : > { %1844 = vmatprep.subr.bf16.mxu0 %v6043_v6 }
 0x1df   : > { %1845 = vmatpush2.bf16.msra.mxu0 %v6041_v8 }
 0x1e0   : > { %1846 = vmatprep.subr.bf16.mxu0 %v6049_v11 }
 0x1e3   : > { %1847 = vmatpush2.bf16.msra.mxu0 %v6047_v14  ;;  %v1055_v14 = vadd.f32 %v7110_v56, %v7101_v48 }
 0x1e4   : > { %1848 = vmatprep.subr.bf16.mxu0 %v6055_v18 }
 0x1e7   : > { %1849 = vmatpush2.bf16.msra.mxu0 %v6053_v21 }
 0x1e8   : > { %1850 = vmatprep.subr.bf16.mxu0 %v6061_v24 }
 0x1eb   : > { %1851 = vmatpush2.bf16.msra.mxu0 %v6059_v27 }
 0x1ec   : > { %1852 = vmatprep.subr.bf16.mxu0 %v6067_v30 }
 0x276   : > { %v7112_v57 = vpop.f32.mrf.mxu0 }
 0x277   : > { %1294 = vrot.lane.b32.xlu1 %v7112_v57, %s6839_s29 }
 0x278   : > { %v7115_v58 = vpop.f32.mrf.mxu0 }
 0x279   : > { %1292 = vrot.lane.b32.xlu0 %v7115_v58, %s6839_s29 }
 0x27a   : > { %v7118_v59 = vpop.f32.mrf.mxu0 }
 0x27c   : > { %v7120_v60 = vpop.f32.mrf.mxu0 }
 0x27d   : > { %1296 = vrot.lane.b32.xlu1 %v7120_v60, %s6839_s29 }
 0x281   : > { %1298 = vrot.lane.b32.xlu1 %v7118_v59, %s6839_s29 }
 0x2e9   : > { %v1295_v33 = vpop.permute.xlu1 %1294 }
 0x2ea   : > { %v1305_v34 = vadd.f32 %v7112_v57, %v1295_v33  ;;  %v6065_v33 = vld [vmem:[%s9447_s7 + $0x190] ss:$8 sps:$4 sm:$0xff]  }
 0x2eb   : > { %v1293_v35 = vpop.permute.xlu0 %1292  ;;  %1853 = vmatpush2.bf16.msra.mxu0 %v6065_v33 }
 0x2ec   : > { %v1309_v37 = vsub.f32 0.0, %v1305_v34  ;;  %v1304_v38 = vadd.f32 %v1293_v35, %v7115_v58  ;;  %v6068_v34 = vld [vmem:[%s9447_s7 + $0x80] ss:$8 sps:$4 sm:$0xff]   ;;  %v6070_v35 = vld [vmem:[%s9447_s7 + $0x84] ss:$8 sps:$4 sm:$0xff]  }
 0x2ee   : > { %v1314_v39 = vmul.f32 1.442695, %v1309_v37  ;;  %v1308_v40 = vsub.f32 0.0, %v1304_v38  ;;  %v6073_v37 = vld [vmem:[%s9447_s7 + $0x184] ss:$8 sps:$4 sm:$0xff]  }
 0x2ef   : > { %v1297_v41 = vpop.permute.xlu1 %1296  ;;  %v4980_v38 = vld [vmem:[%s9454_s14] sm:$0xff]  ;;  %1854 = vmatprep.subr.bf16.mxu0 %v6073_v37 }
 0x2f0   : > { %6525 = vpow2.f32 %v1314_v39  ;;  %v1312_v42 = vmul.f32 1.442695, %v1308_v40  ;;  %v1306_v43 = vadd.f32 %v1297_v41, %v7120_v60  ;;  %v4965_v39 = vld [vmem:[%s9453_s13 + $0x8] sm:$0xff] }
 0x2f1   : > { %v6071_v40 = vld [vmem:[%s9447_s7 + $0x180] ss:$8 sps:$4 sm:$0xff]  }
 0x2f2   : > { %6527 = vpow2.f32 %v1312_v42  ;;  %v1310_v44 = vsub.f32 0.0, %v1306_v43  ;;  %v4981_v41 = vld [vmem:[%s9454_s14 + $0x8] sm:$0xff]  ;;  %1855 = vmatpush2.bf16.msra.mxu0 %v6071_v40 }
 0x2f3   : > { %v1299_v45 = vpop.permute.xlu1 %1298 }
 0x2f4   : > { %v1316_v46 = vmul.f32 1.442695, %v1310_v44  ;;  %v1307_v47 = vadd.f32 %v7118_v59, %v1299_v45  ;;  %v6034_v59 = vld [vmem:[%s9447_s7 + $0xe4] ss:$8 sps:$4 sm:$0xff]  }
 0x2f5   : > { %1801 = vmatprep.subr.bf16.mxu1 %v6034_v59  ;;  %v6549_v44 = vld [vmem:[%s6947_s17] sm:$0xff] }
 0x2f6   : > { %6529 = vpow2.f32 %v1316_v46  ;;  %v1311_v49 = vsub.f32 0.0, %v1307_v47  ;;  %1802 = vmatpush2.bf16.msra.mxu1 %v6032_v2  ;;  %v6550_v46 = vld [vmem:[%s6947_s17 + $0x8] sm:$0xff] }
 0x2f7   : > { %1803 = vmatprep.subr.bf16.mxu1 %v6040_v5  ;;  %v6556_v5 = vld [vmem:[%s6947_s17 + $0x38] sm:$0xff] }
 0x2f8   : > { %v1318_v51 = vmul.f32 1.442695, %v1311_v49 }
 0x2fa   : > { %6531 = vpow2.f32 %v1318_v51  ;;  %1804 = vmatpush2.bf16.msra.mxu1 %v6038_v7  ;;  %v6551_v51 = vld [vmem:[%s6947_s17 + $0x10] sm:$0xff] }
 0x2fb   : > { %1805 = vmatprep.subr.bf16.mxu1 %v6046_v10 }
 0x2fd   : > { %v6526_v52 = vpop.eup %6525 }
 0x2fe   : > { %v1321_v54 = vadd.f32 1.0, %v6526_v52  ;;  %1806 = vmatpush2.bf16.msra.mxu1 %v6044_v13 }
 0x2ff   : > { %v6528_v57 = vpop.eup %6527  ;;  %1807 = vmatprep.subr.bf16.mxu1 %v6052_v17 }
 0x300   : > { %6533 = vrcp.f32 %v1321_v54  ;;  %v1320_v58 = vadd.f32 1.0, %v6528_v57  ;;  %v6552_v54 = vld [vmem:[%s6947_s17 + $0x18] sm:$0xff] }
 0x302   : > { %6535 = vrcp.f32 %v1320_v58  ;;  %1808 = vmatpush2.bf16.msra.mxu1 %v6050_v20  ;;  %v6553_v58 = vld [vmem:[%s6947_s17 + $0x20] sm:$0xff] }
 0x303   : > { %v6530_v61 = vpop.eup %6529  ;;  %1809 = vmatprep.subr.bf16.mxu1 %v6058_v23 }
 0x304   : > { %v1322_v62 = vadd.f32 1.0, %v6530_v61 }
 0x306   : > { %6537 = vrcp.f32 %v1322_v62  ;;  %1810 = vmatpush2.bf16.msra.mxu1 %v6056_v26  ;;  %v6554_v62 = vld [vmem:[%s6947_s17 + $0x28] sm:$0xff] }
 0x307   : > { %v6532_v60 = vpop.eup %6531  ;;  %1811 = vmatprep.subr.bf16.mxu1 %v6064_v29 }
 0x308   : > { %v1323_v63 = vadd.f32 1.0, %v6532_v60 }
 0x30a   : > { %6539 = vrcp.f32 %v1323_v63  ;;  %1812 = vmatpush2.bf16.msra.mxu1 %v6062_v32 }
 0x30b   : > { %1813 = vmatprep.subr.bf16.mxu1 %v6070_v35 }
 0x30d   : > { %v6534_v1 = vpop.eup %6533 }
 0x30e   : > { %1335 = vperm.xlu1 %5924, %v6534_v1   ;;  %1814 = vmatpush2.bf16.msra.mxu1 %v6068_v34 }
 0x30f   : > { %v6536_v4 = vpop.eup %6535 }
 0x310   : > { %1330 = vperm.xlu0 %5925, %v6536_v4  }
 0x313   : > { %v6538_v9 = vpop.eup %6537 }
 0x314   : > { %1340 = vperm.xlu1 %5924, %v6538_v9  }
 0x317   : > { %v6540_v15 = vpop.eup %6539 }
 0x318   : > { %1060 = vperm.xlu1 %5924, %v1056_v12   ;;  %1345 = vperm.xlu0 %5925, %v6540_v15  }
 0x31c   : > { %4284 = vperm.xlu1 %5924, %v4280_v16   ;;  %1065 = vperm.xlu0 %5925, %v1057_v19  }
 0x320   : > { %4300 = vperm.xlu1 %5924, %v4296_v22   ;;  %4289 = vperm.xlu0 %5925, %v4281_v25  }
 0x324   : > { %4968 = vperm.xlu1 %5924, %v4964_v28   ;;  %4305 = vperm.xlu0 %5925, %v4297_v31  }
 0x328   : > { %4984 = vperm.xlu1 %5924, %v4980_v38   ;;  %4973 = vperm.xlu0 %5925, %v4965_v39  }
 0x32c   : > { %4989 = vperm.xlu0 %5925, %v4981_v41  }
 0x389   : > { %v1336_v42 = vpop.permute.xlu1 %1335 }
 0x38a   : > { %v7357_v52 = vmul.f32 %v6551_v51, %v1336_v42  ;;  %v7360_v57 = vmul.f32 %v6552_v54, %v1336_v42 }
 0x38b   : > { %v1331_v43 = vpop.permute.xlu0 %1330 }
 0x38c   : > { %v7351_v45 = vmul.f32 %v6549_v44, %v1331_v43  ;;  %v7354_v47 = vmul.f32 %v6550_v46, %v1331_v43 }
 0x38e   : > { %v1356_v63 = vadd.f32 %v7357_v52, %v7351_v45  ;;  %v1365_v59 = vadd.f32 %v7360_v57, %v7354_v47 }
 0x38f   : > { %v1341_v49 = vpop.permute.xlu1 %1340 }
 0x390   : > { %v7363_v61 = vmul.f32 %v6553_v58, %v1341_v49  ;;  %v7366_v60 = vmul.f32 %v6554_v62, %v1341_v49  ;;  %v6086_v62 = vld [vmem:[%s9448_s8 + $0x170] ss:$8 sps:$4 sm:$0xff]  }
 0x392   : > { %v1357_v1 = vadd.f32 %v1356_v63, %v7363_v61  ;;  %v1366_v2 = vadd.f32 %v1365_v59, %v7366_v60  ;;  %v1377_v7 = vmax.f32 %v7351_v45, %v7363_v61  ;;  %v1386_v8 = vmax.f32 %v7354_v47, %v7366_v60  ;;  %v6088_v63 = vld [vmem:[%s9448_s8 + $0x174] ss:$8 sps:$4 sm:$0xff]   ;;  %v6094_v59 = vld [vmem:[%s9448_s8 + $0x164] ss:$8 sps:$4 sm:$0xff]  }
 0x393   : > { %v1346_v0 = vpop.permute.xlu0 %1345  ;;  %v1061_v13 = vpop.permute.xlu1 %1060  ;;  %2340 = vmatprep.subr.bf16.mxu0 %v6088_v63 }
 0x394   : > { %v7375_v4 = vmul.f32 %v6555_v3, %v1346_v0  ;;  %v7378_v6 = vmul.f32 %v6556_v5, %v1346_v0  ;;  %v7393_v20 = vadd.f32 %v1061_v13, %v7104_v50  ;;  %v7396_v21 = vadd.f32 %v1061_v13, %v7106_v53  ;;  %v6092_v0 = vld [vmem:[%s9448_s8 + $0x160] ss:$8 sps:$4 sm:$0xff]   ;;  %v6106_v3 = vld [vmem:[%s9448_s8 + $0x144] ss:$8 sps:$4 sm:$0xff]  }
 0x395   : > { %v6104_v5 = vld [vmem:[%s9448_s8 + $0x140] ss:$8 sps:$4 sm:$0xff]   ;;  %v6130_v13 = vld [vmem:[%s9448_s8 + $0x104] ss:$8 sps:$4 sm:$0xff]  }
 0x396   : > { %v1358_v9 = vadd.f32 %v1357_v1, %v7375_v4  ;;  %v1367_v10 = vadd.f32 %v1366_v2, %v7378_v6  ;;  %v1378_v11 = vmax.f32 %v7357_v52, %v7375_v4  ;;  %v1387_v12 = vmax.f32 %v7360_v57, %v7378_v6  ;;  %v6100_v1 = vld [vmem:[%s9448_s8 + $0x154] ss:$8 sps:$4 sm:$0xff]   ;;  %v6098_v2 = vld [vmem:[%s9448_s8 + $0x150] ss:$8 sps:$4 sm:$0xff]  }
 0x397   : > { %v1066_v15 = vpop.permute.xlu0 %1065 }
 0x398   : > { %v1359_v16 = vrot.slane %v1358_v9, 4  ;;  %v1368_v17 = vrot.slane %v1367_v10, 4  ;;  %v1379_v18 = vmax.f32 %v1377_v7, %v1378_v11  ;;  %v1388_v19 = vmax.f32 %v1386_v8, %v1387_v12  ;;  %v6112_v7 = vld [vmem:[%s9448_s8 + $0x134] ss:$8 sps:$4 sm:$0xff]   ;;  %v6110_v8 = vld [vmem:[%s9448_s8 + $0x130] ss:$8 sps:$4 sm:$0xff]  }
 0x399   : > { %v7399_v22 = vadd.f32 %v1066_v15, %v7108_v55  ;;  %v7401_v23 = vadd.f32 %v1066_v15, %v1055_v14  ;;  %v6124_v11 = vld [vmem:[%s9448_s8 + $0x114] ss:$8 sps:$4 sm:$0xff]   ;;  %v6122_v12 = vld [vmem:[%s9448_s8 + $0x110] ss:$8 sps:$4 sm:$0xff]   ;;  %v6128_v14 = vld [vmem:[%s9448_s8 + $0x100] ss:$8 sps:$4 sm:$0xff]  }
 0x39a   : > { %v1360_v24 = vadd.f32 %v1359_v16, %v1358_v9  ;;  %v1369_v25 = vadd.f32 %v1368_v17, %v1367_v10  ;;  %v1380_v26 = vrot.slane %v1379_v18, 4  ;;  %v1389_v48 = vrot.slane %v1388_v19, 4  ;;  %v6118_v9 = vld [vmem:[%s9448_s8 + $0x124] ss:$8 sps:$4 sm:$0xff]   ;;  %v6116_v10 = vld [vmem:[%s9448_s8 + $0x120] ss:$8 sps:$4 sm:$0xff]  }
 0x39b   : > { %v1891_v56 = vpack.c.bf16 %v7399_v22, %v7393_v20  ;;  %v1892_v27 = vpack.c.bf16 %v7401_v23, %v7396_v21  ;;  %v6136_v15 = vld [vmem:[%s9448_s8 + $0x1f4] ss:$8 sps:$4 sm:$0xff]   ;;  %v6089_v20 = vld [vmem:[%s9448_s8 + $0x50] ss:$8 sps:$4 sm:$0xff]   ;;  %v6097_v21 = vld [vmem:[%s9448_s8 + $0x44] ss:$8 sps:$4 sm:$0xff]  }
 0x39c   : > { %v1361_v50 = vrot.slane %v1360_v24, 2  ;;  %v1381_v28 = vmax.f32 %v1379_v18, %v1380_v26  ;;  %v1370_v29 = vrot.slane %v1369_v25, 2  ;;  %v1390_v53 = vmax.f32 %v1388_v19, %v1389_v48  ;;  %v6134_v19 = vld [vmem:[%s9448_s8 + $0x1f0] ss:$8 sps:$4 sm:$0xff]   ;;  %v6143_v26 = vld [vmem:[%s9448_s8 + $0x1e4] ss:$8 sps:$4 sm:$0xff]  }
 0x39d   : > { %v6095_v22 = vld [vmem:[%s9448_s8 + $0x40] ss:$8 sps:$4 sm:$0xff]   ;;  %v6103_v23 = vld [vmem:[%s9448_s8 + $0x34] ss:$8 sps:$4 sm:$0xff]  }
 0x39e   : > { %v1362_v30 = vadd.f32 %v1361_v50, %v1360_v24  ;;  %v1382_v31 = vrot.slane %v1381_v28, 2  ;;  %v1371_v55 = vadd.f32 %v1370_v29, %v1369_v25  ;;  %v1391_v32 = vrot.slane %v1390_v53, 2 }
 0x3a0   : > { %v1383_v33 = vmax.f32 %v1381_v28, %v1382_v31  ;;  %v1372_v34 = vrot.slane %v1371_v55, 1  ;;  %v1392_v35 = vmax.f32 %v1390_v53, %v1391_v32  ;;  %v1363_v37 = vrot.slane %v1362_v30, 1  ;;  %v6141_v31 = vld [vmem:[%s9448_s8 + $0x1e0] ss:$8 sps:$4 sm:$0xff]  }
 0x3a2   : > { %v1384_v38 = vrot.slane %v1383_v33, 1  ;;  %v1373_v39 = vadd.f32 %v1372_v34, %v1371_v55  ;;  %v1393_v40 = vrot.slane %v1392_v35, 1  ;;  %v1364_v41 = vadd.f32 %v1363_v37, %v1362_v30  ;;  %v6156_v37 = vld [vmem:[%s9448_s8 + $0x1c4] ss:$8 sps:$4 sm:$0xff]  }
 0x3a4   : > { %v1376_v42 = vmul.f32 0.03125, %v1373_v39  ;;  %v1394_v43 = vmax.f32 %v1392_v35, %v1393_v40  ;;  %v1375_v44 = vmul.f32 0.03125, %v1364_v41  ;;  %v1385_v46 = vmax.f32 %v1383_v33, %v1384_v38  ;;  %v6149_v33 = vld [vmem:[%s9448_s8 + $0x1d4] ss:$8 sps:$4 sm:$0xff]   ;;  %v6147_v35 = vld [vmem:[%s9448_s8 + $0x1d0] ss:$8 sps:$4 sm:$0xff]  }
 0x3a5   : > { %v6154_v38 = vld [vmem:[%s9448_s8 + $0x1c0] ss:$8 sps:$4 sm:$0xff]  }
 0x3a6   : > { %v1396_v49 = vpack.c.bf16 %v1376_v42, %v1376_v42  ;;  %v1398_v51 = vpack.c.bf16 %v1394_v43, %v1394_v43  ;;  %v1395_v54 = vpack.c.bf16 %v1375_v44, %v1375_v44  ;;  %v1397_v58 = vpack.c.bf16 %v1385_v46, %v1385_v46 }
 0x3a7   : > { %v1875_v43 = vlaneseq }
 0x3a8   : > { %1815 = vmatprep.mubr.bf16.mxu1 %v1396_v49  ;;  %1856 = vmatprep.mubr.bf16.mxu0 %v1398_v51 }
 0x3a9   : > { %1816 = vmatmul.mubr.bf16.vlgmr.msra.gmra.mxu1 %v1395_v54  ;;  %1857 = vmatmul.mubr.bf16.vlgmr.msra.gmra.mxu0 %v1397_v58  ;;  %v1876_v44 = vshrl.u32 %v1875_v43, 7  ;;  %v6170_v43 = vld [vmem:[%s9448_s8 + $0x80] ss:$8 sps:$4 sm:$0xff]  }
 0x3aa   : > { %2020 = vmatprep.mubr.bf16.mxu1 %v9457_v36  ;;  %2341 = vmatpush1.bf16.msra.mxu0 %v6086_v62 }
 0x3ab   : > { %2342 = vmatprep.subr.bf16.mxu0 %v6094_v59  ;;  %v1877_v46 = vsub.s32 0, %v1876_v44  ;;  %v6173_v44 = vld [vmem:[%s9448_s8 + $0x190] ss:$8 sps:$4 sm:$0xff]  }
 0x3ae   : > { %2343 = vmatpush1.bf16.msra.mxu0 %v6092_v0 }
 0x3af   : > { %2344 = vmatprep.subr.bf16.mxu0 %v6100_v1 }
 0x3b2   : > { %2345 = vmatpush1.bf16.msra.mxu0 %v6098_v2 }
 0x3b3   : > { %2346 = vmatprep.subr.bf16.mxu0 %v6106_v3 }
 0x3b6   : > { %2347 = vmatpush1.bf16.msra.mxu0 %v6104_v5 }
 0x3b7   : > { %2348 = vmatprep.subr.bf16.mxu0 %v6112_v7 }
 0x3ba   : > { %2349 = vmatpush1.bf16.msra.mxu0 %v6110_v8 }
 0x3bb   : > { %2350 = vmatprep.subr.bf16.mxu0 %v6118_v9 }
 0x3be   : > { %2351 = vmatpush1.bf16.msra.mxu0 %v6116_v10  ;;  %v6109_v10 = vld [vmem:[%s9448_s8 + $0x24] ss:$8 sps:$4 sm:$0xff]  }
 0x3bf   : > { %2352 = vmatprep.subr.bf16.mxu0 %v6124_v11  ;;  %v6107_v11 = vld [vmem:[%s9448_s8 + $0x20] ss:$8 sps:$4 sm:$0xff]  }
 0x3c2   : > { %2353 = vmatpush1.bf16.msra.mxu0 %v6122_v12  ;;  %v6115_v12 = vld [vmem:[%s9448_s8 + $0x14] ss:$8 sps:$4 sm:$0xff]  }
 0x3c3   : > { %2354 = vmatprep.subr.bf16.mxu0 %v6130_v13  ;;  %v6077_v13 = vld [vmem:[%s9449_s9 + $0x18] sm:$0xff]  }
 0x3c6   : > { %2355 = vmatpush1.bf16.msra.mxu0 %v6128_v14  ;;  %v6113_v14 = vld [vmem:[%s9448_s8 + $0x10] ss:$8 sps:$4 sm:$0xff]  }
 0x3c7   : > { %2356 = vmatprep.subr.bf16.mxu0 %v6136_v15  ;;  %v6121_v15 = vld [vmem:[%s9448_s8 + $0x4] ss:$8 sps:$4 sm:$0xff]  }
 0x3ca   : > { %2357 = vmatpush2.bf16.msra.mxu0 %v6134_v19  ;;  %v6125_v19 = vld [vmem:[%s9448_s8 + $0xf0] ss:$8 sps:$4 sm:$0xff]  }
 0x3cb   : > { %2358 = vmatprep.subr.bf16.mxu0 %v6143_v26  ;;  %v6140_v26 = vld [vmem:[%s9448_s8 + $0xd4] ss:$8 sps:$4 sm:$0xff]  }
 0x3ce   : > { %2359 = vmatpush2.bf16.msra.mxu0 %v6141_v31  ;;  %v6151_v31 = vld [vmem:[%s9448_s8 + $0xb0] ss:$8 sps:$4 sm:$0xff]  }
 0x3cf   : > { %2360 = vmatprep.subr.bf16.mxu0 %v6149_v33  ;;  %v6150_v33 = vld [vmem:[%s9449_s9 + $0x38] sm:$0xff]  }
 0x3d2   : > { %2361 = vmatpush2.bf16.msra.mxu0 %v6147_v35  ;;  %v6162_v35 = vld [vmem:[%s9448_s8 + $0x1b4] ss:$8 sps:$4 sm:$0xff]  }
 0x3d3   : > { %2362 = vmatprep.subr.bf16.mxu0 %v6156_v37  ;;  %v6163_v37 = vld [vmem:[%s9449_s9 + $0x40] sm:$0xff]  }
 0x3d6   : > { %2363 = vmatpush2.bf16.msra.mxu0 %v6154_v38  ;;  %v6166_v38 = vld [vmem:[%s9448_s8 + $0x94] ss:$8 sps:$4 sm:$0xff]  }
 0x3d7   : > { %2364 = vmatprep.subr.bf16.mxu0 %v6162_v35  ;;  %v6224_v35 = vld [vmem:[%s9448_s8 + $0x300] ss:$8 sps:$4 sm:$0xff]  }
 0x469   : > { %v1817_v16 = vpop.f32.mrf.mxu1  ;;  %v1858_v17 = vpop.f32.mrf.mxu0 }
 0x46a   : > { %v1859_v18 = vadd.f32 %v1858_v17, %v1817_v16  ;;  %v6119_v16 = vld [vmem:[%s9448_s8] ss:$8 sps:$4 sm:$0xff]   ;;  %v6127_v17 = vld [vmem:[%s9448_s8 + $0xf4] ss:$8 sps:$4 sm:$0xff]  }
 0x46b   : > { %v1819_v24 = vpop.f32.mrf.mxu1  ;;  %v1860_v25 = vpop.f32.mrf.mxu0 }
 0x46c   : > { %v1865_v48 = vsub.f32 0.0, %v1859_v18  ;;  %v1861_v50 = vadd.f32 %v1860_v25, %v1819_v24  ;;  %v6078_v18 = vld [vmem:[%s9449_s9 + $0x20] sm:$0xff]  }
 0x46d   : > { %v1821_v28 = vpop.f32.mrf.mxu1  ;;  %v1862_v29 = vpop.f32.mrf.mxu0  ;;  %v6133_v24 = vld [vmem:[%s9448_s8 + $0xe4] ss:$8 sps:$4 sm:$0xff]   ;;  %v6131_v25 = vld [vmem:[%s9448_s8 + $0xe0] ss:$8 sps:$4 sm:$0xff]  }
 0x46e   : > { %v1867_v53 = vmul.f32 1.442695, %v1865_v48  ;;  %v1866_v30 = vsub.f32 0.0, %v1861_v50  ;;  %v6079_v48 = vld [vmem:[%s9449_s9 + $0x28] sm:$0xff]   ;;  %v6138_v50 = vld [vmem:[%s9448_s8 + $0xd0] ss:$8 sps:$4 sm:$0xff]  }
 0x46f   : > { %v1822_v55 = vpop.f32.mrf.mxu1  ;;  %v1863_v32 = vpop.f32.mrf.mxu0  ;;  %v6146_v28 = vld [vmem:[%s9448_s8 + $0xc4] ss:$8 sps:$4 sm:$0xff]   ;;  %v6144_v29 = vld [vmem:[%s9448_s8 + $0xc0] ss:$8 sps:$4 sm:$0xff]  }
 0x470   : > { %6541 = vpow2.f32 %v1867_v53  ;;  %v1869_v34 = vmul.f32 1.442695, %v1866_v30  ;;  %v6153_v53 = vld [vmem:[%s9448_s8 + $0xb4] ss:$8 sps:$4 sm:$0xff]   ;;  %v6159_v55 = vld [vmem:[%s9448_s8 + $0xa4] ss:$8 sps:$4 sm:$0xff]  }
 0x471   : > { %v6137_v30 = vld [vmem:[%s9449_s9 + $0x30] sm:$0xff]   ;;  %v6157_v32 = vld [vmem:[%s9448_s8 + $0xa0] ss:$8 sps:$4 sm:$0xff]  }
 0x472   : > { %6543 = vpow2.f32 %v1869_v34  ;;  %v6160_v34 = vld [vmem:[%s9448_s8 + $0x1b0] ss:$8 sps:$4 sm:$0xff]  }
 0x473   : > { %2365 = vmatpush2.bf16.msra.mxu0 %v6160_v34  ;;  %v6209_v34 = vld [vmem:[%s9448_s8 + $0x220] ss:$8 sps:$4 sm:$0xff]  }
 0x47d   : > { %v6542_v39 = vpop.eup %6541 }
 0x47e   : > { %v1871_v40 = vadd.f32 1.0, %v6542_v39  ;;  %v6164_v39 = vld [vmem:[%s9448_s8 + $0x90] ss:$8 sps:$4 sm:$0xff]  }
 0x47f   : > { %v6544_v41 = vpop.eup %6543 }
 0x480   : > { %6545 = vrcp.f32 %v1871_v40  ;;  %v1872_v42 = vadd.f32 1.0, %v6544_v41  ;;  %v6169_v40 = vld [vmem:[%s9448_s8 + $0x1a4] ss:$8 sps:$4 sm:$0xff]   ;;  %v6167_v41 = vld [vmem:[%s9448_s8 + $0x1a0] ss:$8 sps:$4 sm:$0xff]  }
 0x481   : > { %2366 = vmatprep.subr.bf16.mxu0 %v6169_v40 }
 0x482   : > { %6547 = vrcp.f32 %v1872_v42  ;;  %v6172_v42 = vld [vmem:[%s9448_s8 + $0x84] ss:$8 sps:$4 sm:$0xff]   ;;  %2367 = vmatpush2.bf16.msra.mxu0 %v6167_v41 }
 0x48d   : > { %v6546_v49 = vpop.eup %6545 }
 0x48e   : > { %v1878_v51 = vrot.slane %v6546_v49, %v1877_v46  ;;  %v6178_v49 = vld [vmem:[%s9448_s8 + $0x184] ss:$8 sps:$4 sm:$0xff]  }
 0x48f   : > { %v6548_v54 = vpop.eup %6547 }
 0x490   : > { %v1882_v58 = vrot.slane %v6548_v54, %v1877_v46  ;;  %v1887_v62 = vmul.f32 %v1878_v51, %v7363_v61  ;;  %v1889_v63 = vmul.f32 %v1878_v51, %v7375_v4  ;;  %v1883_v7 = vmul.f32 %v1878_v51, %v7351_v45  ;;  %v6074_v45 = vld [vmem:[%s9449_s9] sm:$0xff]   ;;  %v6091_v4 = vld [vmem:[%s9448_s8 + $0x54] ss:$8 sps:$4 sm:$0xff]  }
 0x491   : > { %v1885_v8 = vmul.f32 %v1878_v51, %v7357_v52  ;;  %v6080_v52 = vld [vmem:[%s9448_s8 + $0x70] ss:$8 sps:$4 sm:$0xff]   ;;  %v6175_v46 = vld [vmem:[%s9448_s8 + $0x194] ss:$8 sps:$4 sm:$0xff]   ;;  %v6176_v51 = vld [vmem:[%s9448_s8 + $0x180] ss:$8 sps:$4 sm:$0xff]  }
 0x492   : > { %v1888_v59 = vmul.f32 %v1882_v58, %v7366_v60  ;;  %v1890_v0 = vmul.f32 %v1882_v58, %v7378_v6  ;;  %v1884_v1 = vmul.f32 %v1882_v58, %v7354_v47  ;;  %v1886_v2 = vmul.f32 %v1882_v58, %v7360_v57  ;;  %v6082_v47 = vld [vmem:[%s9448_s8 + $0x74] ss:$8 sps:$4 sm:$0xff]   ;;  %v6085_v57 = vld [vmem:[%s9448_s8 + $0x64] ss:$8 sps:$4 sm:$0xff]   ;;  %v6083_v60 = vld [vmem:[%s9448_s8 + $0x60] ss:$8 sps:$4 sm:$0xff]   ;;  %2368 = vmatprep.subr.bf16.mxu0 %v6175_v46 }
 0x493   : > { %v1895_v5 = vpack.c.bf16 %v1889_v63, %v1887_v62  ;;  %v1893_v61 = vpack.c.bf16 %v1885_v8, %v1883_v7  ;;  %v6075_v6 = vld [vmem:[%s9449_s9 + $0x8] sm:$0xff]   ;;  %2369 = vmatpush2.bf16.msra.mxu0 %v6173_v44  ;;  %v6181_v54 = vld [vmem:[%s9448_s8 + $0x274] ss:$8 sps:$4 sm:$0xff]  }
 0x494   : > { %v1896_v3 = vpack.c.bf16 %v1890_v0, %v1888_v59  ;;  %v1894_v9 = vpack.c.bf16 %v1886_v2, %v1884_v1  ;;  %2370 = vmatprep.subr.bf16.mxu0 %v6178_v49  ;;  %v6184_v58 = vld [vmem:[%s9448_s8 + $0x374] ss:$8 sps:$4 sm:$0xff]   ;;  %v6182_v2 = vld [vmem:[%s9448_s8 + $0x370] ss:$8 sps:$4 sm:$0xff]   ;;  %v6190_v7 = vld [vmem:[%s9448_s8 + $0x364] ss:$8 sps:$4 sm:$0xff]  }
 0x495   : > { %v6223_v44 = vld [vmem:[%s9448_s8 + $0x204] ss:$8 sps:$4 sm:$0xff]  }
 0x496   : > { %1998 = vmatprep.subr.bf16.mxu1 %v1896_v3  ;;  %v6238_v46 = vld [vmem:[%s9448_s8 + $0x3e4] ss:$8 sps:$4 sm:$0xff]  }
 0x497   : > { %1999 = vmatpush1.bf16.msra.mxu1 %v1895_v5  ;;  %2371 = vmatpush2.bf16.msra.mxu0 %v6176_v51 }
 0x498   : > { %2000 = vmatprep.subr.bf16.mxu1 %v1894_v9  ;;  %2781 = vmatprep.subr.bf16.mxu0 %v6181_v54  ;;  %v6188_v9 = vld [vmem:[%s9448_s8 + $0x360] ss:$8 sps:$4 sm:$0xff]  }
 0x499   : > { %v6221_v54 = vld [vmem:[%s9448_s8 + $0x200] ss:$8 sps:$4 sm:$0xff]  }
 0x49b   : > { %2001 = vmatpush1.bf16.msra.mxu1 %v1893_v61 }
 0x49c   : > { %2002 = vmatprep.subr.bf16.mxu1 %v1892_v27  ;;  %v6101_v27 = vld [vmem:[%s9448_s8 + $0x30] ss:$8 sps:$4 sm:$0xff]  }
 0x49f   : > { %2003 = vmatpush1.bf16.msra.mxu1 %v1891_v56  ;;  %v6076_v56 = vld [vmem:[%s9449_s9 + $0x10] sm:$0xff]  }
 0x4a0   : > { %2543 = vmatprep.subr.bf16.mxu1 %v6082_v47  ;;  %v6196_v47 = vld [vmem:[%s9448_s8 + $0x354] ss:$8 sps:$4 sm:$0xff]  }
 0x4a2   : > { %5290 = vmatmul.mubr.msk.bf16.vlgmr.msra.gmra.mxu1 %vm1960_vm7, %v6074_v45 }
 0x4a3   : > { %2030 = vmatprep.mubr.bf16.mxu1 %v9457_v36  ;;  %2544 = vmatpush1.bf16.msra.mxu1 %v6080_v52 }
 0x4a4   : > { %2545 = vmatprep.subr.bf16.mxu1 %v6085_v57  ;;  %v6179_v57 = vld [vmem:[%s9448_s8 + $0x270] ss:$8 sps:$4 sm:$0xff]  }
 0x4a7   : > { %2546 = vmatpush1.bf16.msra.mxu1 %v6083_v60  ;;  %v6194_v60 = vld [vmem:[%s9448_s8 + $0x350] ss:$8 sps:$4 sm:$0xff]  }
 0x4a8   : > { %2547 = vmatprep.subr.bf16.mxu1 %v6091_v4 }
 0x4aa   : > { %5291 = vmatmul.mubr.msk.bf16.gmra.mxu1 %vm1960_vm7, %v6075_v6  ;;  %v6187_v6 = vld [vmem:[%s9448_s8 + $0x264] ss:$8 sps:$4 sm:$0xff]  }
 0x4ab   : > { %2040 = vmatprep.mubr.bf16.mxu1 %v9457_v36  ;;  %2548 = vmatpush1.bf16.msra.mxu1 %v6089_v20  ;;  %v6202_v20 = vld [vmem:[%s9448_s8 + $0x344] ss:$8 sps:$4 sm:$0xff]  }
 0x4ac   : > { %2549 = vmatprep.subr.bf16.mxu1 %v6097_v21 }
 0x4af   : > { %2550 = vmatpush1.bf16.msra.mxu1 %v6095_v22 }
 0x4b0   : > { %2551 = vmatprep.subr.bf16.mxu1 %v6103_v23  ;;  %v6185_v23 = vld [vmem:[%s9448_s8 + $0x260] ss:$8 sps:$4 sm:$0xff]  }
 0x4b2   : > { %5292 = vmatmul.mubr.msk.bf16.gmra.mxu1 %vm1960_vm7, %v6076_v56  ;;  %v6200_v56 = vld [vmem:[%s9448_s8 + $0x340] ss:$8 sps:$4 sm:$0xff]  }
 0x4b3   : > { %2050 = vmatprep.mubr.bf16.mxu1 %v9457_v36  ;;  %2552 = vmatpush1.bf16.msra.mxu1 %v6101_v27  ;;  %v6193_v27 = vld [vmem:[%s9448_s8 + $0x254] ss:$8 sps:$4 sm:$0xff]  }
 0x4b4   : > { %2553 = vmatprep.subr.bf16.mxu1 %v6109_v10  ;;  %v6208_v10 = vld [vmem:[%s9448_s8 + $0x334] ss:$8 sps:$4 sm:$0xff]  }
 0x4b7   : > { %2554 = vmatpush1.bf16.msra.mxu1 %v6107_v11 }
 0x4b8   : > { %2555 = vmatprep.subr.bf16.mxu1 %v6115_v12 }
 0x4ba   : > { %5293 = vmatmul.mubr.msk.bf16.gmra.mxu1 %vm1960_vm7, %v6077_v13  ;;  %v6191_v13 = vld [vmem:[%s9448_s8 + $0x250] ss:$8 sps:$4 sm:$0xff]  }
 0x4bb   : > { %2060 = vmatprep.mubr.bf16.mxu1 %v9457_v36  ;;  %2556 = vmatpush1.bf16.msra.mxu1 %v6113_v14  ;;  %v6206_v14 = vld [vmem:[%s9448_s8 + $0x330] ss:$8 sps:$4 sm:$0xff]  }
 0x4bc   : > { %2557 = vmatprep.subr.bf16.mxu1 %v6121_v15 }
 0x4bf   : > { %2558 = vmatpush1.bf16.msra.mxu1 %v6119_v16  ;;  %v6199_v16 = vld [vmem:[%s9448_s8 + $0x244] ss:$8 sps:$4 sm:$0xff]  }
 0x4c0   : > { %2559 = vmatprep.subr.bf16.mxu1 %v6127_v17  ;;  %v6214_v17 = vld [vmem:[%s9448_s8 + $0x324] ss:$8 sps:$4 sm:$0xff]  }
 0x4c2   : > { %5294 = vmatmul.mubr.msk.bf16.gmra.mxu1 %vm1960_vm7, %v6078_v18 }
 0x4c3   : > { %2070 = vmatprep.mubr.bf16.mxu1 %v9457_v36  ;;  %2560 = vmatpush2.bf16.msra.mxu1 %v6125_v19 }
 0x4c4   : > { %2561 = vmatprep.subr.bf16.mxu1 %v6133_v24  ;;  %v6197_v24 = vld [vmem:[%s9448_s8 + $0x240] ss:$8 sps:$4 sm:$0xff]  }
 0x4c7   : > { %2562 = vmatpush2.bf16.msra.mxu1 %v6131_v25  ;;  %v6212_v25 = vld [vmem:[%s9448_s8 + $0x320] ss:$8 sps:$4 sm:$0xff]  }
 0x4c8   : > { %2563 = vmatprep.subr.bf16.mxu1 %v6140_v26  ;;  %v6205_v26 = vld [vmem:[%s9448_s8 + $0x234] ss:$8 sps:$4 sm:$0xff]  }
 0x4ca   : > { %5295 = vmatmul.mubr.msk.bf16.gmra.mxu1 %vm1960_vm7, %v6079_v48  ;;  %v6220_v48 = vld [vmem:[%s9448_s8 + $0x314] ss:$8 sps:$4 sm:$0xff]  }
 0x4cb   : > { %2080 = vmatprep.mubr.bf16.mxu1 %v9457_v36  ;;  %2564 = vmatpush2.bf16.msra.mxu1 %v6138_v50 }
 0x4cc   : > { %2565 = vmatprep.subr.bf16.mxu1 %v6146_v28 }
 0x4cf   : > { %2566 = vmatpush2.bf16.msra.mxu1 %v6144_v29  ;;  %v6203_v29 = vld [vmem:[%s9448_s8 + $0x230] ss:$8 sps:$4 sm:$0xff]  }
 0x4d0   : > { %2567 = vmatprep.subr.bf16.mxu1 %v6153_v53  ;;  %v6218_v53 = vld [vmem:[%s9448_s8 + $0x310] ss:$8 sps:$4 sm:$0xff]  }
 0x4d2   : > { %5296 = vmatmul.mubr.msk.bf16.gmra.mxu1 %vm1960_vm7, %v6137_v30 }
 0x4d3   : > { %2090 = vmatprep.mubr.bf16.mxu1 %v9457_v36  ;;  %2568 = vmatpush2.bf16.msra.mxu1 %v6151_v31  ;;  %v6211_v31 = vld [vmem:[%s9448_s8 + $0x224] ss:$8 sps:$4 sm:$0xff]  }
 0x4d4   : > { %2569 = vmatprep.subr.bf16.mxu1 %v6159_v55  ;;  %v6226_v55 = vld [vmem:[%s9448_s8 + $0x304] ss:$8 sps:$4 sm:$0xff]  }
 0x4d7   : > { %2570 = vmatpush2.bf16.msra.mxu1 %v6157_v32 }
 0x4d8   : > { %2571 = vmatprep.subr.bf16.mxu1 %v6166_v38  ;;  %v6232_v38 = vld [vmem:[%s9448_s8 + $0x3f4] ss:$8 sps:$4 sm:$0xff]  }
 0x4da   : > { %5297 = vmatmul.mubr.msk.bf16.gmra.mxu1 %vm1960_vm7, %v6150_v33 }
 0x4db   : > { %2100 = vmatprep.mubr.bf16.mxu1 %v9457_v36  ;;  %2572 = vmatpush2.bf16.msra.mxu1 %v6164_v39 }
 0x4dc   : > { %2573 = vmatprep.subr.bf16.mxu1 %v6172_v42  ;;  %v6215_v42 = vld [vmem:[%s9448_s8 + $0x210] ss:$8 sps:$4 sm:$0xff]  }
 0x4df   : > { %2574 = vmatpush2.bf16.msra.mxu1 %v6170_v43  ;;  %v6230_v43 = vld [vmem:[%s9448_s8 + $0x3f0] ss:$8 sps:$4 sm:$0xff]  }
 0x4e0   : > { %3023 = vmatprep.subr.bf16.mxu1 %v6184_v58  ;;  %v6236_v58 = vld [vmem:[%s9448_s8 + $0x3e0] ss:$8 sps:$4 sm:$0xff]  }
 0x4e2   : > { %5298 = vmatmul.mubr.msk.bf16.gmra.mxu1 %vm1960_vm7, %v6163_v37  ;;  %v6217_v37 = vld [vmem:[%s9448_s8 + $0x214] ss:$8 sps:$4 sm:$0xff]  }
 0x562   : > { %v2022_v62 = vpop.f32.mrf.mxu1 }
 0x564   : > { %v2024_v63 = vpop.f32.mrf.mxu1 }
 0x566   : > { %v2026_v59 = vpop.f32.mrf.mxu1 }
 0x567   : > { %v2111_v3 = vpack.c.bf16 %v2026_v59, %v2022_v62  ;;  %v6229_v62 = vld [vmem:[%s9448_s8 + $0x2f4] ss:$8 sps:$4 sm:$0xff]  }
 0x568   : > { %v2028_v0 = vpop.f32.mrf.mxu1 }
 0x569   : > { %v2112_v1 = vpack.c.bf16 %v2028_v0, %v2024_v63  ;;  %v6244_v63 = vld [vmem:[%s9448_s8 + $0x3d4] ss:$8 sps:$4 sm:$0xff]  }
 0x56a   : > { %v2032_v5 = vpop.f32.mrf.mxu1 }
 0x56b   : > { %2575 = vmatprep.mubr.bf16.mxu1 %v2112_v1  ;;  %v6227_v1 = vld [vmem:[%s9448_s8 + $0x2f0] ss:$8 sps:$4 sm:$0xff]  }
 0x56c   : > { %v2034_v8 = vpop.f32.mrf.mxu1  ;;  %2576 = vmatmul.mubr.bf16.vlgmr.msra.gmra.mxu1 %v2111_v3  ;;  %v6235_v3 = vld [vmem:[%s9448_s8 + $0x2e4] ss:$8 sps:$4 sm:$0xff]  }
 0x56d   : > { %3024 = vmatpush1.bf16.msra.mxu1 %v6182_v2  ;;  %v6242_v2 = vld [vmem:[%s9448_s8 + $0x3d0] ss:$8 sps:$4 sm:$0xff]  }
 0x56e   : > { %v2036_v61 = vpop.f32.mrf.mxu1  ;;  %3025 = vmatprep.subr.bf16.mxu1 %v6190_v7 }
 0x56f   : > { %v2145_v4 = vpack.c.bf16 %v2036_v61, %v2032_v5  ;;  %v6250_v5 = vld [vmem:[%s9448_s8 + $0x3c4] ss:$8 sps:$4 sm:$0xff]  }
 0x570   : > { %v2038_v45 = vpop.f32.mrf.mxu1 }
 0x571   : > { %v2146_v52 = vpack.c.bf16 %v2038_v45, %v2034_v8  ;;  %3026 = vmatpush1.bf16.msra.mxu1 %v6188_v9  ;;  %v6233_v8 = vld [vmem:[%s9448_s8 + $0x2e0] ss:$8 sps:$4 sm:$0xff]   ;;  %v6256_v45 = vld [vmem:[%s9448_s8 + $0x3b4] ss:$8 sps:$4 sm:$0xff]  }
 0x572   : > { %3027 = vmatprep.subr.bf16.mxu1 %v6196_v47  ;;  %v7688_v21 = vpop.f32.mrf.mxu1  ;;  %v6248_v9 = vld [vmem:[%s9448_s8 + $0x3c0] ss:$8 sps:$4 sm:$0xff]   ;;  %v6241_v47 = vld [vmem:[%s9448_s8 + $0x2d4] ss:$8 sps:$4 sm:$0xff]  }
 0x573   : > { %2372 = vmatprep.mubr.bf16.mxu0 %v2146_v52 }
 0x574   : > { %2373 = vmatmul.mubr.bf16.vlgmr.msra.gmra.mxu0 %v2145_v4  ;;  %v2044_v22 = vpop.f32.mrf.mxu1  ;;  %v6254_v4 = vld [vmem:[%s9448_s8 + $0x3b0] ss:$8 sps:$4 sm:$0xff]  }
 0x575   : > { %2782 = vmatpush1.bf16.msra.mxu0 %v6179_v57  ;;  %3028 = vmatpush1.bf16.msra.mxu1 %v6194_v60  ;;  %v6239_v60 = vld [vmem:[%s9448_s8 + $0x2d0] ss:$8 sps:$4 sm:$0xff]  }
 0x576   : > { %2783 = vmatprep.subr.bf16.mxu0 %v6187_v6  ;;  %3029 = vmatprep.subr.bf16.mxu1 %v6202_v20  ;;  %v7702_v11 = vpop.f32.mrf.mxu1  ;;  %v6247_v20 = vld [vmem:[%s9448_s8 + $0x2c4] ss:$8 sps:$4 sm:$0xff]  }
 0x578   : > { %v2048_v12 = vpop.f32.mrf.mxu1 }
 0x579   : > { %2784 = vmatpush1.bf16.msra.mxu0 %v6185_v23  ;;  %3030 = vmatpush1.bf16.msra.mxu1 %v6200_v56  ;;  %v2587_v15 = vpack.c.bf16 %v2048_v12, %v2044_v22  ;;  %v6262_v22 = vld [vmem:[%s9448_s8 + $0x3a4] ss:$8 sps:$4 sm:$0xff]   ;;  %v6245_v56 = vld [vmem:[%s9448_s8 + $0x2c0] ss:$8 sps:$4 sm:$0xff]   ;;  %v6253_v12 = vld [vmem:[%s9448_s8 + $0x2b4] ss:$8 sps:$4 sm:$0xff]  }
 0x57a   : > { %2785 = vmatprep.subr.bf16.mxu0 %v6193_v27  ;;  %3031 = vmatprep.subr.bf16.mxu1 %v6208_v10  ;;  %v7716_v18 = vpop.f32.mrf.mxu1  ;;  %v6260_v27 = vld [vmem:[%s9448_s8 + $0x3a0] ss:$8 sps:$4 sm:$0xff]  }
 0x57b   : > { %2813 = vmatprep.mubr.bf16.mxu0 %v2587_v15  ;;  %v6251_v15 = vld [vmem:[%s9448_s8 + $0x2b0] ss:$8 sps:$4 sm:$0xff]  }
 0x57c   : > { %v2054_v19 = vpop.f32.mrf.mxu1 }
 0x57d   : > { %2786 = vmatpush1.bf16.msra.mxu0 %v6191_v13  ;;  %3032 = vmatpush1.bf16.msra.mxu1 %v6206_v14  ;;  %v6268_v13 = vld [vmem:[%s9448_s8 + $0x394] ss:$8 sps:$4 sm:$0xff]  }
 0x57e   : > { %2787 = vmatprep.subr.bf16.mxu0 %v6199_v16  ;;  %3033 = vmatprep.subr.bf16.mxu1 %v6214_v17  ;;  %v7730_v50 = vpop.f32.mrf.mxu1  ;;  %v6266_v16 = vld [vmem:[%s9448_s8 + $0x390] ss:$8 sps:$4 sm:$0xff]  }
 0x580   : > { %v2058_v28 = vpop.f32.mrf.mxu1 }
 0x581   : > { %2788 = vmatpush1.bf16.msra.mxu0 %v6197_v24  ;;  %3034 = vmatpush1.bf16.msra.mxu1 %v6212_v25  ;;  %v2829_v30 = vpack.c.bf16 %v2058_v28, %v2054_v19  ;;  %v6259_v19 = vld [vmem:[%s9448_s8 + $0x2a4] ss:$8 sps:$4 sm:$0xff]   ;;  %v6257_v25 = vld [vmem:[%s9448_s8 + $0x2a0] ss:$8 sps:$4 sm:$0xff]   ;;  %v6265_v28 = vld [vmem:[%s9448_s8 + $0x294] ss:$8 sps:$4 sm:$0xff]  }
 0x582   : > { %2789 = vmatprep.subr.bf16.mxu0 %v6205_v26  ;;  %3035 = vmatprep.subr.bf16.mxu1 %v6220_v48  ;;  %v7744_v32 = vpop.f32.mrf.mxu1  ;;  %v6274_v24 = vld [vmem:[%s9448_s8 + $0x384] ss:$8 sps:$4 sm:$0xff]   ;;  %v6272_v26 = vld [vmem:[%s9448_s8 + $0x380] ss:$8 sps:$4 sm:$0xff]  }
 0x583   : > { %3055 = vmatprep.mubr.bf16.mxu1 %v2829_v30  ;;  %v2828_v30 = vpack.c.bf16 %v7730_v50, %v7716_v18  ;;  %v6286_v18 = vld [vmem:[%s9448_s8 + $0x564] ss:$8 sps:$4 sm:$0xff]  }
 0x584   : > { %v7746_v33 = vpop.f32.mrf.mxu1 }
 0x585   : > { %2790 = vmatpush1.bf16.msra.mxu0 %v6203_v29  ;;  %3036 = vmatpush1.bf16.msra.mxu1 %v6218_v53  ;;  %v6280_v29 = vld [vmem:[%s9448_s8 + $0x574] ss:$8 sps:$4 sm:$0xff]  }
 0x586   : > { %2791 = vmatprep.subr.bf16.mxu0 %v6211_v31  ;;  %3037 = vmatprep.subr.bf16.mxu1 %v6226_v55  ;;  %v7760_v39 = vpop.f32.mrf.mxu1  ;;  %v6263_v31 = vld [vmem:[%s9448_s8 + $0x290] ss:$8 sps:$4 sm:$0xff]  }
 0x587   : > { %v3070_v40 = vpack.c.bf16 %v7760_v39, %v7744_v32  ;;  %v6278_v55 = vld [vmem:[%s9448_s8 + $0x570] ss:$8 sps:$4 sm:$0xff]   ;;  %v6400_v32 = vld [vmem:[%s9448_s8 + $0x734] ss:$8 sps:$4 sm:$0xff]  }
 0x588   : > { %v7764_v41 = vpop.f32.mrf.mxu1  ;;  %v6383_v39 = vld [vmem:[%s9448_s8 + $0x650] ss:$8 sps:$4 sm:$0xff]  }
 0x589   : > { %2792 = vmatpush1.bf16.msra.mxu0 %v6209_v34  ;;  %3038 = vmatpush1.bf16.msra.mxu1 %v6224_v35  ;;  %v6271_v35 = vld [vmem:[%s9448_s8 + $0x284] ss:$8 sps:$4 sm:$0xff]  }
 0x58a   : > { %2793 = vmatprep.subr.bf16.mxu0 %v6217_v37  ;;  %3039 = vmatprep.subr.bf16.mxu1 %v6232_v38  ;;  %v7778_v49 = vpop.f32.mrf.mxu1  ;;  %v6269_v38 = vld [vmem:[%s9448_s8 + $0x280] ss:$8 sps:$4 sm:$0xff]  }
 0x58c   : > { %v7780_v51 = vpop.f32.mrf.mxu1 }
 0x58d   : > { %2794 = vmatpush1.bf16.msra.mxu0 %v6215_v42  ;;  %3040 = vmatpush2.bf16.msra.mxu1 %v6230_v43  ;;  %v6284_v42 = vld [vmem:[%s9448_s8 + $0x560] ss:$8 sps:$4 sm:$0xff]   ;;  %v6277_v43 = vld [vmem:[%s9448_s8 + $0x474] ss:$8 sps:$4 sm:$0xff]  }
 0x58e   : > { %2795 = vmatprep.subr.bf16.mxu0 %v6223_v44  ;;  %3041 = vmatprep.subr.bf16.mxu1 %v6238_v46  ;;  %v7794_v59 = vpop.f32.mrf.mxu1  ;;  %v6292_v44 = vld [vmem:[%s9448_s8 + $0x554] ss:$8 sps:$4 sm:$0xff]   ;;  %v6275_v46 = vld [vmem:[%s9448_s8 + $0x470] ss:$8 sps:$4 sm:$0xff]  }
 0x590   : > { %v7796_v0 = vpop.f32.mrf.mxu1 }
 0x591   : > { %2796 = vmatpush1.bf16.msra.mxu0 %v6221_v54  ;;  %3042 = vmatpush2.bf16.msra.mxu1 %v6236_v58  ;;  %v3313_v37 = vpack.c.bf16 %v7796_v0, %v7780_v51  ;;  %v6290_v51 = vld [vmem:[%s9448_s8 + $0x550] ss:$8 sps:$4 sm:$0xff]   ;;  %v2586_v54 = vpack.c.bf16 %v7702_v11, %v7688_v21  ;;  %v6283_v58 = vld [vmem:[%s9448_s8 + $0x464] ss:$8 sps:$4 sm:$0xff]   ;;  %v6281_v0 = vld [vmem:[%s9448_s8 + $0x460] ss:$8 sps:$4 sm:$0xff]  }
 0x592   : > { %2797 = vmatprep.subr.bf16.mxu0 %v6229_v62  ;;  %3043 = vmatprep.subr.bf16.mxu1 %v6244_v63  ;;  %v7810_v7 = vpop.f32.mrf.mxu1  ;;  %v6298_v62 = vld [vmem:[%s9448_s8 + $0x544] ss:$8 sps:$4 sm:$0xff]   ;;  %v3071_v63 = vpack.c.bf16 %v7764_v41, %v7746_v33  ;;  %v6296_v21 = vld [vmem:[%s9448_s8 + $0x540] ss:$8 sps:$4 sm:$0xff]   ;;  %v6289_v11 = vld [vmem:[%s9448_s8 + $0x454] ss:$8 sps:$4 sm:$0xff]  }
 0x593   : > { %v6304_v33 = vld [vmem:[%s9448_s8 + $0x534] ss:$8 sps:$4 sm:$0xff]   ;;  %v6287_v41 = vld [vmem:[%s9448_s8 + $0x450] ss:$8 sps:$4 sm:$0xff]  }
 0x594   : > { %v7818_v61 = vpop.f32.mrf.mxu1 }
 0x595   : > { %2798 = vmatpush2.bf16.msra.mxu0 %v6227_v1  ;;  %3044 = vmatpush2.bf16.msra.mxu1 %v6242_v2  ;;  %v6302_v1 = vld [vmem:[%s9448_s8 + $0x530] ss:$8 sps:$4 sm:$0xff]   ;;  %v6295_v2 = vld [vmem:[%s9448_s8 + $0x444] ss:$8 sps:$4 sm:$0xff]  }
 0x596   : > { %2799 = vmatprep.subr.bf16.mxu0 %v6235_v3  ;;  %3045 = vmatprep.subr.bf16.mxu1 %v6250_v5  ;;  %v7826_v52 = vpop.f32.mrf.mxu1  ;;  %v6310_v3 = vld [vmem:[%s9448_s8 + $0x524] ss:$8 sps:$4 sm:$0xff]   ;;  %v6293_v5 = vld [vmem:[%s9448_s8 + $0x440] ss:$8 sps:$4 sm:$0xff]  }
 0x597   : > { %v3554_v57 = vpack.c.bf16 %v7826_v52, %v7810_v7  ;;  %v6478_v7 = vld [vmem:[%s9448_s8 + $0x844] ss:$8 sps:$4 sm:$0xff]   ;;  %v8334_v52 = vld [vmem:[%s9448_s8 + $0x840] ss:$8 sps:$4 sm:$0xff]  }
 0x598   : > { %v7836_v6 = vpop.f32.mrf.mxu1 }
 0x599   : > { %2800 = vmatpush2.bf16.msra.mxu0 %v6233_v8  ;;  %3046 = vmatpush2.bf16.msra.mxu1 %v6248_v9  ;;  %v6308_v8 = vld [vmem:[%s9448_s8 + $0x520] ss:$8 sps:$4 sm:$0xff]   ;;  %v6301_v9 = vld [vmem:[%s9448_s8 + $0x434] ss:$8 sps:$4 sm:$0xff]  }
 0x59a   : > { %2801 = vmatprep.subr.bf16.mxu0 %v6241_v47  ;;  %3047 = vmatprep.subr.bf16.mxu1 %v6256_v45  ;;  %v7844_v23 = vpop.f32.mrf.mxu1  ;;  %v6316_v47 = vld [vmem:[%s9448_s8 + $0x514] ss:$8 sps:$4 sm:$0xff]   ;;  %v6299_v45 = vld [vmem:[%s9448_s8 + $0x430] ss:$8 sps:$4 sm:$0xff]  }
 0x59c   : > { %v7852_v10 = vpop.f32.mrf.mxu1 }
 0x59d   : > { %2802 = vmatpush2.bf16.msra.mxu0 %v6239_v60  ;;  %3048 = vmatpush2.bf16.msra.mxu1 %v6254_v4  ;;  %v6314_v60 = vld [vmem:[%s9448_s8 + $0x510] ss:$8 sps:$4 sm:$0xff]   ;;  %v6307_v4 = vld [vmem:[%s9448_s8 + $0x424] ss:$8 sps:$4 sm:$0xff]  }
 0x59e   : > { %2803 = vmatprep.subr.bf16.mxu0 %v6247_v20  ;;  %3049 = vmatprep.subr.bf16.mxu1 %v6262_v22  ;;  %v7860_v14 = vpop.f32.mrf.mxu1  ;;  %v6322_v20 = vld [vmem:[%s9448_s8 + $0x504] ss:$8 sps:$4 sm:$0xff]   ;;  %v6305_v22 = vld [vmem:[%s9448_s8 + $0x420] ss:$8 sps:$4 sm:$0xff]  }
 0x5a0   : > { %v7868_v17 = vpop.f32.mrf.mxu1 }
 0x5a1   : > { %2804 = vmatpush2.bf16.msra.mxu0 %v6245_v56  ;;  %3050 = vmatpush2.bf16.msra.mxu1 %v6260_v27  ;;  %v6320_v56 = vld [vmem:[%s9448_s8 + $0x500] ss:$8 sps:$4 sm:$0xff]   ;;  %v6313_v27 = vld [vmem:[%s9448_s8 + $0x414] ss:$8 sps:$4 sm:$0xff]  }
 0x5a2   : > { %2805 = vmatprep.subr.bf16.mxu0 %v6253_v12  ;;  %3051 = vmatprep.subr.bf16.mxu1 %v6268_v13  ;;  %v7882_v48 = vpop.f32.mrf.mxu1  ;;  %v6328_v12 = vld [vmem:[%s9448_s8 + $0x5f4] ss:$8 sps:$4 sm:$0xff]   ;;  %v6311_v13 = vld [vmem:[%s9448_s8 + $0x410] ss:$8 sps:$4 sm:$0xff]  }
 0x5a4   : > { %v7890_v53 = vpop.f32.mrf.mxu1 }
 0x5a5   : > { %2806 = vmatpush2.bf16.msra.mxu0 %v6251_v15  ;;  %3052 = vmatpush2.bf16.msra.mxu1 %v6266_v16  ;;  %v6326_v15 = vld [vmem:[%s9448_s8 + $0x5f0] ss:$8 sps:$4 sm:$0xff]   ;;  %v6319_v16 = vld [vmem:[%s9448_s8 + $0x404] ss:$8 sps:$4 sm:$0xff]  }
 0x5a6   : > { %2807 = vmatprep.subr.bf16.mxu0 %v6259_v19  ;;  %3053 = vmatprep.subr.bf16.mxu1 %v6274_v24  ;;  %v7900_v34 = vpop.f32.mrf.mxu1  ;;  %v6334_v19 = vld [vmem:[%s9448_s8 + $0x5e4] ss:$8 sps:$4 sm:$0xff]   ;;  %v6317_v24 = vld [vmem:[%s9448_s8 + $0x400] ss:$8 sps:$4 sm:$0xff]  }
 0x5a7   : > { %v4038_v50 = vpack.c.bf16 %v7900_v34, %v7882_v48  ;;  %v6561_v48 = vld [vmem:[%s9448_s8 + $0x54] ss:$8 sps:$4 sm:$0xff]   ;;  %v6562_v34 = vld [vmem:[%s9448_s8 + $0x50] ss:$8 sps:$4 sm:$0xff]  }
 0x5a9   : > { %2808 = vmatpush2.bf16.msra.mxu0 %v6257_v25  ;;  %3054 = vmatpush2.bf16.msra.mxu1 %v6272_v26  ;;  %v6332_v25 = vld [vmem:[%s9448_s8 + $0x5e0] ss:$8 sps:$4 sm:$0xff]   ;;  %v6325_v26 = vld [vmem:[%s9448_s8 + $0x4f4] ss:$8 sps:$4 sm:$0xff]  }
 0x5aa   : > { %2809 = vmatprep.subr.bf16.mxu0 %v6265_v28  ;;  %3507 = vmatprep.subr.bf16.mxu1 %v6280_v29  ;;  %v6340_v28 = vld [vmem:[%s9448_s8 + $0x5d4] ss:$8 sps:$4 sm:$0xff]   ;;  %v6323_v29 = vld [vmem:[%s9448_s8 + $0x4f0] ss:$8 sps:$4 sm:$0xff]  }
 0x5ac   : > { %3056 = vmatmul.mubr.bf16.vlgmr.msra.gmra.mxu1 %v2828_v30  ;;  %v6338_v30 = vld [vmem:[%s9448_s8 + $0x5d0] ss:$8 sps:$4 sm:$0xff]  }
 0x5ad   : > { %2810 = vmatpush2.bf16.msra.mxu0 %v6263_v31  ;;  %3508 = vmatpush1.bf16.msra.mxu1 %v6278_v55  ;;  %v6331_v31 = vld [vmem:[%s9448_s8 + $0x4e4] ss:$8 sps:$4 sm:$0xff]  }
 0x5ae   : > { %2811 = vmatprep.subr.bf16.mxu0 %v6271_v35  ;;  %3509 = vmatprep.subr.bf16.mxu1 %v6286_v18  ;;  %v6346_v55 = vld [vmem:[%s9448_s8 + $0x5c4] ss:$8 sps:$4 sm:$0xff]   ;;  %v6329_v35 = vld [vmem:[%s9448_s8 + $0x4e0] ss:$8 sps:$4 sm:$0xff]  }
 0x5af   : > { %3539 = vmatprep.mubr.bf16.mxu1 %v3313_v37  ;;  %v6344_v18 = vld [vmem:[%s9448_s8 + $0x5c0] ss:$8 sps:$4 sm:$0xff]   ;;  %v6337_v37 = vld [vmem:[%s9448_s8 + $0x4d4] ss:$8 sps:$4 sm:$0xff]  }
 0x5b1   : > { %2812 = vmatpush2.bf16.msra.mxu0 %v6269_v38  ;;  %3510 = vmatpush1.bf16.msra.mxu1 %v6284_v42  ;;  %v6352_v38 = vld [vmem:[%s9448_s8 + $0x5b4] ss:$8 sps:$4 sm:$0xff]   ;;  %v6335_v42 = vld [vmem:[%s9448_s8 + $0x4d0] ss:$8 sps:$4 sm:$0xff]  }
 0x5b2   : > { %3265 = vmatprep.subr.bf16.mxu0 %v6277_v43  ;;  %3511 = vmatprep.subr.bf16.mxu1 %v6292_v44  ;;  %v6350_v43 = vld [vmem:[%s9448_s8 + $0x5b0] ss:$8 sps:$4 sm:$0xff]   ;;  %v6343_v44 = vld [vmem:[%s9448_s8 + $0x4c4] ss:$8 sps:$4 sm:$0xff]  }
 0x5b4   : > { %2814 = vmatmul.mubr.bf16.vlgmr.msra.gmra.mxu0 %v2586_v54  ;;  %v6356_v54 = vld [vmem:[%s9448_s8 + $0x5a0] ss:$8 sps:$4 sm:$0xff]  }
 0x5b5   : > { %3266 = vmatpush1.bf16.msra.mxu0 %v6275_v46  ;;  %3512 = vmatpush1.bf16.msra.mxu1 %v6290_v51  ;;  %v6358_v46 = vld [vmem:[%s9448_s8 + $0x5a4] ss:$8 sps:$4 sm:$0xff]   ;;  %v6341_v51 = vld [vmem:[%s9448_s8 + $0x4c0] ss:$8 sps:$4 sm:$0xff]  }
 0x5b6   : > { %3267 = vmatprep.subr.bf16.mxu0 %v6283_v58  ;;  %3513 = vmatprep.subr.bf16.mxu1 %v6298_v62  ;;  %v6349_v58 = vld [vmem:[%s9448_s8 + $0x4b4] ss:$8 sps:$4 sm:$0xff]  }
 0x5b7   : > { %3297 = vmatprep.mubr.bf16.mxu0 %v3071_v63  ;;  %v6364_v62 = vld [vmem:[%s9448_s8 + $0x594] ss:$8 sps:$4 sm:$0xff]   ;;  %v6347_v63 = vld [vmem:[%s9448_s8 + $0x4b0] ss:$8 sps:$4 sm:$0xff]  }
 0x5b9   : > { %3268 = vmatpush1.bf16.msra.mxu0 %v6281_v0  ;;  %3514 = vmatpush1.bf16.msra.mxu1 %v6296_v21  ;;  %v6362_v0 = vld [vmem:[%s9448_s8 + $0x590] ss:$8 sps:$4 sm:$0xff]   ;;  %v6355_v21 = vld [vmem:[%s9448_s8 + $0x4a4] ss:$8 sps:$4 sm:$0xff]  }
 0x5ba   : > { %3269 = vmatprep.subr.bf16.mxu0 %v6289_v11  ;;  %3515 = vmatprep.subr.bf16.mxu1 %v6304_v33  ;;  %v6370_v11 = vld [vmem:[%s9448_s8 + $0x584] ss:$8 sps:$4 sm:$0xff]   ;;  %v6353_v33 = vld [vmem:[%s9448_s8 + $0x4a0] ss:$8 sps:$4 sm:$0xff]  }
 0x5bd   : > { %3270 = vmatpush1.bf16.msra.mxu0 %v6287_v41  ;;  %3516 = vmatpush1.bf16.msra.mxu1 %v6302_v1  ;;  %v6368_v41 = vld [vmem:[%s9448_s8 + $0x580] ss:$8 sps:$4 sm:$0xff]   ;;  %v6361_v1 = vld [vmem:[%s9448_s8 + $0x494] ss:$8 sps:$4 sm:$0xff]  }
 0x5be   : > { %3271 = vmatprep.subr.bf16.mxu0 %v6295_v2  ;;  %3517 = vmatprep.subr.bf16.mxu1 %v6310_v3  ;;  %v6376_v2 = vld [vmem:[%s9448_s8 + $0x774] ss:$8 sps:$4 sm:$0xff]   ;;  %v3312_v3 = vpack.c.bf16 %v7794_v59, %v7778_v49  ;;  %v6382_v49 = vld [vmem:[%s9448_s8 + $0x764] ss:$8 sps:$4 sm:$0xff]   ;;  %v3797_v59 = vpack.c.bf16 %v7868_v17, %v7852_v10  ;;  %v6371_v17 = vld [vmem:[%s9448_s8 + $0x670] ss:$8 sps:$4 sm:$0xff]  }
 0x5bf   : > { %v6388_v10 = vld [vmem:[%s9448_s8 + $0x754] ss:$8 sps:$4 sm:$0xff]  }
 0x5c1   : > { %3272 = vmatpush1.bf16.msra.mxu0 %v6293_v5  ;;  %3518 = vmatpush1.bf16.msra.mxu1 %v6308_v8  ;;  %v6359_v5 = vld [vmem:[%s9448_s8 + $0x490] ss:$8 sps:$4 sm:$0xff]  }
 0x5c2   : > { %3273 = vmatprep.subr.bf16.mxu0 %v6301_v9  ;;  %3519 = vmatprep.subr.bf16.mxu1 %v6316_v47  ;;  %v6374_v8 = vld [vmem:[%s9448_s8 + $0x770] ss:$8 sps:$4 sm:$0xff]   ;;  %v6367_v9 = vld [vmem:[%s9448_s8 + $0x484] ss:$8 sps:$4 sm:$0xff]   ;;  %v6365_v47 = vld [vmem:[%s9448_s8 + $0x480] ss:$8 sps:$4 sm:$0xff]  }
 0x5c5   : > { %3274 = vmatpush1.bf16.msra.mxu0 %v6299_v45  ;;  %3520 = vmatpush1.bf16.msra.mxu1 %v6314_v60  ;;  %v6380_v45 = vld [vmem:[%s9448_s8 + $0x760] ss:$8 sps:$4 sm:$0xff]   ;;  %v6373_v60 = vld [vmem:[%s9448_s8 + $0x674] ss:$8 sps:$4 sm:$0xff]  }
 0x5c6   : > { %3275 = vmatprep.subr.bf16.mxu0 %v6307_v4  ;;  %3521 = vmatprep.subr.bf16.mxu1 %v6322_v20  ;;  %v6386_v4 = vld [vmem:[%s9448_s8 + $0x750] ss:$8 sps:$4 sm:$0xff]   ;;  %v6379_v20 = vld [vmem:[%s9448_s8 + $0x664] ss:$8 sps:$4 sm:$0xff]  }
 0x5c9   : > { %3276 = vmatpush1.bf16.msra.mxu0 %v6305_v22  ;;  %3522 = vmatpush1.bf16.msra.mxu1 %v6320_v56  ;;  %v6394_v22 = vld [vmem:[%s9448_s8 + $0x744] ss:$8 sps:$4 sm:$0xff]   ;;  %v3555_v56 = vpack.c.bf16 %v7836_v6, %v7818_v61 }
 0x5ca   : > { %3277 = vmatprep.subr.bf16.mxu0 %v6313_v27  ;;  %3523 = vmatprep.subr.bf16.mxu1 %v6328_v12  ;;  %v6377_v27 = vld [vmem:[%s9448_s8 + $0x660] ss:$8 sps:$4 sm:$0xff]   ;;  %v6391_v61 = vld [vmem:[%s9448_s8 + $0x644] ss:$8 sps:$4 sm:$0xff]  }
 0x5cb   : > { %v6392_v12 = vld [vmem:[%s9448_s8 + $0x740] ss:$8 sps:$4 sm:$0xff]   ;;  %v6406_v6 = vld [vmem:[%s9448_s8 + $0x724] ss:$8 sps:$4 sm:$0xff]  }
 0x5cd   : > { %3278 = vmatpush1.bf16.msra.mxu0 %v6311_v13  ;;  %3524 = vmatpush2.bf16.msra.mxu1 %v6326_v15  ;;  %v6385_v13 = vld [vmem:[%s9448_s8 + $0x654] ss:$8 sps:$4 sm:$0xff]   ;;  %v6389_v15 = vld [vmem:[%s9448_s8 + $0x640] ss:$8 sps:$4 sm:$0xff]  }
 0x5ce   : > { %3279 = vmatprep.subr.bf16.mxu0 %v6319_v16  ;;  %3525 = vmatprep.subr.bf16.mxu1 %v6334_v19  ;;  %v6404_v16 = vld [vmem:[%s9448_s8 + $0x720] ss:$8 sps:$4 sm:$0xff]   ;;  %v6397_v19 = vld [vmem:[%s9448_s8 + $0x634] ss:$8 sps:$4 sm:$0xff]  }
 0x5d1   : > { %3280 = vmatpush1.bf16.msra.mxu0 %v6317_v24  ;;  %3526 = vmatpush2.bf16.msra.mxu1 %v6332_v25  ;;  %v6412_v24 = vld [vmem:[%s9448_s8 + $0x714] ss:$8 sps:$4 sm:$0xff]   ;;  %v6395_v25 = vld [vmem:[%s9448_s8 + $0x630] ss:$8 sps:$4 sm:$0xff]  }
 0x5d2   : > { %3281 = vmatprep.subr.bf16.mxu0 %v6325_v26  ;;  %3527 = vmatprep.subr.bf16.mxu1 %v6340_v28  ;;  %v6410_v26 = vld [vmem:[%s9448_s8 + $0x710] ss:$8 sps:$4 sm:$0xff]   ;;  %v6403_v28 = vld [vmem:[%s9448_s8 + $0x624] ss:$8 sps:$4 sm:$0xff]  }
 0x5d5   : > { %3282 = vmatpush2.bf16.msra.mxu0 %v6323_v29  ;;  %3528 = vmatpush2.bf16.msra.mxu1 %v6338_v30  ;;  %v6418_v29 = vld [vmem:[%s9448_s8 + $0x704] ss:$8 sps:$4 sm:$0xff]   ;;  %v6401_v30 = vld [vmem:[%s9448_s8 + $0x620] ss:$8 sps:$4 sm:$0xff]  }
 0x5d6   : > { %3283 = vmatprep.subr.bf16.mxu0 %v6331_v31  ;;  %3529 = vmatprep.subr.bf16.mxu1 %v6346_v55  ;;  %v6416_v31 = vld [vmem:[%s9448_s8 + $0x700] ss:$8 sps:$4 sm:$0xff]   ;;  %v6409_v55 = vld [vmem:[%s9448_s8 + $0x614] ss:$8 sps:$4 sm:$0xff]  }
 0x5d9   : > { %3284 = vmatpush2.bf16.msra.mxu0 %v6329_v35  ;;  %3530 = vmatpush2.bf16.msra.mxu1 %v6344_v18  ;;  %v6424_v35 = vld [vmem:[%s9448_s8 + $0x7f4] ss:$8 sps:$4 sm:$0xff]   ;;  %v6407_v18 = vld [vmem:[%s9448_s8 + $0x610] ss:$8 sps:$4 sm:$0xff]  }
 0x5da   : > { %3285 = vmatprep.subr.bf16.mxu0 %v6337_v37  ;;  %3531 = vmatprep.subr.bf16.mxu1 %v6352_v38  ;;  %v6422_v37 = vld [vmem:[%s9448_s8 + $0x7f0] ss:$8 sps:$4 sm:$0xff]   ;;  %v6415_v38 = vld [vmem:[%s9448_s8 + $0x604] ss:$8 sps:$4 sm:$0xff]  }
 0x5dd   : > { %3286 = vmatpush2.bf16.msra.mxu0 %v6335_v42  ;;  %3532 = vmatpush2.bf16.msra.mxu1 %v6350_v43  ;;  %v6430_v42 = vld [vmem:[%s9448_s8 + $0x7e4] ss:$8 sps:$4 sm:$0xff]   ;;  %v6413_v43 = vld [vmem:[%s9448_s8 + $0x600] ss:$8 sps:$4 sm:$0xff]  }
 0x5de   : > { %3287 = vmatprep.subr.bf16.mxu0 %v6343_v44  ;;  %3533 = vmatprep.subr.bf16.mxu1 %v6358_v46  ;;  %v6428_v44 = vld [vmem:[%s9448_s8 + $0x7e0] ss:$8 sps:$4 sm:$0xff]   ;;  %v6421_v46 = vld [vmem:[%s9448_s8 + $0x6f4] ss:$8 sps:$4 sm:$0xff]  }
 0x5e1   : > { %3288 = vmatpush2.bf16.msra.mxu0 %v6341_v51  ;;  %3534 = vmatpush2.bf16.msra.mxu1 %v6356_v54  ;;  %v6436_v51 = vld [vmem:[%s9448_s8 + $0x7d4] ss:$8 sps:$4 sm:$0xff]   ;;  %v6419_v54 = vld [vmem:[%s9448_s8 + $0x6f0] ss:$8 sps:$4 sm:$0xff]  }
 0x5e2   : > { %3289 = vmatprep.subr.bf16.mxu0 %v6349_v58  ;;  %3535 = vmatprep.subr.bf16.mxu1 %v6364_v62  ;;  %v6434_v58 = vld [vmem:[%s9448_s8 + $0x7d0] ss:$8 sps:$4 sm:$0xff]   ;;  %v6427_v62 = vld [vmem:[%s9448_s8 + $0x6e4] ss:$8 sps:$4 sm:$0xff]  }
 0x5e5   : > { %3290 = vmatpush2.bf16.msra.mxu0 %v6347_v63  ;;  %3536 = vmatpush2.bf16.msra.mxu1 %v6362_v0  ;;  %v6442_v63 = vld [vmem:[%s9448_s8 + $0x7c4] ss:$8 sps:$4 sm:$0xff]   ;;  %v6425_v0 = vld [vmem:[%s9448_s8 + $0x6e0] ss:$8 sps:$4 sm:$0xff]  }
 0x5e6   : > { %3291 = vmatprep.subr.bf16.mxu0 %v6355_v21  ;;  %3537 = vmatprep.subr.bf16.mxu1 %v6370_v11  ;;  %v6440_v21 = vld [vmem:[%s9448_s8 + $0x7c0] ss:$8 sps:$4 sm:$0xff]   ;;  %v6433_v11 = vld [vmem:[%s9448_s8 + $0x6d4] ss:$8 sps:$4 sm:$0xff]  }
 0x5e9   : > { %3292 = vmatpush2.bf16.msra.mxu0 %v6353_v33  ;;  %3538 = vmatpush2.bf16.msra.mxu1 %v6368_v41  ;;  %v6448_v33 = vld [vmem:[%s9448_s8 + $0x7b4] ss:$8 sps:$4 sm:$0xff]   ;;  %v6431_v41 = vld [vmem:[%s9448_s8 + $0x6d0] ss:$8 sps:$4 sm:$0xff]  }
 0x5ea   : > { %3293 = vmatprep.subr.bf16.mxu0 %v6361_v1  ;;  %3991 = vmatprep.subr.bf16.mxu1 %v6376_v2  ;;  %v6446_v1 = vld [vmem:[%s9448_s8 + $0x7b0] ss:$8 sps:$4 sm:$0xff]   ;;  %v6439_v2 = vld [vmem:[%s9448_s8 + $0x6c4] ss:$8 sps:$4 sm:$0xff]  }
 0x5ec   : > { %3540 = vmatmul.mubr.bf16.vlgmr.msra.gmra.mxu1 %v3312_v3  ;;  %v6454_v3 = vld [vmem:[%s9448_s8 + $0x7a4] ss:$8 sps:$4 sm:$0xff]  }
 0x5ed   : > { %3294 = vmatpush2.bf16.msra.mxu0 %v6359_v5  ;;  %3992 = vmatpush1.bf16.msra.mxu1 %v6374_v8  ;;  %v6437_v5 = vld [vmem:[%s9448_s8 + $0x6c0] ss:$8 sps:$4 sm:$0xff]  }
 0x5ee   : > { %3295 = vmatprep.subr.bf16.mxu0 %v6367_v9  ;;  %3993 = vmatprep.subr.bf16.mxu1 %v6382_v49  ;;  %v6452_v8 = vld [vmem:[%s9448_s8 + $0x7a0] ss:$8 sps:$4 sm:$0xff]   ;;  %v6445_v9 = vld [vmem:[%s9448_s8 + $0x6b4] ss:$8 sps:$4 sm:$0xff]  }
 0x5ef   : > { %4023 = vmatprep.mubr.bf16.mxu1 %v3797_v59  ;;  %v6460_v49 = vld [vmem:[%s9448_s8 + $0x794] ss:$8 sps:$4 sm:$0xff]   ;;  %v6443_v59 = vld [vmem:[%s9448_s8 + $0x6b0] ss:$8 sps:$4 sm:$0xff]  }
 0x5f1   : > { %3296 = vmatpush2.bf16.msra.mxu0 %v6365_v47  ;;  %3994 = vmatpush1.bf16.msra.mxu1 %v6380_v45  ;;  %v6458_v47 = vld [vmem:[%s9448_s8 + $0x790] ss:$8 sps:$4 sm:$0xff]   ;;  %v6451_v45 = vld [vmem:[%s9448_s8 + $0x6a4] ss:$8 sps:$4 sm:$0xff]  }
 0x5f2   : > { %3749 = vmatprep.subr.bf16.mxu0 %v6373_v60  ;;  %3995 = vmatprep.subr.bf16.mxu1 %v6388_v10  ;;  %v6466_v60 = vld [vmem:[%s9448_s8 + $0x784] ss:$8 sps:$4 sm:$0xff]   ;;  %v6449_v10 = vld [vmem:[%s9448_s8 + $0x6a0] ss:$8 sps:$4 sm:$0xff]  }
 0x5f4   : > { %3298 = vmatmul.mubr.bf16.vlgmr.msra.gmra.mxu0 %v3070_v40  ;;  %v6398_v40 = vld [vmem:[%s9448_s8 + $0x730] ss:$8 sps:$4 sm:$0xff]  }
 0x5f5   : > { %3750 = vmatpush1.bf16.msra.mxu0 %v6371_v17  ;;  %3996 = vmatpush1.bf16.msra.mxu1 %v6386_v4  ;;  %v6464_v17 = vld [vmem:[%s9448_s8 + $0x780] ss:$8 sps:$4 sm:$0xff]   ;;  %v6457_v4 = vld [vmem:[%s9448_s8 + $0x694] ss:$8 sps:$4 sm:$0xff]  }
 0x5f6   : > { %3751 = vmatprep.subr.bf16.mxu0 %v6379_v20  ;;  %3997 = vmatprep.subr.bf16.mxu1 %v6394_v22  ;;  %v3796_v20 = vpack.c.bf16 %v7860_v14, %v7844_v23  ;;  %v6455_v22 = vld [vmem:[%s9448_s8 + $0x690] ss:$8 sps:$4 sm:$0xff]   ;;  %v6469_v23 = vld [vmem:[%s9448_s8 + $0x874] ss:$8 sps:$4 sm:$0xff]   ;;  %v2108_v14 = vpop.f32.mrf.mxu1 }
 0x5f7   : > { %3781 = vmatprep.mubr.bf16.mxu0 %v3555_v56  ;;  %v6463_v56 = vld [vmem:[%s9448_s8 + $0x684] ss:$8 sps:$4 sm:$0xff]  }
 0x5f9   : > { %3752 = vmatpush1.bf16.msra.mxu0 %v6377_v27  ;;  %3998 = vmatpush1.bf16.msra.mxu1 %v6392_v12  ;;  %v6461_v27 = vld [vmem:[%s9448_s8 + $0x680] ss:$8 sps:$4 sm:$0xff]   ;;  %v4039_v12 = vpack.c.bf16 %v2108_v14, %v7890_v53  ;;  %v6475_v53 = vld [vmem:[%s9448_s8 + $0x854] ss:$8 sps:$4 sm:$0xff]   ;;  %v6587_v14 = vld [vmem:[%s9448_s8 + $0x84] ss:$8 sps:$4 sm:$0xff]  }
 0x5fa   : > { %3753 = vmatprep.subr.bf16.mxu0 %v6385_v13  ;;  %3999 = vmatprep.subr.bf16.mxu1 %v6400_v32  ;;  %v6467_v13 = vld [vmem:[%s9448_s8 + $0x870] ss:$8 sps:$4 sm:$0xff]   ;;  %v6472_v32 = vld [vmem:[%s9448_s8 + $0x864] ss:$8 sps:$4 sm:$0xff]  }
 0x5fd   : > { %3754 = vmatpush1.bf16.msra.mxu0 %v6383_v39  ;;  %4000 = vmatpush1.bf16.msra.mxu1 %v6398_v40  ;;  %v6470_v39 = vld [vmem:[%s9448_s8 + $0x860] ss:$8 sps:$4 sm:$0xff]   ;;  %v6473_v40 = vld [vmem:[%s9448_s8 + $0x850] ss:$8 sps:$4 sm:$0xff]  }
 0x5fe   : > { %3755 = vmatprep.subr.bf16.mxu0 %v6391_v61  ;;  %4001 = vmatprep.subr.bf16.mxu1 %v6406_v6  ;;  %v8345_v61 = vld [vmem:[%s9448_s8 + $0x830] ss:$8 sps:$4 sm:$0xff]   ;;  %v8351_v6 = vld [vmem:[%s9448_s8 + $0x824] ss:$8 sps:$4 sm:$0xff]  }
 0x601   : > { %3756 = vmatpush1.bf16.msra.mxu0 %v6389_v15  ;;  %4002 = vmatpush1.bf16.msra.mxu1 %v6404_v16  ;;  %v8357_v15 = vld [vmem:[%s9448_s8 + $0x820] ss:$8 sps:$4 sm:$0xff]   ;;  %v8363_v16 = vld [vmem:[%s9448_s8 + $0x814] ss:$8 sps:$4 sm:$0xff]  }
 0x602   : > { %3757 = vmatprep.subr.bf16.mxu0 %v6397_v19  ;;  %4003 = vmatprep.subr.bf16.mxu1 %v6412_v24  ;;  %v8369_v19 = vld [vmem:[%s9448_s8 + $0x810] ss:$8 sps:$4 sm:$0xff]   ;;  %v8375_v24 = vld [vmem:[%s9448_s8 + $0x804] ss:$8 sps:$4 sm:$0xff]  }
 0x605   : > { %3758 = vmatpush1.bf16.msra.mxu0 %v6395_v25  ;;  %4004 = vmatpush1.bf16.msra.mxu1 %v6410_v26  ;;  %v8381_v25 = vld [vmem:[%s9448_s8 + $0x800] ss:$8 sps:$4 sm:$0xff]   ;;  %v8387_v26 = vld [vmem:[%s9448_s8 + $0x8f4] ss:$8 sps:$4 sm:$0xff]  }
 0x606   : > { %3759 = vmatprep.subr.bf16.mxu0 %v6403_v28  ;;  %4005 = vmatprep.subr.bf16.mxu1 %v6418_v29  ;;  %v8393_v28 = vld [vmem:[%s9448_s8 + $0x8f0] ss:$8 sps:$4 sm:$0xff]   ;;  %v8399_v29 = vld [vmem:[%s9448_s8 + $0x8e4] ss:$8 sps:$4 sm:$0xff]  }
 0x609   : > { %3760 = vmatpush1.bf16.msra.mxu0 %v6401_v30  ;;  %4006 = vmatpush1.bf16.msra.mxu1 %v6416_v31  ;;  %v8405_v30 = vld [vmem:[%s9448_s8 + $0x8e0] ss:$8 sps:$4 sm:$0xff]   ;;  %v8411_v31 = vld [vmem:[%s9448_s8 + $0x8d4] ss:$8 sps:$4 sm:$0xff]  }
 0x60a   : > { %3761 = vmatprep.subr.bf16.mxu0 %v6409_v55  ;;  %4007 = vmatprep.subr.bf16.mxu1 %v6424_v35  ;;  %v8417_v55 = vld [vmem:[%s9448_s8 + $0x8d0] ss:$8 sps:$4 sm:$0xff]   ;;  %v8423_v35 = vld [vmem:[%s9448_s8 + $0x8c4] ss:$8 sps:$4 sm:$0xff]  }
 0x60d   : > { %3762 = vmatpush1.bf16.msra.mxu0 %v6407_v18  ;;  %4008 = vmatpush2.bf16.msra.mxu1 %v6422_v37  ;;  %v8429_v18 = vld [vmem:[%s9448_s8 + $0x8c0] ss:$8 sps:$4 sm:$0xff]   ;;  %v8435_v37 = vld [vmem:[%s9448_s8 + $0x8b4] ss:$8 sps:$4 sm:$0xff]  }
 0x60e   : > { %3763 = vmatprep.subr.bf16.mxu0 %v6415_v38  ;;  %4009 = vmatprep.subr.bf16.mxu1 %v6430_v42  ;;  %v8441_v38 = vld [vmem:[%s9448_s8 + $0x8b0] ss:$8 sps:$4 sm:$0xff]   ;;  %v8447_v42 = vld [vmem:[%s9448_s8 + $0x8a4] ss:$8 sps:$4 sm:$0xff]  }
 0x611   : > { %3764 = vmatpush1.bf16.msra.mxu0 %v6413_v43  ;;  %4010 = vmatpush2.bf16.msra.mxu1 %v6428_v44  ;;  %v8453_v43 = vld [vmem:[%s9448_s8 + $0x8a0] ss:$8 sps:$4 sm:$0xff]   ;;  %v8459_v44 = vld [vmem:[%s9448_s8 + $0x894] ss:$8 sps:$4 sm:$0xff]  }
 0x612   : > { %3765 = vmatprep.subr.bf16.mxu0 %v6421_v46  ;;  %4011 = vmatprep.subr.bf16.mxu1 %v6436_v51  ;;  %v8465_v46 = vld [vmem:[%s9448_s8 + $0x890] ss:$8 sps:$4 sm:$0xff]   ;;  %v8471_v51 = vld [vmem:[%s9448_s8 + $0x884] ss:$8 sps:$4 sm:$0xff]  }
 0x613   : > { %9463 = vst [vmem:[#allocation2_spill] sm:$0xff] %v8471_v51 }
 0x615   : > { %3766 = vmatpush2.bf16.msra.mxu0 %v6419_v54  ;;  %4012 = vmatpush2.bf16.msra.mxu1 %v6434_v58  ;;  %v8477_v54 = vld [vmem:[%s9448_s8 + $0x880] ss:$8 sps:$4 sm:$0xff]   ;;  %v6557_v58 = vld [vmem:[%s9448_s8 + $0x74] ss:$8 sps:$4 sm:$0xff]  }
 0x616   : > { %3767 = vmatprep.subr.bf16.mxu0 %v6427_v62  ;;  %4013 = vmatprep.subr.bf16.mxu1 %v6442_v63  ;;  %9464 = vst [vmem:[#allocation3_spill] sm:$0xff] %v8477_v54  ;;  %v6558_v62 = vld [vmem:[%s9448_s8 + $0x70] ss:$8 sps:$4 sm:$0xff]   ;;  %v6559_v63 = vld [vmem:[%s9448_s8 + $0x64] ss:$8 sps:$4 sm:$0xff]  }
 0x619   : > { %3768 = vmatpush2.bf16.msra.mxu0 %v6425_v0  ;;  %4014 = vmatpush2.bf16.msra.mxu1 %v6440_v21  ;;  %v6560_v0 = vld [vmem:[%s9448_s8 + $0x60] ss:$8 sps:$4 sm:$0xff]  }
 0x61a   : > { %3769 = vmatprep.subr.bf16.mxu0 %v6433_v11  ;;  %4015 = vmatprep.subr.bf16.mxu1 %v6448_v33  ;;  %v6564_v21 = vld [vmem:[%s9448_s8 + $0x40] ss:$8 sps:$4 sm:$0xff]   ;;  %v6565_v11 = vld [vmem:[%s9448_s8 + $0x34] ss:$8 sps:$4 sm:$0xff]   ;;  %v6566_v33 = vld [vmem:[%s9448_s8 + $0x30] ss:$8 sps:$4 sm:$0xff]  }
 0x61d   : > { %3770 = vmatpush2.bf16.msra.mxu0 %v6431_v41  ;;  %4016 = vmatpush2.bf16.msra.mxu1 %v6446_v1  ;;  %v6567_v41 = vld [vmem:[%s9448_s8 + $0x24] ss:$8 sps:$4 sm:$0xff]   ;;  %v6568_v1 = vld [vmem:[%s9448_s8 + $0x20] ss:$8 sps:$4 sm:$0xff]  }
 0x61e   : > { %3771 = vmatprep.subr.bf16.mxu0 %v6439_v2  ;;  %4017 = vmatprep.subr.bf16.mxu1 %v6454_v3  ;;  %v6569_v2 = vld [vmem:[%s9448_s8 + $0x14] ss:$8 sps:$4 sm:$0xff]   ;;  %v6570_v3 = vld [vmem:[%s9448_s8 + $0x10] ss:$8 sps:$4 sm:$0xff]  }
 0x621   : > { %3772 = vmatpush2.bf16.msra.mxu0 %v6437_v5  ;;  %4018 = vmatpush2.bf16.msra.mxu1 %v6452_v8  ;;  %v6571_v5 = vld [vmem:[%s9448_s8 + $0x4] ss:$8 sps:$4 sm:$0xff]   ;;  %v6572_v8 = vld [vmem:[%s9448_s8] ss:$8 sps:$4 sm:$0xff]  }
 0x622   : > { %3773 = vmatprep.subr.bf16.mxu0 %v6445_v9  ;;  %4019 = vmatprep.subr.bf16.mxu1 %v6460_v49  ;;  %v6573_v9 = vld [vmem:[%s9448_s8 + $0xf4] ss:$8 sps:$4 sm:$0xff]   ;;  %v6574_v49 = vld [vmem:[%s9448_s8 + $0xf0] ss:$8 sps:$4 sm:$0xff]  }
 0x625   : > { %3774 = vmatpush2.bf16.msra.mxu0 %v6443_v59  ;;  %4020 = vmatpush2.bf16.msra.mxu1 %v6458_v47  ;;  %v6575_v59 = vld [vmem:[%s9448_s8 + $0xe4] ss:$8 sps:$4 sm:$0xff]   ;;  %v6576_v47 = vld [vmem:[%s9448_s8 + $0xe0] ss:$8 sps:$4 sm:$0xff]  }
 0x626   : > { %3775 = vmatprep.subr.bf16.mxu0 %v6451_v45  ;;  %4021 = vmatprep.subr.bf16.mxu1 %v6466_v60  ;;  %v6577_v45 = vld [vmem:[%s9448_s8 + $0xd4] ss:$8 sps:$4 sm:$0xff]   ;;  %v6578_v60 = vld [vmem:[%s9448_s8 + $0xd0] ss:$8 sps:$4 sm:$0xff]  }
 0x629   : > { %3776 = vmatpush2.bf16.msra.mxu0 %v6449_v10  ;;  %4022 = vmatpush2.bf16.msra.mxu1 %v6464_v17  ;;  %v6579_v10 = vld [vmem:[%s9448_s8 + $0xc4] ss:$8 sps:$4 sm:$0xff]   ;;  %v6580_v17 = vld [vmem:[%s9448_s8 + $0xc0] ss:$8 sps:$4 sm:$0xff]  }
 0x62a   : > { %3777 = vmatprep.subr.bf16.mxu0 %v6457_v4  ;;  %v6581_v4 = vld [vmem:[%s9448_s8 + $0xb4] ss:$8 sps:$4 sm:$0xff]  }
 0x62c   : > { %4024 = vmatmul.mubr.bf16.vlgmr.msra.gmra.mxu1 %v3796_v20  ;;  %v6582_v20 = vld [vmem:[%s9448_s8 + $0xb0] ss:$8 sps:$4 sm:$0xff]  }
 0x62d   : > { %3778 = vmatpush2.bf16.msra.mxu0 %v6455_v22  ;;  %4440 = vmatprep.mubr.bf16.mxu1 %v9457_v36  ;;  %v6583_v22 = vld [vmem:[%s9448_s8 + $0xa4] ss:$8 sps:$4 sm:$0xff]  }
 0x62e   : > { %3779 = vmatprep.subr.bf16.mxu0 %v6463_v56  ;;  %v6584_v56 = vld [vmem:[%s9448_s8 + $0xa0] ss:$8 sps:$4 sm:$0xff]  }
 0x631   : > { %3780 = vmatpush2.bf16.msra.mxu0 %v6461_v27  ;;  %v6585_v27 = vld [vmem:[%s9448_s8 + $0x94] ss:$8 sps:$4 sm:$0xff]  }
 0x632   : > { %4233 = vmatprep.subr.bf16.mxu0 %v6469_v23  ;;  %v6586_v23 = vld [vmem:[%s9448_s8 + $0x90] ss:$8 sps:$4 sm:$0xff]  }
 0x634   : > { %3782 = vmatmul.mubr.bf16.vlgmr.msra.gmra.mxu0 %v3554_v57  ;;  %v8339_v57 = vld [vmem:[%s9448_s8 + $0x834] ss:$8 sps:$4 sm:$0xff]  }
 0x635   : > { %4234 = vmatpush1.bf16.msra.mxu0 %v6467_v13  ;;  %4265 = vmatprep.mubr.bf16.mxu0 %v4039_v12  ;;  %v6588_v12 = vld [vmem:[%s9448_s8 + $0x80] ss:$8 sps:$4 sm:$0xff]   ;;  %v6589_v13 = vld [vmem:[%s9448_s8 + $0x374] ss:$8 sps:$4 sm:$0xff]  }
 0x636   : > { %4235 = vmatprep.subr.bf16.mxu0 %v6472_v32  ;;  %v2374_v32 = vpop.f32.mrf.mxu0 }
 0x639   : > { %4236 = vmatpush1.bf16.msra.mxu0 %v6470_v39  ;;  %v2577_v39 = vpop.f32.mrf.mxu1 }
 0x63a   : > { %4237 = vmatprep.subr.bf16.mxu0 %v6475_v53  ;;  %v2376_v53 = vpop.f32.mrf.mxu0 }
 0x63d   : > { %4238 = vmatpush1.bf16.msra.mxu0 %v6473_v40  ;;  %v2579_v40 = vpop.f32.mrf.mxu1 }
 0x63e   : > { %4239 = vmatprep.subr.bf16.mxu0 %v6478_v7  ;;  %v2378_v7 = vpop.f32.mrf.mxu0 }
 0x641   : > { %4240 = vmatpush1.bf16.msra.mxu0 %v8334_v52 }
 0x642   : > { %4241 = vmatprep.subr.bf16.mxu0 %v8339_v57 }
 0x645   : > { %4242 = vmatpush1.bf16.msra.mxu0 %v8345_v61 }
 0x646   : > { %4243 = vmatprep.subr.bf16.mxu0 %v8351_v6 }
 0x649   : > { %4244 = vmatpush1.bf16.msra.mxu0 %v8357_v15 }
 0x64a   : > { %4245 = vmatprep.subr.bf16.mxu0 %v8363_v16 }
 0x64d   : > { %4246 = vmatpush1.bf16.msra.mxu0 %v8369_v19 }
 0x64e   : > { %4247 = vmatprep.subr.bf16.mxu0 %v8375_v24 }
 0x651   : > { %4248 = vmatpush1.bf16.msra.mxu0 %v8381_v25 }
 0x652   : > { %4249 = vmatprep.subr.bf16.mxu0 %v8387_v26 }
 0x655   : > { %4250 = vmatpush2.bf16.msra.mxu0 %v8393_v28 }
 0x656   : > { %4251 = vmatprep.subr.bf16.mxu0 %v8399_v29 }
 0x659   : > { %4252 = vmatpush2.bf16.msra.mxu0 %v8405_v30 }
 0x65a   : > { %4253 = vmatprep.subr.bf16.mxu0 %v8411_v31 }
 0x65d   : > { %4254 = vmatpush2.bf16.msra.mxu0 %v8417_v55 }
 0x65e   : > { %4255 = vmatprep.subr.bf16.mxu0 %v8423_v35 }
 0x661   : > { %4256 = vmatpush2.bf16.msra.mxu0 %v8429_v18 }
 0x662   : > { %4257 = vmatprep.subr.bf16.mxu0 %v8435_v37 }
 0x665   : > { %4258 = vmatpush2.bf16.msra.mxu0 %v8441_v38 }
 0x666   : > { %4259 = vmatprep.subr.bf16.mxu0 %v8447_v42 }
 0x669   : > { %4260 = vmatpush2.bf16.msra.mxu0 %v8453_v43 }
 0x66a   : > { %4261 = vmatprep.subr.bf16.mxu0 %v8459_v44 }
 0x66d   : > { %4262 = vmatpush2.bf16.msra.mxu0 %v8465_v46 }
 0x66e   : > { %4263 = vmatprep.subr.bf16.mxu0 %v8471_v51 }
 0x671   : > { %4264 = vmatpush2.bf16.msra.mxu0 %v8477_v54 }
 0x672   : > { %4578 = vmatprep.subr.bf16.mxu0 %v6557_v58  ;;  %v2581_v58 = vpop.f32.mrf.mxu1 }
 0x674   : > { %4266 = vmatmul.mubr.bf16.vlgmr.msra.gmra.mxu0 %v4038_v50  ;;  %v6563_v50 = vld [vmem:[%s9448_s8 + $0x44] ss:$8 sps:$4 sm:$0xff]  }
 0x675   : > { %4579 = vmatpush1.bf16.msra.mxu0 %v6558_v62  ;;  %v2380_v62 = vpop.f32.mrf.mxu0 }
 0x676   : > { %4580 = vmatprep.subr.bf16.mxu0 %v6559_v63 }
 0x677   : > { %v2815_v63 = vpop.f32.mrf.mxu0 }
 0x679   : > { %4581 = vmatpush1.bf16.msra.mxu0 %v6560_v0  ;;  %v2583_v0 = vpop.f32.mrf.mxu1 }
 0x67a   : > { %4582 = vmatprep.subr.bf16.mxu0 %v6561_v48  ;;  %v2817_v48 = vpop.f32.mrf.mxu0 }
 0x67d   : > { %4583 = vmatpush1.bf16.msra.mxu0 %v6562_v34  ;;  %v3057_v34 = vpop.f32.mrf.mxu1 }
 0x67e   : > { %4584 = vmatprep.subr.bf16.mxu0 %v6563_v50  ;;  %v2819_v50 = vpop.f32.mrf.mxu0 }
 0x681   : > { %4585 = vmatpush1.bf16.msra.mxu0 %v6564_v21  ;;  %v3059_v21 = vpop.f32.mrf.mxu1 }
 0x682   : > { %4586 = vmatprep.subr.bf16.mxu0 %v6565_v11  ;;  %v2821_v11 = vpop.f32.mrf.mxu0 }
 0x685   : > { %4587 = vmatpush1.bf16.msra.mxu0 %v6566_v33  ;;  %v3061_v33 = vpop.f32.mrf.mxu1 }
 0x686   : > { %4588 = vmatprep.subr.bf16.mxu0 %v6567_v41 }
 0x689   : > { %4589 = vmatpush1.bf16.msra.mxu0 %v6568_v1  ;;  %v3063_v1 = vpop.f32.mrf.mxu1 }
 0x68a   : > { %4590 = vmatprep.subr.bf16.mxu0 %v6569_v2 }
 0x68d   : > { %4591 = vmatpush1.bf16.msra.mxu0 %v6570_v3 }
 0x68e   : > { %4592 = vmatprep.subr.bf16.mxu0 %v6571_v5 }
 0x691   : > { %4593 = vmatpush1.bf16.msra.mxu0 %v6572_v8 }
 0x692   : > { %4594 = vmatprep.subr.bf16.mxu0 %v6573_v9  ;;  %v2578_v9 = vadd.f32 %v2577_v39, %v2374_v32 }
 0x695   : > { %4595 = vmatpush2.bf16.msra.mxu0 %v6574_v49  ;;  %v2580_v49 = vadd.f32 %v2579_v40, %v2376_v53 }
 0x696   : > { %4596 = vmatprep.subr.bf16.mxu0 %v6575_v59  ;;  %v2824_v59 = vadd.f32 %v2815_v63, %v2578_v9  ;;  %v4285_v9 = vpop.permute.xlu1 %4284 }
 0x699   : > { %4597 = vmatpush2.bf16.msra.mxu0 %v6576_v47 }
 0x69a   : > { %4598 = vmatprep.subr.bf16.mxu0 %v6577_v45 }
 0x69d   : > { %4599 = vmatpush2.bf16.msra.mxu0 %v6578_v60  ;;  %v2582_v60 = vadd.f32 %v2581_v58, %v2378_v7 }
 0x69e   : > { %4600 = vmatprep.subr.bf16.mxu0 %v6579_v10  ;;  %v2825_v10 = vadd.f32 %v2817_v48, %v2580_v49  ;;  %v4290_v49 = vpop.permute.xlu0 %4289 }
 0x6a1   : > { %4601 = vmatpush2.bf16.msra.mxu0 %v6580_v17 }
 0x6a2   : > { %4602 = vmatprep.subr.bf16.mxu0 %v6581_v4  ;;  %v2584_v4 = vadd.f32 %v2583_v0, %v2380_v62 }
 0x6a5   : > { %4603 = vmatpush2.bf16.msra.mxu0 %v6582_v20  ;;  %v2826_v20 = vadd.f32 %v2819_v50, %v2582_v60 }
 0x6a6   : > { %4604 = vmatprep.subr.bf16.mxu0 %v6583_v22  ;;  %v3066_v22 = vadd.f32 %v3057_v34, %v2824_v59 }
 0x6a7   : > { %v3068_v36 = vadd.f32 %v3061_v33, %v2826_v20  ;;  %v4306_v20 = vpop.permute.xlu0 %4305 }
 0x6a9   : > { %4605 = vmatpush2.bf16.msra.mxu0 %v6584_v56 }
 0x6aa   : > { %4606 = vmatprep.subr.bf16.mxu0 %v6585_v27  ;;  %v3067_v27 = vadd.f32 %v3059_v21, %v2825_v10 }
 0x6ac   : > { %v3541_v3 = vpop.f32.mrf.mxu1 }
 0x6ad   : > { %4607 = vmatpush2.bf16.msra.mxu0 %v6586_v23  ;;  %v2827_v23 = vadd.f32 %v2821_v11, %v2584_v4  ;;  %v4301_v4 = vpop.permute.xlu1 %4300 }
 0x6ae   : > { %4608 = vmatprep.subr.bf16.mxu0 %v6587_v14  ;;  %v3543_v8 = vpop.f32.mrf.mxu1 }
 0x6af   : > { %v3069_v51 = vadd.f32 %v3063_v1, %v2827_v23 }
 0x6b0   : > { %v3545_v45 = vpop.f32.mrf.mxu1 }
 0x6b1   : > { %4609 = vmatpush2.bf16.msra.mxu0 %v6588_v12 }
 0x6b2   : > { %4672 = vmatprep.subr.bf16.mxu0 %v6589_v13  ;;  %v3547_v56 = vpop.f32.mrf.mxu1 }
 0x6b4   : > { %v3299_v41 = vpop.f32.mrf.mxu0 }
 0x6b5   : > { %v3308_v14 = vadd.f32 %v3299_v41, %v3066_v22 }
 0x6b6   : > { %v3301_v2 = vpop.f32.mrf.mxu0 }
 0x6b7   : > { %v3309_v54 = vadd.f32 %v3301_v2, %v3067_v27  ;;  %v3550_v39 = vadd.f32 %v3541_v3, %v3308_v14 }
 0x6b8   : > { %v3303_v5 = vpop.f32.mrf.mxu0 }
 0x6b9   : > { %v3310_v32 = vadd.f32 %v3303_v5, %v3068_v36  ;;  %v3551_v63 = vadd.f32 %v3543_v8, %v3309_v54 }
 0x6ba   : > { %v3305_v47 = vpop.f32.mrf.mxu0 }
 0x6bb   : > { %v3311_v7 = vadd.f32 %v3305_v47, %v3069_v51  ;;  %v3552_v48 = vadd.f32 %v3545_v45, %v3310_v32 }
 0x6bd   : > { %v3553_v50 = vadd.f32 %v3547_v56, %v3311_v7  ;;  %v6590_v7 = vld [vmem:[%s9448_s8 + $0x174] ss:$8 sps:$4 sm:$0xff]  }
 0x6ec   : > { %v4025_v13 = vpop.f32.mrf.mxu1 }
 0x6ee   : > { %v4027_v40 = vpop.f32.mrf.mxu1 }
 0x6f0   : > { %v4029_v34 = vpop.f32.mrf.mxu1 }
 0x6f2   : > { %v4031_v1 = vpop.f32.mrf.mxu1 }
 0x6f4   : > { %v3783_v17 = vpop.f32.mrf.mxu0 }
 0x6f5   : > { %v3792_v58 = vadd.f32 %v3783_v17, %v3550_v39 }
 0x6f6   : > { %v3785_v12 = vpop.f32.mrf.mxu0 }
 0x6f7   : > { %v3793_v62 = vadd.f32 %v3785_v12, %v3551_v63  ;;  %v4034_v11 = vadd.f32 %v4025_v13, %v3792_v58  ;;  %v6515_v63 = vld [vmem:[%s9452_s12] sm:$0xff]   ;;  %v9465_v58 = vmov 0  }
 0x6f8   : > { %v3787_v53 = vpop.f32.mrf.mxu0 }
 0x6f9   : > { %v3794_v21 = vadd.f32 %v3787_v53, %v3552_v48  ;;  %v4035_v33 = vadd.f32 %v4027_v40, %v3793_v62  ;;  %v6591_v48 = vld [vmem:[%s9448_s8 + $0x170] ss:$8 sps:$4 sm:$0xff]   ;;  %v6592_v62 = vld [vmem:[%s9448_s8 + $0x164] ss:$8 sps:$4 sm:$0xff]  }
 0x6fa   : > { %v3789_v0 = vpop.f32.mrf.mxu0 }
 0x6fb   : > { %v3795_v2 = vadd.f32 %v3789_v0, %v3553_v50  ;;  %v4036_v5 = vadd.f32 %v4029_v34, %v3794_v21  ;;  %v6516_v0 = vld [vmem:[%s9452_s12 + $0x8] sm:$0xff]   ;;  %v6594_v50 = vld [vmem:[%s9448_s8 + $0x154] ss:$8 sps:$4 sm:$0xff]   ;;  %v6595_v21 = vld [vmem:[%s9448_s8 + $0x150] ss:$8 sps:$4 sm:$0xff]  }
 0x6fc   : > { %v6593_v34 = vld [vmem:[%s9448_s8 + $0x160] ss:$8 sps:$4 sm:$0xff]  }
 0x6fd   : > { %v4037_v51 = vadd.f32 %v4031_v1, %v3795_v2  ;;  %v6600_v2 = vld [vmem:[%s9448_s8 + $0x124] ss:$8 sps:$4 sm:$0xff]   ;;  %v6518_v1 = vld [vmem:[%s9452_s12 + $0x18] sm:$0xff]  }
 0x734   : > { %v4267_v41 = vpop.f32.mrf.mxu0 }
 0x735   : > { %v4276_v36 = vadd.f32 %v4267_v41, %v4034_v11  ;;  %v6596_v11 = vld [vmem:[%s9448_s8 + $0x144] ss:$8 sps:$4 sm:$0xff]   ;;  %v6517_v41 = vld [vmem:[%s9452_s12 + $0x10] sm:$0xff]  }
 0x736   : > { %v4269_v3 = vpop.f32.mrf.mxu0 }
 0x737   : > { %v4277_v59 = vadd.f32 %v4269_v3, %v4035_v33  ;;  %v4292_v45 = vmul.f32 %v4285_v9, %v4276_v36  ;;  %v6599_v33 = vld [vmem:[%s9448_s8 + $0x130] ss:$8 sps:$4 sm:$0xff]   ;;  %v6601_v36 = vld [vmem:[%s9448_s8 + $0x120] ss:$8 sps:$4 sm:$0xff]   ;;  %v6602_v3 = vld [vmem:[%s9448_s8 + $0x114] ss:$8 sps:$4 sm:$0xff]  }
 0x738   : > { %v4271_v54 = vpop.f32.mrf.mxu0 }
 0x739   : > { %v4293_v8 = vmul.f32 %v4285_v9, %v4277_v59  ;;  %v4278_v47 = vadd.f32 %v4271_v54, %v4036_v5  ;;  %v4308_v23 = vadd.f32 %v4301_v4, %v4292_v45  ;;  %v6597_v9 = vld [vmem:[%s9448_s8 + $0x140] ss:$8 sps:$4 sm:$0xff]   ;;  %v6603_v5 = vld [vmem:[%s9448_s8 + $0x110] ss:$8 sps:$4 sm:$0xff]   ;;  %v6604_v59 = vld [vmem:[%s9448_s8 + $0x104] ss:$8 sps:$4 sm:$0xff]  }
 0x73a   : > { %v4273_v60 = vpop.f32.mrf.mxu0  ;;  %v6519_v54 = vld [vmem:[%s9452_s12 + $0x20] sm:$0xff]  }
 0x73b   : > { %v4294_v10 = vmul.f32 %v4290_v49, %v4278_v47  ;;  %v4279_v17 = vadd.f32 %v4273_v60, %v4037_v51  ;;  %v4309_v22 = vadd.f32 %v4301_v4, %v4293_v8  ;;  %v4312_v39 = vmax.f32 %v4308_v23, 0.0  ;;  %v6605_v51 = vld [vmem:[%s9448_s8 + $0x100] ss:$8 sps:$4 sm:$0xff]   ;;  %v6606_v8 = vld [vmem:[%s9448_s8 + $0x1f4] ss:$8 sps:$4 sm:$0xff]  }
 0x73c   : > { %v6607_v47 = vld [vmem:[%s9448_s8 + $0x1f0] ss:$8 sps:$4 sm:$0xff]   ;;  %v6608_v45 = vld [vmem:[%s9448_s8 + $0x1e4] ss:$8 sps:$4 sm:$0xff]  }
 0x73d   : > { %v4310_v56 = vadd.f32 %v4306_v20, %v4294_v10  ;;  %v4295_v27 = vmul.f32 %v4290_v49, %v4279_v17  ;;  %v4313_v13 = vmax.f32 %v4309_v22, 0.0  ;;  %v6598_v49 = vld [vmem:[%s9448_s8 + $0x134] ss:$8 sps:$4 sm:$0xff]   ;;  %v6520_v60 = vld [vmem:[%s9452_s12 + $0x28] sm:$0xff]   ;;  %v6611_v4 = vld [vmem:[%s9448_s8 + $0x1d0] ss:$8 sps:$4 sm:$0xff]  }
 0x73e   : > { %v6609_v10 = vld [vmem:[%s9448_s8 + $0x1e0] ss:$8 sps:$4 sm:$0xff]   ;;  %v6610_v17 = vld [vmem:[%s9448_s8 + $0x1d4] ss:$8 sps:$4 sm:$0xff]   ;;  %v6615_v23 = vld [vmem:[%s9448_s8 + $0x1b0] ss:$8 sps:$4 sm:$0xff]  }
 0x73f   : > { %v4311_v14 = vadd.f32 %v4306_v20, %v4295_v27  ;;  %v4314_v12 = vmax.f32 %v4310_v56, 0.0  ;;  %v6612_v20 = vld [vmem:[%s9448_s8 + $0x1c4] ss:$8 sps:$4 sm:$0xff]   ;;  %v6521_v22 = vld [vmem:[%s9452_s12 + $0x30] sm:$0xff]   ;;  %v6613_v56 = vld [vmem:[%s9448_s8 + $0x1c0] ss:$8 sps:$4 sm:$0xff]  }
 0x740   : > { %v6614_v27 = vld [vmem:[%s9448_s8 + $0x1b4] ss:$8 sps:$4 sm:$0xff]  }
 0x741   : > { %v4315_v32 = vmax.f32 %v4311_v14, 0.0  ;;  %v4334_v40 = vpack.c.bf16 %v4314_v12, %v4312_v39  ;;  %v6616_v14 = vld [vmem:[%s9448_s8 + $0x1a4] ss:$8 sps:$4 sm:$0xff]   ;;  %v6522_v12 = vld [vmem:[%s9452_s12 + $0x38] sm:$0xff]  }
 0x742   : > { %v6619_v39 = vld [vmem:[%s9448_s8 + $0x190] ss:$8 sps:$4 sm:$0xff]  }
 0x743   : > { %v4335_v53 = vpack.c.bf16 %v4315_v32, %v4313_v13  ;;  %v6617_v13 = vld [vmem:[%s9448_s8 + $0x1a0] ss:$8 sps:$4 sm:$0xff]   ;;  %v6618_v32 = vld [vmem:[%s9448_s8 + $0x194] ss:$8 sps:$4 sm:$0xff]  }
 0x745   : > { %4422 = vmatprep.subr.bf16.mxu1 %v4335_v53  ;;  %v6620_v53 = vld [vmem:[%s9448_s8 + $0x184] ss:$8 sps:$4 sm:$0xff]  }
 0x746   : > { %4423 = vmatpush1.bf16.msra.mxu1 %v4334_v40  ;;  %v6621_v40 = vld [vmem:[%s9448_s8 + $0x180] ss:$8 sps:$4 sm:$0xff]  }
 0x747   : > { %4535 = vmatprep.subr.bf16.mxu1 %v6590_v7  ;;  %v6523_v7 = vld [vmem:[%s9452_s12 + $0x40] sm:$0xff]  }
 0x749   : > { %5852 = vmatmul.mubr.msk.bf16.vlgmr.msra.gmra.mxu1 %vm586_vm0, %v6515_v63  ;;  %v6622_v63 = vld [vmem:[%s9448_s8 + $0x274] ss:$8 sps:$4 sm:$0xff]  }
 0x74a   : > { %4450 = vmatprep.mubr.bf16.mxu1 %v9465_v58  ;;  %4536 = vmatpush1.bf16.msra.mxu1 %v6591_v48 }
 0x74b   : > { %4537 = vmatprep.subr.bf16.mxu1 %v6592_v62 }
 0x74e   : > { %4538 = vmatpush1.bf16.msra.mxu1 %v6593_v34 }
 0x74f   : > { %4539 = vmatprep.subr.bf16.mxu1 %v6594_v50 }
 0x751   : > { %5853 = vmatmul.mubr.msk.bf16.gmra.mxu1 %vm586_vm0, %v6516_v0 }
 0x752   : > { %4460 = vmatprep.mubr.bf16.mxu1 %v9465_v58  ;;  %4540 = vmatpush1.bf16.msra.mxu1 %v6595_v21 }
 0x753   : > { %4541 = vmatprep.subr.bf16.mxu1 %v6596_v11 }
 0x756   : > { %4542 = vmatpush1.bf16.msra.mxu1 %v6597_v9  ;;  %v6623_v9 = vld [vmem:[%s9448_s8 + $0x370] ss:$8 sps:$4 sm:$0xff]  }
 0x757   : > { %4543 = vmatprep.subr.bf16.mxu1 %v6598_v49 }
 0x759   : > { %5854 = vmatmul.mubr.msk.bf16.gmra.mxu1 %vm586_vm0, %v6517_v41 }
 0x75a   : > { %4470 = vmatprep.mubr.bf16.mxu1 %v9465_v58  ;;  %4544 = vmatpush1.bf16.msra.mxu1 %v6599_v33  ;;  %v6624_v33 = vld [vmem:[%s9448_s8 + $0x364] ss:$8 sps:$4 sm:$0xff]  }
 0x75b   : > { %4545 = vmatprep.subr.bf16.mxu1 %v6600_v2 }
 0x75e   : > { %4546 = vmatpush1.bf16.msra.mxu1 %v6601_v36  ;;  %v6625_v36 = vld [vmem:[%s9448_s8 + $0x360] ss:$8 sps:$4 sm:$0xff]  }
 0x75f   : > { %4547 = vmatprep.subr.bf16.mxu1 %v6602_v3 }
 0x761   : > { %5855 = vmatmul.mubr.msk.bf16.gmra.mxu1 %vm586_vm0, %v6518_v1 }
 0x762   : > { %4480 = vmatprep.mubr.bf16.mxu1 %v9465_v58  ;;  %4548 = vmatpush1.bf16.msra.mxu1 %v6603_v5  ;;  %v6626_v5 = vld [vmem:[%s9448_s8 + $0x354] ss:$8 sps:$4 sm:$0xff]  }
 0x763   : > { %4549 = vmatprep.subr.bf16.mxu1 %v6604_v59 }
 0x766   : > { %4550 = vmatpush1.bf16.msra.mxu1 %v6605_v51  ;;  %v6627_v51 = vld [vmem:[%s9448_s8 + $0x270] ss:$8 sps:$4 sm:$0xff]  }
 0x767   : > { %4551 = vmatprep.subr.bf16.mxu1 %v6606_v8  ;;  %v6628_v8 = vld [vmem:[%s9448_s8 + $0x350] ss:$8 sps:$4 sm:$0xff]  }
 0x769   : > { %5856 = vmatmul.mubr.msk.bf16.gmra.mxu1 %vm586_vm0, %v6519_v54 }
 0x76a   : > { %4490 = vmatprep.mubr.bf16.mxu1 %v9465_v58  ;;  %4552 = vmatpush2.bf16.msra.mxu1 %v6607_v47  ;;  %v6629_v47 = vld [vmem:[%s9448_s8 + $0x264] ss:$8 sps:$4 sm:$0xff]  }
 0x76b   : > { %4553 = vmatprep.subr.bf16.mxu1 %v6608_v45  ;;  %v6630_v45 = vld [vmem:[%s9448_s8 + $0x344] ss:$8 sps:$4 sm:$0xff]  }
 0x76e   : > { %4554 = vmatpush2.bf16.msra.mxu1 %v6609_v10 }
 0x76f   : > { %4555 = vmatprep.subr.bf16.mxu1 %v6610_v17  ;;  %v6631_v17 = vld [vmem:[%s9448_s8 + $0x260] ss:$8 sps:$4 sm:$0xff]  }
 0x771   : > { %5857 = vmatmul.mubr.msk.bf16.gmra.mxu1 %vm586_vm0, %v6520_v60 }
 0x772   : > { %4500 = vmatprep.mubr.bf16.mxu1 %v9465_v58  ;;  %4556 = vmatpush2.bf16.msra.mxu1 %v6611_v4  ;;  %v6632_v4 = vld [vmem:[%s9448_s8 + $0x340] ss:$8 sps:$4 sm:$0xff]  }
 0x773   : > { %4557 = vmatprep.subr.bf16.mxu1 %v6612_v20 }
 0x776   : > { %4558 = vmatpush2.bf16.msra.mxu1 %v6613_v56  ;;  %v6634_v56 = vld [vmem:[%s9448_s8 + $0x334] ss:$8 sps:$4 sm:$0xff]  }
 0x777   : > { %4559 = vmatprep.subr.bf16.mxu1 %v6614_v27 }
 0x779   : > { %5858 = vmatmul.mubr.msk.bf16.gmra.mxu1 %vm586_vm0, %v6521_v22  ;;  %v6633_v22 = vld [vmem:[%s9448_s8 + $0x254] ss:$8 sps:$4 sm:$0xff]  }
 0x77a   : > { %4510 = vmatprep.mubr.bf16.mxu1 %v9465_v58  ;;  %4560 = vmatpush2.bf16.msra.mxu1 %v6615_v23 }
 0x77b   : > { %4561 = vmatprep.subr.bf16.mxu1 %v6616_v14  ;;  %v6635_v14 = vld [vmem:[%s9448_s8 + $0x250] ss:$8 sps:$4 sm:$0xff]  }
 0x77e   : > { %4562 = vmatpush2.bf16.msra.mxu1 %v6617_v13  ;;  %v6637_v13 = vld [vmem:[%s9448_s8 + $0x244] ss:$8 sps:$4 sm:$0xff]  }
 0x77f   : > { %4563 = vmatprep.subr.bf16.mxu1 %v6618_v32  ;;  %v6638_v32 = vld [vmem:[%s9448_s8 + $0x324] ss:$8 sps:$4 sm:$0xff]  }
 0x781   : > { %5859 = vmatmul.mubr.msk.bf16.gmra.mxu1 %vm586_vm0, %v6522_v12  ;;  %v6636_v12 = vld [vmem:[%s9448_s8 + $0x330] ss:$8 sps:$4 sm:$0xff]  }
 0x782   : > { %4520 = vmatprep.mubr.bf16.mxu1 %v9465_v58  ;;  %4564 = vmatpush2.bf16.msra.mxu1 %v6619_v39 }
 0x783   : > { %4565 = vmatprep.subr.bf16.mxu1 %v6620_v53 }
 0x786   : > { %4566 = vmatpush2.bf16.msra.mxu1 %v6621_v40  ;;  %v6639_v40 = vld [vmem:[%s9448_s8 + $0x240] ss:$8 sps:$4 sm:$0xff]  }
 0x787   : > { %4623 = vmatprep.subr.bf16.mxu1 %v6622_v63  ;;  %v6640_v63 = vld [vmem:[%s9448_s8 + $0x320] ss:$8 sps:$4 sm:$0xff]  }
 0x789   : > { %5860 = vmatmul.mubr.msk.bf16.gmra.mxu1 %vm586_vm0, %v6523_v7 }
 0x809   : > { %v4442_v48 = vpop.f32.mrf.mxu1 }
 0x80b   : > { %v4444_v62 = vpop.f32.mrf.mxu1 }
 0x80d   : > { %v4446_v0 = vpop.f32.mrf.mxu1 }
 0x80e   : > { %v4531_v21 = vpack.c.bf16 %v4446_v0, %v4442_v48  ;;  %v6641_v48 = vld [vmem:[%s9448_s8 + $0x234] ss:$8 sps:$4 sm:$0xff]  }
 0x80f   : > { %v4448_v34 = vpop.f32.mrf.mxu1 }
 0x810   : > { %v4532_v50 = vpack.c.bf16 %v4448_v34, %v4444_v62  ;;  %v6642_v62 = vld [vmem:[%s9448_s8 + $0x314] ss:$8 sps:$4 sm:$0xff]  }
 0x811   : > { %v4452_v11 = vpop.f32.mrf.mxu1 }
 0x812   : > { %4610 = vmatprep.mubr.bf16.mxu0 %v4532_v50  ;;  %v6643_v50 = vld [vmem:[%s9448_s8 + $0x230] ss:$8 sps:$4 sm:$0xff]  }
 0x813   : > { %v4454_v41 = vpop.f32.mrf.mxu1  ;;  %4611 = vmatmul.mubr.bf16.vlgmr.msra.gmra.mxu0 %v4531_v21  ;;  %v6644_v21 = vld [vmem:[%s9448_s8 + $0x310] ss:$8 sps:$4 sm:$0xff]  }
 0x814   : > { %4673 = vmatpush1.bf16.msra.mxu0 %v6623_v9 }
 0x815   : > { %v4456_v49 = vpop.f32.mrf.mxu1  ;;  %4674 = vmatprep.subr.bf16.mxu0 %v6624_v33 }
 0x816   : > { %v4533_v3 = vpack.c.bf16 %v4456_v49, %v4452_v11  ;;  %v6645_v11 = vld [vmem:[%s9448_s8 + $0x224] ss:$8 sps:$4 sm:$0xff]  }
 0x817   : > { %v4458_v2 = vpop.f32.mrf.mxu1 }
 0x818   : > { %v4534_v1 = vpack.c.bf16 %v4458_v2, %v4454_v41  ;;  %4675 = vmatpush1.bf16.msra.mxu0 %v6625_v36  ;;  %v6646_v41 = vld [vmem:[%s9448_s8 + $0x304] ss:$8 sps:$4 sm:$0xff]   ;;  %v6647_v2 = vld [vmem:[%s9448_s8 + $0x220] ss:$8 sps:$4 sm:$0xff]   ;;  %v6649_v36 = vld [vmem:[%s9448_s8 + $0x214] ss:$8 sps:$4 sm:$0xff]  }
 0x819   : > { %4676 = vmatprep.subr.bf16.mxu0 %v6626_v5  ;;  %v8738_v59 = vpop.f32.mrf.mxu1 }
 0x81a   : > { %4567 = vmatprep.mubr.bf16.mxu1 %v4534_v1  ;;  %v6648_v1 = vld [vmem:[%s9448_s8 + $0x300] ss:$8 sps:$4 sm:$0xff]  }
 0x81b   : > { %4568 = vmatmul.mubr.bf16.vlgmr.msra.gmra.mxu1 %v4533_v3  ;;  %v4464_v54 = vpop.f32.mrf.mxu1  ;;  %v6650_v3 = vld [vmem:[%s9448_s8 + $0x3f4] ss:$8 sps:$4 sm:$0xff]  }
 0x81c   : > { %4624 = vmatpush1.bf16.msra.mxu1 %v6627_v51  ;;  %4677 = vmatpush1.bf16.msra.mxu0 %v6628_v8  ;;  %v6652_v51 = vld [vmem:[%s9448_s8 + $0x3f0] ss:$8 sps:$4 sm:$0xff]  }
 0x81d   : > { %4625 = vmatprep.subr.bf16.mxu1 %v6629_v47  ;;  %4678 = vmatprep.subr.bf16.mxu0 %v6630_v45  ;;  %v8752_v60 = vpop.f32.mrf.mxu1  ;;  %v6653_v47 = vld [vmem:[%s9448_s8 + $0x204] ss:$8 sps:$4 sm:$0xff]  }
 0x81e   : > { %v6654_v45 = vld [vmem:[%s9448_s8 + $0x3e4] ss:$8 sps:$4 sm:$0xff]  }
 0x81f   : > { %v4468_v10 = vpop.f32.mrf.mxu1 }
 0x820   : > { %4626 = vmatpush1.bf16.msra.mxu1 %v6631_v17  ;;  %4679 = vmatpush1.bf16.msra.mxu0 %v6632_v4  ;;  %v4622_v20 = vpack.c.bf16 %v4468_v10, %v4464_v54  ;;  %v6651_v54 = vld [vmem:[%s9448_s8 + $0x210] ss:$8 sps:$4 sm:$0xff]   ;;  %v6655_v10 = vld [vmem:[%s9448_s8 + $0x200] ss:$8 sps:$4 sm:$0xff]  }
 0x821   : > { %4627 = vmatprep.subr.bf16.mxu1 %v6633_v22  ;;  %4680 = vmatprep.subr.bf16.mxu0 %v6634_v56  ;;  %v8766_v27 = vpop.f32.mrf.mxu1  ;;  %v6656_v17 = vld [vmem:[%s9448_s8 + $0x3e0] ss:$8 sps:$4 sm:$0xff]   ;;  %v6658_v22 = vld [vmem:[%s9448_s8 + $0x3d4] ss:$8 sps:$4 sm:$0xff]   ;;  %v6659_v56 = vld [vmem:[%s9448_s8 + $0x2f0] ss:$8 sps:$4 sm:$0xff]  }
 0x822   : > { %4655 = vmatprep.mubr.bf16.mxu1 %v4622_v20  ;;  %v6657_v20 = vld [vmem:[%s9448_s8 + $0x2f4] ss:$8 sps:$4 sm:$0xff]  }
 0x823   : > { %v4474_v23 = vpop.f32.mrf.mxu1 }
 0x824   : > { %4628 = vmatpush1.bf16.msra.mxu1 %v6635_v14  ;;  %4681 = vmatpush1.bf16.msra.mxu0 %v6636_v12  ;;  %v6661_v12 = vld [vmem:[%s9448_s8 + $0x2e4] ss:$8 sps:$4 sm:$0xff]  }
 0x825   : > { %4629 = vmatprep.subr.bf16.mxu1 %v6637_v13  ;;  %4682 = vmatprep.subr.bf16.mxu0 %v6638_v32  ;;  %v8780_v39 = vpop.f32.mrf.mxu1  ;;  %v6662_v13 = vld [vmem:[%s9448_s8 + $0x3c4] ss:$8 sps:$4 sm:$0xff]  }
 0x827   : > { %v4478_v53 = vpop.f32.mrf.mxu1 }
 0x828   : > { %4630 = vmatpush1.bf16.msra.mxu1 %v6639_v40  ;;  %4683 = vmatpush1.bf16.msra.mxu0 %v6640_v63  ;;  %v4671_v7 = vpack.c.bf16 %v4478_v53, %v4474_v23  ;;  %v6660_v23 = vld [vmem:[%s9448_s8 + $0x3d0] ss:$8 sps:$4 sm:$0xff]   ;;  %v6663_v53 = vld [vmem:[%s9448_s8 + $0x2e0] ss:$8 sps:$4 sm:$0xff]  }
 0x829   : > { %4631 = vmatprep.subr.bf16.mxu1 %v6641_v48  ;;  %4684 = vmatprep.subr.bf16.mxu0 %v6642_v62  ;;  %v8794_v0 = vpop.f32.mrf.mxu1  ;;  %v6664_v40 = vld [vmem:[%s9448_s8 + $0x3c0] ss:$8 sps:$4 sm:$0xff]   ;;  %v6666_v48 = vld [vmem:[%s9448_s8 + $0x3b4] ss:$8 sps:$4 sm:$0xff]  }
 0x82a   : > { %4704 = vmatprep.mubr.bf16.mxu0 %v4671_v7  ;;  %v6665_v7 = vld [vmem:[%s9448_s8 + $0x2d4] ss:$8 sps:$4 sm:$0xff]  }
 0x82b   : > { %v8796_v34 = vpop.f32.mrf.mxu1 }
 0x82c   : > { %4632 = vmatpush1.bf16.msra.mxu1 %v6643_v50  ;;  %4685 = vmatpush1.bf16.msra.mxu0 %v6644_v21  ;;  %v6667_v50 = vld [vmem:[%s9448_s8 + $0x2d0] ss:$8 sps:$4 sm:$0xff]  }
 0x82d   : > { %4633 = vmatprep.subr.bf16.mxu1 %v6645_v11  ;;  %4686 = vmatprep.subr.bf16.mxu0 %v6646_v41  ;;  %v8810_v9 = vpop.f32.mrf.mxu1  ;;  %v6668_v21 = vld [vmem:[%s9448_s8 + $0x3b0] ss:$8 sps:$4 sm:$0xff]  }
 0x82e   : > { %v4719_v49 = vpack.c.bf16 %v8810_v9, %v8794_v0  ;;  %v6758_v0 = vld [vmem:[%s9448_s8 + $0x744] ss:$8 sps:$4 sm:$0xff]   ;;  %v6759_v9 = vld [vmem:[%s9448_s8 + $0x660] ss:$8 sps:$4 sm:$0xff]  }
 0x82f   : > { %v8814_v33 = vpop.f32.mrf.mxu1 }
 0x830   : > { %4634 = vmatpush1.bf16.msra.mxu1 %v6647_v2  ;;  %4687 = vmatpush1.bf16.msra.mxu0 %v6648_v1  ;;  %v6669_v2 = vld [vmem:[%s9448_s8 + $0x2c4] ss:$8 sps:$4 sm:$0xff]  }
 0x831   : > { %4635 = vmatprep.subr.bf16.mxu1 %v6649_v36  ;;  %4688 = vmatprep.subr.bf16.mxu0 %v6650_v3  ;;  %v8828_v5 = vpop.f32.mrf.mxu1  ;;  %v6670_v1 = vld [vmem:[%s9448_s8 + $0x3a4] ss:$8 sps:$4 sm:$0xff]   ;;  %v6671_v3 = vld [vmem:[%s9448_s8 + $0x2c0] ss:$8 sps:$4 sm:$0xff]  }
 0x833   : > { %v8836_v8 = vpop.f32.mrf.mxu1 }
 0x834   : > { %4636 = vmatpush1.bf16.msra.mxu1 %v6651_v54  ;;  %4689 = vmatpush2.bf16.msra.mxu0 %v6652_v51  ;;  %v6672_v54 = vld [vmem:[%s9448_s8 + $0x3a0] ss:$8 sps:$4 sm:$0xff]  }
 0x835   : > { %4637 = vmatprep.subr.bf16.mxu1 %v6653_v47  ;;  %4690 = vmatprep.subr.bf16.mxu0 %v6654_v45  ;;  %v8850_v4 = vpop.f32.mrf.mxu1  ;;  %v6673_v47 = vld [vmem:[%s9448_s8 + $0x2b4] ss:$8 sps:$4 sm:$0xff]  }
 0x836   : > { %v6674_v45 = vld [vmem:[%s9448_s8 + $0x394] ss:$8 sps:$4 sm:$0xff]  }
 0x837   : > { %v8864_v14 = vpop.f32.mrf.mxu1 }
 0x838   : > { %4638 = vmatpush1.bf16.msra.mxu1 %v6655_v10  ;;  %4691 = vmatpush2.bf16.msra.mxu0 %v6656_v17  ;;  %v6675_v17 = vld [vmem:[%s9448_s8 + $0x2b0] ss:$8 sps:$4 sm:$0xff]  }
 0x839   : > { %4639 = vmatprep.subr.bf16.mxu1 %v6657_v20  ;;  %4692 = vmatprep.subr.bf16.mxu0 %v6658_v22  ;;  %v8872_v32 = vpop.f32.mrf.mxu1  ;;  %v6676_v20 = vld [vmem:[%s9448_s8 + $0x390] ss:$8 sps:$4 sm:$0xff]  }
 0x83b   : > { %v8880_v63 = vpop.f32.mrf.mxu1 }
 0x83c   : > { %4640 = vmatpush2.bf16.msra.mxu1 %v6659_v56  ;;  %4693 = vmatpush2.bf16.msra.mxu0 %v6660_v23  ;;  %v6677_v56 = vld [vmem:[%s9448_s8 + $0x2a4] ss:$8 sps:$4 sm:$0xff]  }
 0x83d   : > { %4641 = vmatprep.subr.bf16.mxu1 %v6661_v12  ;;  %4694 = vmatprep.subr.bf16.mxu0 %v6662_v13  ;;  %v8888_v62 = vpop.f32.mrf.mxu1  ;;  %v6678_v23 = vld [vmem:[%s9448_s8 + $0x384] ss:$8 sps:$4 sm:$0xff]   ;;  %v4670_v13 = vpack.c.bf16 %v8780_v39, %v8766_v27  ;;  %v6682_v27 = vld [vmem:[%s9448_s8 + $0x574] ss:$8 sps:$4 sm:$0xff]   ;;  %v4769_v39 = vpack.c.bf16 %v8864_v14, %v8836_v8 }
 0x83e   : > { %v4817_v11 = vpack.c.bf16 %v8888_v62, %v8872_v32  ;;  %v6686_v8 = vld [vmem:[%s9448_s8 + $0x564] ss:$8 sps:$4 sm:$0xff]   ;;  %v6825_v32 = vld [vmem:[%s9448_s8 + $0x854] ss:$8 sps:$4 sm:$0xff]   ;;  %v6826_v62 = vld [vmem:[%s9448_s8 + $0x850] ss:$8 sps:$4 sm:$0xff]  }
 0x83f   : > { %v8898_v41 = vpop.f32.mrf.mxu1 }
 0x840   : > { %4642 = vmatpush2.bf16.msra.mxu1 %v6663_v53  ;;  %4695 = vmatpush2.bf16.msra.mxu0 %v6664_v40  ;;  %v6679_v53 = vld [vmem:[%s9448_s8 + $0x2a0] ss:$8 sps:$4 sm:$0xff]  }
 0x841   : > { %4643 = vmatprep.subr.bf16.mxu1 %v6665_v7  ;;  %4696 = vmatprep.subr.bf16.mxu0 %v6666_v48  ;;  %v8906_v36 = vpop.f32.mrf.mxu1  ;;  %v6680_v40 = vld [vmem:[%s9448_s8 + $0x380] ss:$8 sps:$4 sm:$0xff]   ;;  %v6681_v48 = vld [vmem:[%s9448_s8 + $0x294] ss:$8 sps:$4 sm:$0xff]  }
 0x843   : > { %v8914_v51 = vpop.f32.mrf.mxu1 }
 0x844   : > { %4644 = vmatpush2.bf16.msra.mxu1 %v6667_v50  ;;  %4697 = vmatpush2.bf16.msra.mxu0 %v6668_v21  ;;  %v6683_v50 = vld [vmem:[%s9448_s8 + $0x290] ss:$8 sps:$4 sm:$0xff]  }
 0x845   : > { %4645 = vmatprep.subr.bf16.mxu1 %v6669_v2  ;;  %4698 = vmatprep.subr.bf16.mxu0 %v6670_v1  ;;  %v8922_v10 = vpop.f32.mrf.mxu1  ;;  %v6684_v21 = vld [vmem:[%s9448_s8 + $0x570] ss:$8 sps:$4 sm:$0xff]   ;;  %v6685_v1 = vld [vmem:[%s9448_s8 + $0x284] ss:$8 sps:$4 sm:$0xff]  }
 0x847   : > { %v8930_v22 = vpop.f32.mrf.mxu1 }
 0x848   : > { %4646 = vmatpush2.bf16.msra.mxu1 %v6671_v3  ;;  %4699 = vmatpush2.bf16.msra.mxu0 %v6672_v54  ;;  %v6687_v3 = vld [vmem:[%s9448_s8 + $0x280] ss:$8 sps:$4 sm:$0xff]  }
 0x849   : > { %4647 = vmatprep.subr.bf16.mxu1 %v6673_v47  ;;  %4700 = vmatprep.subr.bf16.mxu0 %v6674_v45  ;;  %v8938_v12 = vpop.f32.mrf.mxu1  ;;  %v6688_v54 = vld [vmem:[%s9448_s8 + $0x560] ss:$8 sps:$4 sm:$0xff]   ;;  %v4621_v47 = vpack.c.bf16 %v8752_v60, %v8738_v59  ;;  %v6689_v45 = vld [vmem:[%s9448_s8 + $0x474] ss:$8 sps:$4 sm:$0xff]   ;;  %v6692_v59 = vld [vmem:[%s9448_s8 + $0x550] ss:$8 sps:$4 sm:$0xff]  }
 0x84a   : > { %v6693_v60 = vld [vmem:[%s9448_s8 + $0x464] ss:$8 sps:$4 sm:$0xff]  }
 0x84b   : > { %v8948_v7 = vpop.f32.mrf.mxu1 }
 0x84c   : > { %4648 = vmatpush2.bf16.msra.mxu1 %v6675_v17  ;;  %4701 = vmatpush2.bf16.msra.mxu0 %v6676_v20  ;;  %v6690_v17 = vld [vmem:[%s9448_s8 + $0x554] ss:$8 sps:$4 sm:$0xff]   ;;  %v4720_v20 = vpack.c.bf16 %v8814_v33, %v8796_v34  ;;  %v6694_v34 = vld [vmem:[%s9448_s8 + $0x544] ss:$8 sps:$4 sm:$0xff]   ;;  %v6695_v33 = vld [vmem:[%s9448_s8 + $0x460] ss:$8 sps:$4 sm:$0xff]  }
 0x84d   : > { %4649 = vmatprep.subr.bf16.mxu1 %v6677_v56  ;;  %4702 = vmatprep.subr.bf16.mxu0 %v6678_v23  ;;  %v8964_v2 = vpop.f32.mrf.mxu1  ;;  %v6691_v56 = vld [vmem:[%s9448_s8 + $0x470] ss:$8 sps:$4 sm:$0xff]   ;;  %v6696_v23 = vld [vmem:[%s9448_s8 + $0x540] ss:$8 sps:$4 sm:$0xff]  }
 0x84e   : > { %v4915_v14 = vpack.c.bf16 %v8964_v2, %v8938_v12 }
 0x850   : > { %4650 = vmatpush2.bf16.msra.mxu1 %v6679_v53  ;;  %4703 = vmatpush2.bf16.msra.mxu0 %v6680_v40  ;;  %v6698_v53 = vld [vmem:[%s9448_s8 + $0x534] ss:$8 sps:$4 sm:$0xff]   ;;  %v6699_v40 = vld [vmem:[%s9448_s8 + $0x450] ss:$8 sps:$4 sm:$0xff]  }
 0x851   : > { %4651 = vmatprep.subr.bf16.mxu1 %v6681_v48  ;;  %4770 = vmatprep.subr.bf16.mxu0 %v6682_v27  ;;  %v6700_v48 = vld [vmem:[%s9448_s8 + $0x530] ss:$8 sps:$4 sm:$0xff]   ;;  %v6701_v27 = vld [vmem:[%s9448_s8 + $0x444] ss:$8 sps:$4 sm:$0xff]  }
 0x853   : > { %4705 = vmatmul.mubr.bf16.vlgmr.msra.gmra.mxu0 %v4670_v13  ;;  %v6697_v13 = vld [vmem:[%s9448_s8 + $0x454] ss:$8 sps:$4 sm:$0xff]  }
 0x854   : > { %4652 = vmatpush2.bf16.msra.mxu1 %v6683_v50  ;;  %4771 = vmatpush1.bf16.msra.mxu0 %v6684_v21  ;;  %v6703_v50 = vld [vmem:[%s9448_s8 + $0x440] ss:$8 sps:$4 sm:$0xff]  }
 0x855   : > { %4653 = vmatprep.subr.bf16.mxu1 %v6685_v1  ;;  %4772 = vmatprep.subr.bf16.mxu0 %v6686_v8  ;;  %v6704_v21 = vld [vmem:[%s9448_s8 + $0x520] ss:$8 sps:$4 sm:$0xff]   ;;  %v6705_v1 = vld [vmem:[%s9448_s8 + $0x434] ss:$8 sps:$4 sm:$0xff]  }
 0x856   : > { %4802 = vmatprep.mubr.bf16.mxu0 %v4769_v39  ;;  %v6702_v39 = vld [vmem:[%s9448_s8 + $0x524] ss:$8 sps:$4 sm:$0xff]   ;;  %v6706_v8 = vld [vmem:[%s9448_s8 + $0x514] ss:$8 sps:$4 sm:$0xff]  }
 0x858   : > { %4654 = vmatpush2.bf16.msra.mxu1 %v6687_v3  ;;  %4773 = vmatpush1.bf16.msra.mxu0 %v6688_v54  ;;  %v6707_v3 = vld [vmem:[%s9448_s8 + $0x430] ss:$8 sps:$4 sm:$0xff]  }
 0x859   : > { %4721 = vmatprep.subr.bf16.mxu1 %v6689_v45  ;;  %4774 = vmatprep.subr.bf16.mxu0 %v6690_v17  ;;  %v6708_v54 = vld [vmem:[%s9448_s8 + $0x510] ss:$8 sps:$4 sm:$0xff]   ;;  %v6710_v45 = vld [vmem:[%s9448_s8 + $0x504] ss:$8 sps:$4 sm:$0xff]   ;;  %v6711_v17 = vld [vmem:[%s9448_s8 + $0x420] ss:$8 sps:$4 sm:$0xff]  }
 0x85b   : > { %4656 = vmatmul.mubr.bf16.vlgmr.msra.gmra.mxu1 %v4621_v47  ;;  %v6709_v47 = vld [vmem:[%s9448_s8 + $0x424] ss:$8 sps:$4 sm:$0xff]  }
 0x85c   : > { %4722 = vmatpush1.bf16.msra.mxu1 %v6691_v56  ;;  %4775 = vmatpush1.bf16.msra.mxu0 %v6692_v59  ;;  %v6713_v56 = vld [vmem:[%s9448_s8 + $0x414] ss:$8 sps:$4 sm:$0xff]  }
 0x85d   : > { %4723 = vmatprep.subr.bf16.mxu1 %v6693_v60  ;;  %4776 = vmatprep.subr.bf16.mxu0 %v6694_v34  ;;  %v6714_v59 = vld [vmem:[%s9448_s8 + $0x5f4] ss:$8 sps:$4 sm:$0xff]   ;;  %v6715_v60 = vld [vmem:[%s9448_s8 + $0x410] ss:$8 sps:$4 sm:$0xff]  }
 0x85e   : > { %4753 = vmatprep.mubr.bf16.mxu1 %v4720_v20  ;;  %v6712_v20 = vld [vmem:[%s9448_s8 + $0x500] ss:$8 sps:$4 sm:$0xff]   ;;  %v6716_v34 = vld [vmem:[%s9448_s8 + $0x5f0] ss:$8 sps:$4 sm:$0xff]  }
 0x860   : > { %4724 = vmatpush1.bf16.msra.mxu1 %v6695_v33  ;;  %4777 = vmatpush1.bf16.msra.mxu0 %v6696_v23  ;;  %v6717_v33 = vld [vmem:[%s9448_s8 + $0x404] ss:$8 sps:$4 sm:$0xff]  }
 0x861   : > { %4725 = vmatprep.subr.bf16.mxu1 %v6697_v13  ;;  %4778 = vmatprep.subr.bf16.mxu0 %v6698_v53  ;;  %v6718_v23 = vld [vmem:[%s9448_s8 + $0x5e4] ss:$8 sps:$4 sm:$0xff]   ;;  %v6719_v13 = vld [vmem:[%s9448_s8 + $0x400] ss:$8 sps:$4 sm:$0xff]  }
 0x862   : > { %v6720_v53 = vld [vmem:[%s9448_s8 + $0x5e0] ss:$8 sps:$4 sm:$0xff]  }
 0x864   : > { %4726 = vmatpush1.bf16.msra.mxu1 %v6699_v40  ;;  %4779 = vmatpush1.bf16.msra.mxu0 %v6700_v48  ;;  %v6721_v40 = vld [vmem:[%s9448_s8 + $0x4f4] ss:$8 sps:$4 sm:$0xff]  }
 0x865   : > { %4727 = vmatprep.subr.bf16.mxu1 %v6701_v27  ;;  %4780 = vmatprep.subr.bf16.mxu0 %v6702_v39  ;;  %v6722_v48 = vld [vmem:[%s9448_s8 + $0x5d4] ss:$8 sps:$4 sm:$0xff]   ;;  %v6723_v27 = vld [vmem:[%s9448_s8 + $0x4f0] ss:$8 sps:$4 sm:$0xff]  }
 0x866   : > { %v6724_v39 = vld [vmem:[%s9448_s8 + $0x5d0] ss:$8 sps:$4 sm:$0xff]  }
 0x868   : > { %4728 = vmatpush1.bf16.msra.mxu1 %v6703_v50  ;;  %4781 = vmatpush1.bf16.msra.mxu0 %v6704_v21  ;;  %v6725_v50 = vld [vmem:[%s9448_s8 + $0x4e4] ss:$8 sps:$4 sm:$0xff]  }
 0x869   : > { %4729 = vmatprep.subr.bf16.mxu1 %v6705_v1  ;;  %4782 = vmatprep.subr.bf16.mxu0 %v6706_v8  ;;  %v6726_v21 = vld [vmem:[%s9448_s8 + $0x5c4] ss:$8 sps:$4 sm:$0xff]   ;;  %v6727_v1 = vld [vmem:[%s9448_s8 + $0x4e0] ss:$8 sps:$4 sm:$0xff]  }
 0x86a   : > { %v6728_v8 = vld [vmem:[%s9448_s8 + $0x5c0] ss:$8 sps:$4 sm:$0xff]  }
 0x86c   : > { %4730 = vmatpush1.bf16.msra.mxu1 %v6707_v3  ;;  %4783 = vmatpush1.bf16.msra.mxu0 %v6708_v54  ;;  %v6729_v3 = vld [vmem:[%s9448_s8 + $0x4d4] ss:$8 sps:$4 sm:$0xff]  }
 0x86d   : > { %4731 = vmatprep.subr.bf16.mxu1 %v6709_v47  ;;  %4784 = vmatprep.subr.bf16.mxu0 %v6710_v45  ;;  %v6730_v54 = vld [vmem:[%s9448_s8 + $0x5b4] ss:$8 sps:$4 sm:$0xff]   ;;  %v6731_v47 = vld [vmem:[%s9448_s8 + $0x4d0] ss:$8 sps:$4 sm:$0xff]  }
 0x86e   : > { %v6732_v45 = vld [vmem:[%s9448_s8 + $0x5b0] ss:$8 sps:$4 sm:$0xff]  }
 0x870   : > { %4732 = vmatpush1.bf16.msra.mxu1 %v6711_v17  ;;  %4785 = vmatpush1.bf16.msra.mxu0 %v6712_v20  ;;  %v6733_v17 = vld [vmem:[%s9448_s8 + $0x4c4] ss:$8 sps:$4 sm:$0xff]  }
 0x871   : > { %4733 = vmatprep.subr.bf16.mxu1 %v6713_v56  ;;  %4786 = vmatprep.subr.bf16.mxu0 %v6714_v59  ;;  %v6734_v20 = vld [vmem:[%s9448_s8 + $0x5a4] ss:$8 sps:$4 sm:$0xff]   ;;  %v6735_v56 = vld [vmem:[%s9448_s8 + $0x4c0] ss:$8 sps:$4 sm:$0xff]  }
 0x872   : > { %v6736_v59 = vld [vmem:[%s9448_s8 + $0x5a0] ss:$8 sps:$4 sm:$0xff]  }
 0x874   : > { %4734 = vmatpush1.bf16.msra.mxu1 %v6715_v60  ;;  %4787 = vmatpush2.bf16.msra.mxu0 %v6716_v34  ;;  %v6737_v60 = vld [vmem:[%s9448_s8 + $0x4b4] ss:$8 sps:$4 sm:$0xff]  }
 0x875   : > { %4735 = vmatprep.subr.bf16.mxu1 %v6717_v33  ;;  %4788 = vmatprep.subr.bf16.mxu0 %v6718_v23  ;;  %v6738_v34 = vld [vmem:[%s9448_s8 + $0x594] ss:$8 sps:$4 sm:$0xff]   ;;  %v6739_v33 = vld [vmem:[%s9448_s8 + $0x4b0] ss:$8 sps:$4 sm:$0xff]  }
 0x876   : > { %v6740_v23 = vld [vmem:[%s9448_s8 + $0x590] ss:$8 sps:$4 sm:$0xff]  }
 0x878   : > { %4736 = vmatpush1.bf16.msra.mxu1 %v6719_v13  ;;  %4789 = vmatpush2.bf16.msra.mxu0 %v6720_v53  ;;  %v6741_v13 = vld [vmem:[%s9448_s8 + $0x4a4] ss:$8 sps:$4 sm:$0xff]  }
 0x879   : > { %4737 = vmatprep.subr.bf16.mxu1 %v6721_v40  ;;  %4790 = vmatprep.subr.bf16.mxu0 %v6722_v48  ;;  %v6742_v53 = vld [vmem:[%s9448_s8 + $0x584] ss:$8 sps:$4 sm:$0xff]   ;;  %v4768_v40 = vpack.c.bf16 %v8850_v4, %v8828_v5  ;;  %v6743_v48 = vld [vmem:[%s9448_s8 + $0x4a0] ss:$8 sps:$4 sm:$0xff]   ;;  %v4867_v5 = vpack.c.bf16 %v8930_v22, %v8914_v51  ;;  %v6747_v4 = vld [vmem:[%s9448_s8 + $0x490] ss:$8 sps:$4 sm:$0xff]  }
 0x87a   : > { %v6750_v51 = vld [vmem:[%s9448_s8 + $0x764] ss:$8 sps:$4 sm:$0xff]   ;;  %v6751_v22 = vld [vmem:[%s9448_s8 + $0x480] ss:$8 sps:$4 sm:$0xff]  }
 0x87c   : > { %4738 = vmatpush2.bf16.msra.mxu1 %v6723_v27  ;;  %4791 = vmatpush2.bf16.msra.mxu0 %v6724_v39  ;;  %v6744_v27 = vld [vmem:[%s9448_s8 + $0x580] ss:$8 sps:$4 sm:$0xff]   ;;  %v6745_v39 = vld [vmem:[%s9448_s8 + $0x494] ss:$8 sps:$4 sm:$0xff]  }
 0x87d   : > { %4739 = vmatprep.subr.bf16.mxu1 %v6725_v50  ;;  %4792 = vmatprep.subr.bf16.mxu0 %v6726_v21  ;;  %v6746_v50 = vld [vmem:[%s9448_s8 + $0x774] ss:$8 sps:$4 sm:$0xff]   ;;  %v6748_v21 = vld [vmem:[%s9448_s8 + $0x770] ss:$8 sps:$4 sm:$0xff]  }
 0x880   : > { %4740 = vmatpush2.bf16.msra.mxu1 %v6727_v1  ;;  %4793 = vmatpush2.bf16.msra.mxu0 %v6728_v8  ;;  %v6749_v1 = vld [vmem:[%s9448_s8 + $0x484] ss:$8 sps:$4 sm:$0xff]   ;;  %v6752_v8 = vld [vmem:[%s9448_s8 + $0x760] ss:$8 sps:$4 sm:$0xff]  }
 0x881   : > { %4741 = vmatprep.subr.bf16.mxu1 %v6729_v3  ;;  %4794 = vmatprep.subr.bf16.mxu0 %v6730_v54  ;;  %v6753_v3 = vld [vmem:[%s9448_s8 + $0x674] ss:$8 sps:$4 sm:$0xff]  }
 0x882   : > { %v6754_v54 = vld [vmem:[%s9448_s8 + $0x754] ss:$8 sps:$4 sm:$0xff]  }
 0x884   : > { %4742 = vmatpush2.bf16.msra.mxu1 %v6731_v47  ;;  %4795 = vmatpush2.bf16.msra.mxu0 %v6732_v45  ;;  %v4818_v47 = vpack.c.bf16 %v8898_v41, %v8880_v63  ;;  %v6755_v45 = vld [vmem:[%s9448_s8 + $0x670] ss:$8 sps:$4 sm:$0xff]   ;;  %v6761_v63 = vld [vmem:[%s9448_s8 + $0x654] ss:$8 sps:$4 sm:$0xff]  }
 0x885   : > { %4743 = vmatprep.subr.bf16.mxu1 %v6733_v17  ;;  %4796 = vmatprep.subr.bf16.mxu0 %v6734_v20  ;;  %v6756_v17 = vld [vmem:[%s9448_s8 + $0x750] ss:$8 sps:$4 sm:$0xff]   ;;  %v6757_v20 = vld [vmem:[%s9448_s8 + $0x664] ss:$8 sps:$4 sm:$0xff]   ;;  %v6762_v41 = vld [vmem:[%s9448_s8 + $0x734] ss:$8 sps:$4 sm:$0xff]  }
 0x888   : > { %4744 = vmatpush2.bf16.msra.mxu1 %v6735_v56  ;;  %4797 = vmatpush2.bf16.msra.mxu0 %v6736_v59  ;;  %v6763_v56 = vld [vmem:[%s9448_s8 + $0x650] ss:$8 sps:$4 sm:$0xff]  }
 0x889   : > { %4745 = vmatprep.subr.bf16.mxu1 %v6737_v60  ;;  %4798 = vmatprep.subr.bf16.mxu0 %v6738_v34  ;;  %v6764_v59 = vld [vmem:[%s9448_s8 + $0x730] ss:$8 sps:$4 sm:$0xff]   ;;  %v6765_v60 = vld [vmem:[%s9448_s8 + $0x644] ss:$8 sps:$4 sm:$0xff]  }
 0x88a   : > { %v6766_v34 = vld [vmem:[%s9448_s8 + $0x724] ss:$8 sps:$4 sm:$0xff]  }
 0x88c   : > { %4746 = vmatpush2.bf16.msra.mxu1 %v6739_v33  ;;  %4799 = vmatpush2.bf16.msra.mxu0 %v6740_v23  ;;  %v6767_v33 = vld [vmem:[%s9448_s8 + $0x640] ss:$8 sps:$4 sm:$0xff]  }
 0x88d   : > { %4747 = vmatprep.subr.bf16.mxu1 %v6741_v13  ;;  %4800 = vmatprep.subr.bf16.mxu0 %v6742_v53  ;;  %v6768_v23 = vld [vmem:[%s9448_s8 + $0x720] ss:$8 sps:$4 sm:$0xff]   ;;  %v6769_v13 = vld [vmem:[%s9448_s8 + $0x634] ss:$8 sps:$4 sm:$0xff]  }
 0x88e   : > { %v6770_v53 = vld [vmem:[%s9448_s8 + $0x714] ss:$8 sps:$4 sm:$0xff]  }
 0x890   : > { %4748 = vmatpush2.bf16.msra.mxu1 %v6743_v48  ;;  %4801 = vmatpush2.bf16.msra.mxu0 %v6744_v27  ;;  %v6772_v48 = vld [vmem:[%s9448_s8 + $0x710] ss:$8 sps:$4 sm:$0xff]   ;;  %v6773_v27 = vld [vmem:[%s9448_s8 + $0x624] ss:$8 sps:$4 sm:$0xff]  }
 0x891   : > { %4749 = vmatprep.subr.bf16.mxu1 %v6745_v39  ;;  %4868 = vmatprep.subr.bf16.mxu0 %v6746_v50  ;;  %v6774_v39 = vld [vmem:[%s9448_s8 + $0x704] ss:$8 sps:$4 sm:$0xff]   ;;  %v6775_v50 = vld [vmem:[%s9448_s8 + $0x620] ss:$8 sps:$4 sm:$0xff]  }
 0x893   : > { %4803 = vmatmul.mubr.bf16.vlgmr.msra.gmra.mxu0 %v4768_v40  ;;  %v6771_v40 = vld [vmem:[%s9448_s8 + $0x630] ss:$8 sps:$4 sm:$0xff]  }
 0x894   : > { %4750 = vmatpush2.bf16.msra.mxu1 %v6747_v4  ;;  %4869 = vmatpush1.bf16.msra.mxu0 %v6748_v21  ;;  %v6777_v4 = vld [vmem:[%s9448_s8 + $0x614] ss:$8 sps:$4 sm:$0xff]  }
 0x895   : > { %4751 = vmatprep.subr.bf16.mxu1 %v6749_v1  ;;  %4870 = vmatprep.subr.bf16.mxu0 %v6750_v51  ;;  %v6778_v21 = vld [vmem:[%s9448_s8 + $0x7f4] ss:$8 sps:$4 sm:$0xff]   ;;  %v6779_v1 = vld [vmem:[%s9448_s8 + $0x610] ss:$8 sps:$4 sm:$0xff]  }
 0x896   : > { %4900 = vmatprep.mubr.bf16.mxu0 %v4867_v5  ;;  %v6776_v5 = vld [vmem:[%s9448_s8 + $0x700] ss:$8 sps:$4 sm:$0xff]   ;;  %v6780_v51 = vld [vmem:[%s9448_s8 + $0x7f0] ss:$8 sps:$4 sm:$0xff]  }
 0x898   : > { %4752 = vmatpush2.bf16.msra.mxu1 %v6751_v22  ;;  %4871 = vmatpush1.bf16.msra.mxu0 %v6752_v8  ;;  %v6781_v22 = vld [vmem:[%s9448_s8 + $0x604] ss:$8 sps:$4 sm:$0xff]  }
 0x899   : > { %4819 = vmatprep.subr.bf16.mxu1 %v6753_v3  ;;  %4872 = vmatprep.subr.bf16.mxu0 %v6754_v54  ;;  %v6782_v8 = vld [vmem:[%s9448_s8 + $0x7e4] ss:$8 sps:$4 sm:$0xff]   ;;  %v6783_v3 = vld [vmem:[%s9448_s8 + $0x600] ss:$8 sps:$4 sm:$0xff]  }
 0x89a   : > { %v6784_v54 = vld [vmem:[%s9448_s8 + $0x7e0] ss:$8 sps:$4 sm:$0xff]  }
 0x89b   : > { %4754 = vmatmul.mubr.bf16.vlgmr.msra.gmra.mxu1 %v4719_v49  ;;  %v6760_v49 = vld [vmem:[%s9448_s8 + $0x740] ss:$8 sps:$4 sm:$0xff]  }
 0x89c   : > { %4820 = vmatpush1.bf16.msra.mxu1 %v6755_v45  ;;  %4873 = vmatpush1.bf16.msra.mxu0 %v6756_v17  ;;  %v6786_v45 = vld [vmem:[%s9448_s8 + $0x7d4] ss:$8 sps:$4 sm:$0xff]   ;;  %v6787_v17 = vld [vmem:[%s9448_s8 + $0x6f0] ss:$8 sps:$4 sm:$0xff]  }
 0x89d   : > { %4821 = vmatprep.subr.bf16.mxu1 %v6757_v20  ;;  %4874 = vmatprep.subr.bf16.mxu0 %v6758_v0  ;;  %v6788_v20 = vld [vmem:[%s9448_s8 + $0x7d0] ss:$8 sps:$4 sm:$0xff]   ;;  %v6789_v0 = vld [vmem:[%s9448_s8 + $0x6e4] ss:$8 sps:$4 sm:$0xff]  }
 0x89e   : > { %4851 = vmatprep.mubr.bf16.mxu1 %v4818_v47  ;;  %v6785_v47 = vld [vmem:[%s9448_s8 + $0x6f4] ss:$8 sps:$4 sm:$0xff]  }
 0x8a0   : > { %4822 = vmatpush1.bf16.msra.mxu1 %v6759_v9  ;;  %4875 = vmatpush1.bf16.msra.mxu0 %v6760_v49  ;;  %v6790_v9 = vld [vmem:[%s9448_s8 + $0x7c4] ss:$8 sps:$4 sm:$0xff]   ;;  %v6791_v49 = vld [vmem:[%s9448_s8 + $0x6e0] ss:$8 sps:$4 sm:$0xff]  }
 0x8a1   : > { %4823 = vmatprep.subr.bf16.mxu1 %v6761_v63  ;;  %4876 = vmatprep.subr.bf16.mxu0 %v6762_v41  ;;  %v6792_v63 = vld [vmem:[%s9448_s8 + $0x7c0] ss:$8 sps:$4 sm:$0xff]   ;;  %v6793_v41 = vld [vmem:[%s9448_s8 + $0x6d4] ss:$8 sps:$4 sm:$0xff]  }
 0x8a4   : > { %4824 = vmatpush1.bf16.msra.mxu1 %v6763_v56  ;;  %4877 = vmatpush1.bf16.msra.mxu0 %v6764_v59  ;;  %v6794_v56 = vld [vmem:[%s9448_s8 + $0x7b4] ss:$8 sps:$4 sm:$0xff]   ;;  %v6795_v59 = vld [vmem:[%s9448_s8 + $0x6d0] ss:$8 sps:$4 sm:$0xff]  }
 0x8a5   : > { %4825 = vmatprep.subr.bf16.mxu1 %v6765_v60  ;;  %4878 = vmatprep.subr.bf16.mxu0 %v6766_v34  ;;  %v6796_v60 = vld [vmem:[%s9448_s8 + $0x7b0] ss:$8 sps:$4 sm:$0xff]   ;;  %v6797_v34 = vld [vmem:[%s9448_s8 + $0x6c4] ss:$8 sps:$4 sm:$0xff]  }
 0x8a8   : > { %4826 = vmatpush1.bf16.msra.mxu1 %v6767_v33  ;;  %4879 = vmatpush1.bf16.msra.mxu0 %v6768_v23  ;;  %v6798_v33 = vld [vmem:[%s9448_s8 + $0x7a4] ss:$8 sps:$4 sm:$0xff]   ;;  %v6799_v23 = vld [vmem:[%s9448_s8 + $0x6c0] ss:$8 sps:$4 sm:$0xff]  }
 0x8a9   : > { %4827 = vmatprep.subr.bf16.mxu1 %v6769_v13  ;;  %4880 = vmatprep.subr.bf16.mxu0 %v6770_v53  ;;  %v6800_v13 = vld [vmem:[%s9448_s8 + $0x7a0] ss:$8 sps:$4 sm:$0xff]   ;;  %v6801_v53 = vld [vmem:[%s9448_s8 + $0x6b4] ss:$8 sps:$4 sm:$0xff]  }
 0x8ac   : > { %4828 = vmatpush1.bf16.msra.mxu1 %v6771_v40  ;;  %4881 = vmatpush1.bf16.msra.mxu0 %v6772_v48  ;;  %v6802_v40 = vld [vmem:[%s9448_s8 + $0x794] ss:$8 sps:$4 sm:$0xff]   ;;  %v6803_v48 = vld [vmem:[%s9448_s8 + $0x6b0] ss:$8 sps:$4 sm:$0xff]  }
 0x8ad   : > { %4829 = vmatprep.subr.bf16.mxu1 %v6773_v27  ;;  %4882 = vmatprep.subr.bf16.mxu0 %v6774_v39  ;;  %v6804_v27 = vld [vmem:[%s9448_s8 + $0x790] ss:$8 sps:$4 sm:$0xff]   ;;  %v6805_v39 = vld [vmem:[%s9448_s8 + $0x6a4] ss:$8 sps:$4 sm:$0xff]  }
 0x8b0   : > { %4830 = vmatpush1.bf16.msra.mxu1 %v6775_v50  ;;  %4883 = vmatpush1.bf16.msra.mxu0 %v6776_v5  ;;  %v6806_v50 = vld [vmem:[%s9448_s8 + $0x784] ss:$8 sps:$4 sm:$0xff]   ;;  %v6807_v5 = vld [vmem:[%s6947_s17 + $0x38] sm:$0xff] }
 0x8b1   : > { %4831 = vmatprep.subr.bf16.mxu1 %v6777_v4  ;;  %4884 = vmatprep.subr.bf16.mxu0 %v6778_v21  ;;  %v6808_v4 = vld [vmem:[%s6947_s17 + $0x28] sm:$0xff] }
 0x8b2   : > { %v554_v21 = vpack.c.bf16 %v6807_v5, %v6808_v4 }
 0x8b4   : > { %4832 = vmatpush1.bf16.msra.mxu1 %v6779_v1  ;;  %4885 = vmatpush2.bf16.msra.mxu0 %v6780_v51  ;;  %v6809_v1 = vld [vmem:[%s9448_s8 + $0x6a0] ss:$8 sps:$4 sm:$0xff]  }
 0x8b5   : > { %4833 = vmatprep.subr.bf16.mxu1 %v6781_v22  ;;  %4886 = vmatprep.subr.bf16.mxu0 %v6782_v8  ;;  %v6810_v51 = vld [vmem:[%s9448_s8 + $0x780] ss:$8 sps:$4 sm:$0xff]   ;;  %v6811_v22 = vld [vmem:[%s6947_s17 + $0x30] sm:$0xff] }
 0x8b6   : > { %v6812_v8 = vld [vmem:[%s6947_s17 + $0x20] sm:$0xff] }
 0x8b8   : > { %4834 = vmatpush1.bf16.msra.mxu1 %v6783_v3  ;;  %4887 = vmatpush2.bf16.msra.mxu0 %v6784_v54  ;;  %v553_v3 = vpack.c.bf16 %v6811_v22, %v6812_v8  ;;  %v4866_v54 = vpack.c.bf16 %v8922_v10, %v8906_v36  ;;  %v6819_v36 = vld [vmem:[%s9448_s8 + $0x684] ss:$8 sps:$4 sm:$0xff]   ;;  %v4528_v10 = vpop.f32.mrf.mxu1 }
 0x8b9   : > { %4835 = vmatprep.subr.bf16.mxu1 %v6785_v47  ;;  %4888 = vmatprep.subr.bf16.mxu0 %v6786_v45  ;;  %v6813_v47 = vld [vmem:[%s9448_s8 + $0x694] ss:$8 sps:$4 sm:$0xff]  }
 0x8ba   : > { %v6814_v45 = vld [vmem:[%s6947_s17 + $0x18] sm:$0xff] }
 0x8bc   : > { %4836 = vmatpush2.bf16.msra.mxu1 %v6787_v17  ;;  %4889 = vmatpush2.bf16.msra.mxu0 %v6788_v20  ;;  %v6815_v17 = vld [vmem:[%s6947_s17 + $0x8] sm:$0xff] }
 0x8bd   : > { %4837 = vmatprep.subr.bf16.mxu1 %v6789_v0  ;;  %4890 = vmatprep.subr.bf16.mxu0 %v6790_v9  ;;  %v552_v20 = vpack.c.bf16 %v6814_v45, %v6815_v17  ;;  %v6816_v0 = vld [vmem:[%s9448_s8 + $0x690] ss:$8 sps:$4 sm:$0xff]  }
 0x8be   : > { %v6817_v9 = vld [vmem:[%s6947_s17 + $0x10] sm:$0xff] }
 0x8c0   : > { %4838 = vmatpush2.bf16.msra.mxu1 %v6791_v49  ;;  %4891 = vmatpush2.bf16.msra.mxu0 %v6792_v63  ;;  %v6818_v49 = vld [vmem:[%s6947_s17] sm:$0xff] }
 0x8c1   : > { %4839 = vmatprep.subr.bf16.mxu1 %v6793_v41  ;;  %4892 = vmatprep.subr.bf16.mxu0 %v6794_v56  ;;  %v551_v63 = vpack.c.bf16 %v6817_v9, %v6818_v49  ;;  %v6524_v41 = vld [vmem:[%s9455_s15] sm:$0xff]  }
 0x8c2   : > { %v6820_v56 = vld [vmem:[%s9448_s8 + $0x680] ss:$8 sps:$4 sm:$0xff]  }
 0x8c4   : > { %4840 = vmatpush2.bf16.msra.mxu1 %v6795_v59  ;;  %4893 = vmatpush2.bf16.msra.mxu0 %v6796_v60  ;;  %v6821_v59 = vld [vmem:[%s9448_s8 + $0x874] ss:$8 sps:$4 sm:$0xff]   ;;  %v4916_v60 = vpack.c.bf16 %v4528_v10, %v8948_v7  ;;  %v6824_v7 = vld [vmem:[%s9448_s8 + $0x860] ss:$8 sps:$4 sm:$0xff]   ;;  %v4969_v10 = vpop.permute.xlu1 %4968 }
 0x8c5   : > { %4841 = vmatprep.subr.bf16.mxu1 %v6797_v34  ;;  %4894 = vmatprep.subr.bf16.mxu0 %v6798_v33  ;;  %v6823_v34 = vld [vmem:[%s9448_s8 + $0x864] ss:$8 sps:$4 sm:$0xff]  }
 0x8c8   : > { %4842 = vmatpush2.bf16.msra.mxu1 %v6799_v23  ;;  %4895 = vmatpush2.bf16.msra.mxu0 %v6800_v13 }
 0x8c9   : > { %4843 = vmatprep.subr.bf16.mxu1 %v6801_v53  ;;  %4896 = vmatprep.subr.bf16.mxu0 %v6802_v40 }
 0x8cc   : > { %4844 = vmatpush2.bf16.msra.mxu1 %v6803_v48  ;;  %4897 = vmatpush2.bf16.msra.mxu0 %v6804_v27 }
 0x8cd   : > { %4845 = vmatprep.subr.bf16.mxu1 %v6805_v39  ;;  %4898 = vmatprep.subr.bf16.mxu0 %v6806_v50 }
 0x8d0   : > { %4846 = vmatpush2.bf16.msra.mxu1 %v6809_v1  ;;  %4899 = vmatpush2.bf16.msra.mxu0 %v6810_v51 }
 0x8d1   : > { %4847 = vmatprep.subr.bf16.mxu1 %v6813_v47  ;;  %5022 = vmatprep.subr.bf16.mxu0 %v554_v21 }
 0x8d3   : > { %4901 = vmatmul.mubr.bf16.vlgmr.msra.gmra.mxu0 %v4866_v54 }
 0x8d4   : > { %4848 = vmatpush2.bf16.msra.mxu1 %v6816_v0  ;;  %5023 = vmatpush1.bf16.msra.mxu0 %v553_v3 }
 0x8d5   : > { %4849 = vmatprep.subr.bf16.mxu1 %v6819_v36  ;;  %5024 = vmatprep.subr.bf16.mxu0 %v552_v20 }
 0x8d6   : > { %5042 = vmatprep.mubr.bf16.mxu0 %v9465_v58  ;;  %v6822_v58 = vld [vmem:[%s9448_s8 + $0x870] ss:$8 sps:$4 sm:$0xff]  }
 0x8d8   : > { %4850 = vmatpush2.bf16.msra.mxu1 %v6820_v56  ;;  %5025 = vmatpush1.bf16.msra.mxu0 %v551_v63 }
 0x8d9   : > { %4917 = vmatprep.subr.bf16.mxu1 %v6821_v59 }
 0x8db   : > { %4852 = vmatmul.mubr.bf16.vlgmr.msra.gmra.mxu1 %v4817_v11  ;;  %5862 = vmatmul.mubr.msk.bf16.vlgmr.msra.gmra.mxu0 %vm1107_vm4, %v6524_v41  ;;  %v6827_v11 = vld [vmem:[%s9448_s8 + $0x844] ss:$8 sps:$4 sm:$0xff]  }
 0x8dc   : > { %4918 = vmatpush1.bf16.msra.mxu1 %v6822_v58  ;;  %4949 = vmatprep.mubr.bf16.mxu1 %v4916_v60 }
 0x8dd   : > { %4919 = vmatprep.subr.bf16.mxu1 %v6823_v34 }
 0x8e0   : > { %4920 = vmatpush1.bf16.msra.mxu1 %v6824_v7  ;;  %v4974_v7 = vpop.permute.xlu0 %4973 }
 0x8e1   : > { %4921 = vmatprep.subr.bf16.mxu1 %v6825_v32 }
 0x8e4   : > { %4922 = vmatpush1.bf16.msra.mxu1 %v6826_v62 }
 0x8e5   : > { %4923 = vmatprep.subr.bf16.mxu1 %v6827_v11 }
 0x8e8   : > { %4924 = vmatpush1.bf16.msra.mxu1 %v8334_v52  ;;  %v9466_v52 = vld [vmem:[#allocation2_spill] sm:$0xff] }
 0x8e9   : > { %4925 = vmatprep.subr.bf16.mxu1 %v8339_v57  ;;  %v9467_v57 = vld [vmem:[#allocation3_spill] sm:$0xff] }
 0x8ec   : > { %4926 = vmatpush1.bf16.msra.mxu1 %v8345_v61  ;;  %v4569_v61 = vpop.f32.mrf.mxu1 }
 0x8ed   : > { %4927 = vmatprep.subr.bf16.mxu1 %v8351_v6  ;;  %v4612_v6 = vpop.f32.mrf.mxu0 }
 0x8ee   : > { %v4613_v12 = vadd.f32 %v4612_v6, %v4569_v61 }
 0x8f0   : > { %4928 = vmatpush1.bf16.msra.mxu1 %v8357_v15  ;;  %v4571_v15 = vpop.f32.mrf.mxu1 }
 0x8f1   : > { %4929 = vmatprep.subr.bf16.mxu1 %v8363_v16  ;;  %v4614_v16 = vpop.f32.mrf.mxu0 }
 0x8f4   : > { %4930 = vmatpush1.bf16.msra.mxu1 %v8369_v19  ;;  %v4573_v19 = vpop.f32.mrf.mxu1 }
 0x8f5   : > { %4931 = vmatprep.subr.bf16.mxu1 %v8375_v24  ;;  %v4616_v24 = vpop.f32.mrf.mxu0 }
 0x8f6   : > { %v4617_v13 = vadd.f32 %v4616_v24, %v4573_v19 }
 0x8f8   : > { %4932 = vmatpush1.bf16.msra.mxu1 %v8381_v25  ;;  %v4575_v25 = vpop.f32.mrf.mxu1 }
 0x8f9   : > { %4933 = vmatprep.subr.bf16.mxu1 %v8387_v26  ;;  %v4618_v26 = vpop.f32.mrf.mxu0 }
 0x8fa   : > { %v4619_v27 = vadd.f32 %v4618_v26, %v4575_v25 }
 0x8fc   : > { %4934 = vmatpush2.bf16.msra.mxu1 %v8393_v28 }
 0x8fd   : > { %4935 = vmatprep.subr.bf16.mxu1 %v8399_v29 }
 0x900   : > { %4936 = vmatpush2.bf16.msra.mxu1 %v8405_v30 }
 0x901   : > { %4937 = vmatprep.subr.bf16.mxu1 %v8411_v31 }
 0x904   : > { %4938 = vmatpush2.bf16.msra.mxu1 %v8417_v55 }
 0x905   : > { %4939 = vmatprep.subr.bf16.mxu1 %v8423_v35 }
 0x908   : > { %4940 = vmatpush2.bf16.msra.mxu1 %v8429_v18 }
 0x909   : > { %4941 = vmatprep.subr.bf16.mxu1 %v8435_v37 }
 0x90c   : > { %4942 = vmatpush2.bf16.msra.mxu1 %v8441_v38 }
 0x90d   : > { %4943 = vmatprep.subr.bf16.mxu1 %v8447_v42 }
 0x910   : > { %4944 = vmatpush2.bf16.msra.mxu1 %v8453_v43 }
 0x911   : > { %4945 = vmatprep.subr.bf16.mxu1 %v8459_v44 }
 0x913   : > { %v4706_v29 = vpop.f32.mrf.mxu0 }
 0x914   : > { %4946 = vmatpush2.bf16.msra.mxu1 %v8465_v46 }
 0x915   : > { %4947 = vmatprep.subr.bf16.mxu1 %v9466_v52  ;;  %v4708_v31 = vpop.f32.mrf.mxu0 }
 0x917   : > { %v4710_v35 = vpop.f32.mrf.mxu0 }
 0x918   : > { %4948 = vmatpush2.bf16.msra.mxu1 %v9467_v57 }
 0x919   : > { %v4712_v37 = vpop.f32.mrf.mxu0 }
 0x91b   : > { %4950 = vmatmul.mubr.bf16.vlgmr.msra.gmra.mxu1 %v4915_v14  ;;  %v4657_v28 = vpop.f32.mrf.mxu1  ;;  %v4615_v14 = vadd.f32 %v4614_v16, %v4571_v15  ;;  %v4985_v16 = vpop.permute.xlu1 %4984 }
 0x91c   : > { %v4666_v33 = vadd.f32 %v4657_v28, %v4613_v12 }
 0x91d   : > { %v4659_v30 = vpop.f32.mrf.mxu1 }
 0x91e   : > { %v4667_v53 = vadd.f32 %v4659_v30, %v4615_v14  ;;  %v4715_v39 = vadd.f32 %v4706_v29, %v4666_v33 }
 0x91f   : > { %v4661_v55 = vpop.f32.mrf.mxu1 }
 0x920   : > { %v4668_v50 = vadd.f32 %v4661_v55, %v4617_v13  ;;  %v4716_v4 = vadd.f32 %v4708_v31, %v4667_v53 }
 0x921   : > { %v4663_v18 = vpop.f32.mrf.mxu1 }
 0x922   : > { %v4669_v21 = vadd.f32 %v4663_v18, %v4619_v27  ;;  %v4717_v22 = vadd.f32 %v4710_v35, %v4668_v50 }
 0x924   : > { %v4718_v54 = vadd.f32 %v4712_v37, %v4669_v21  ;;  %v4990_v37 = vpop.permute.xlu0 %4989 }
 0x953   : > { %v4804_v42 = vpop.f32.mrf.mxu0 }
 0x955   : > { %v4806_v44 = vpop.f32.mrf.mxu0 }
 0x957   : > { %v4808_v2 = vpop.f32.mrf.mxu0 }
 0x959   : > { %v4810_v40 = vpop.f32.mrf.mxu0 }
 0x95b   : > { %v4755_v38 = vpop.f32.mrf.mxu1 }
 0x95c   : > { %v4764_v1 = vadd.f32 %v4755_v38, %v4715_v39 }
 0x95d   : > { %v4757_v43 = vpop.f32.mrf.mxu1 }
 0x95e   : > { %v4765_v8 = vadd.f32 %v4757_v43, %v4716_v4  ;;  %v4813_v47 = vadd.f32 %v4804_v42, %v4764_v1 }
 0x95f   : > { %v4759_v46 = vpop.f32.mrf.mxu1 }
 0x960   : > { %v4766_v45 = vadd.f32 %v4759_v46, %v4717_v22  ;;  %v4814_v20 = vadd.f32 %v4806_v44, %v4765_v8 }
 0x961   : > { %v4761_v23 = vpop.f32.mrf.mxu1 }
 0x962   : > { %v4767_v0 = vadd.f32 %v4761_v23, %v4718_v54  ;;  %v4815_v63 = vadd.f32 %v4808_v2, %v4766_v45 }
 0x964   : > { %v4816_v56 = vadd.f32 %v4810_v40, %v4767_v0 }
 0x993   : > { %v4902_v5 = vpop.f32.mrf.mxu0 }
 0x995   : > { %v4904_v3 = vpop.f32.mrf.mxu0 }
 0x997   : > { %v4906_v49 = vpop.f32.mrf.mxu0 }
 0x999   : > { %v4908_v58 = vpop.f32.mrf.mxu0 }
 0x99b   : > { %v4853_v48 = vpop.f32.mrf.mxu1  ;;  %v5044_v57 = vpop.f32.mrf.mxu0 }
 0x99c   : > { %v4862_v9 = vadd.f32 %v4853_v48, %v4813_v47 }
 0x99d   : > { %v4855_v51 = vpop.f32.mrf.mxu1  ;;  %v5046_v30 = vpop.f32.mrf.mxu0 }
 0x99e   : > { %v4863_v36 = vadd.f32 %v4855_v51, %v4814_v20  ;;  %v4911_v60 = vadd.f32 %v4902_v5, %v4862_v9 }
 0x99f   : > { %v4857_v17 = vpop.f32.mrf.mxu1  ;;  %v5048_v46 = vpop.f32.mrf.mxu0 }
 0x9a0   : > { %v4864_v59 = vadd.f32 %v4857_v17, %v4815_v63  ;;  %v4912_v11 = vadd.f32 %v4904_v3, %v4863_v36 }
 0x9a1   : > { %v4859_v41 = vpop.f32.mrf.mxu1  ;;  %v5050_v40 = vpop.f32.mrf.mxu0 }
 0x9a2   : > { %v4865_v32 = vadd.f32 %v4859_v41, %v4816_v56  ;;  %v4913_v15 = vadd.f32 %v4906_v49, %v4864_v59 }
 0x9a4   : > { %v4914_v26 = vadd.f32 %v4908_v58, %v4865_v32 }
 0x9db   : > { %v4951_v34 = vpop.f32.mrf.mxu1 }
 0x9dc   : > { %v4960_v62 = vadd.f32 %v4951_v34, %v4911_v60 }
 0x9dd   : > { %v4953_v52 = vpop.f32.mrf.mxu1 }
 0x9de   : > { %v4976_v61 = vmul.f32 %v4969_v10, %v4960_v62  ;;  %v4961_v6 = vadd.f32 %v4953_v52, %v4912_v11 }
 0x9df   : > { %v4955_v19 = vpop.f32.mrf.mxu1 }
 0x9e0   : > { %v4977_v24 = vmul.f32 %v4969_v10, %v4961_v6  ;;  %v4962_v25 = vadd.f32 %v4955_v19, %v4913_v15  ;;  %v4992_v28 = vadd.f32 %v4985_v16, %v4976_v61 }
 0x9e1   : > { %v4957_v29 = vpop.f32.mrf.mxu1 }
 0x9e2   : > { %v4978_v31 = vmul.f32 %v4974_v7, %v4962_v25  ;;  %v4963_v55 = vadd.f32 %v4957_v29, %v4914_v26  ;;  %v4996_v35 = vmax.f32 %v4992_v28, 0.0  ;;  %v4993_v18 = vadd.f32 %v4985_v16, %v4977_v24 }
 0x9e4   : > { %v4979_v38 = vmul.f32 %v4974_v7, %v4963_v55  ;;  %v5053_v42 = vadd.f32 %v5044_v57, %v4996_v35  ;;  %v4997_v43 = vmax.f32 %v4993_v18, 0.0  ;;  %v4994_v44 = vadd.f32 %v4990_v37, %v4978_v31 }
 0x9e6   : > { %v5057_v12 = vmax.f32 %v5053_v42, 0.0  ;;  %v5054_v2 = vadd.f32 %v5046_v30, %v4997_v43  ;;  %v4998_v14 = vmax.f32 %v4994_v44, 0.0  ;;  %v4995_v33 = vadd.f32 %v4990_v37, %v4979_v38 }
 0x9e8   : > { %5061 = vst [vmem:[%s541_s23] sm:$0xff] %v5057_v12  ;;  %v5058_v23 = vmax.f32 %v5054_v2, 0.0  ;;  %v5055_v13 = vadd.f32 %v5048_v46, %v4998_v14  ;;  %v4999_v53 = vmax.f32 %v4995_v33, 0.0 }
 0x9ea   : > { %5062 = vst [vmem:[%s541_s23 + $0x8] sm:$0xff] %v5058_v23  ;;  %v5059_v48 = vmax.f32 %v5055_v13, 0.0  ;;  %v5056_v27 = vadd.f32 %v5050_v40, %v4999_v53 }
 0x9ec   : > { %5063 = vst [vmem:[%s541_s23 + $0x10] sm:$0xff] %v5059_v48  ;;  %v5060_v39 = vmax.f32 %v5056_v27, 0.0 }
 0x9ee   : > { %5064 = vst [vmem:[%s541_s23 + $0x18] sm:$0xff] %v5060_v39 }
 0x9ef PF: > { %s26_s21 = sadd.s32 1, %s6834_s21  }
 0x9f0   : > { %p23_p4 = scmp.ge.s32.totalorder %s26_s21, 4  }
 0x9f2   :  { %25 = sbr.rel (!%p23_p4) target bundleno = 2 (0x2), region = 128 }

</bundles_post_ra>
